<compile_context>
chip_gen: v7x
topology: tpu7x:2x2x1
jax: 0.10.0
libtpu: 0.0.40
codegen_flags: <defaults>
</compile_context>

<pallas_src>
import functools

import jax
import jax.numpy as jnp
from jax import lax
from jax.experimental import pallas as pl
from jax.experimental.pallas import tpu as pltpu


def _round_up(x, m):
    return (x + m - 1) // m * m


# ----------------------------------------------------------------------------
# Fused kernel: all layers, one time chunk per grid step.
#
# Args after the 4 static partial args:
#   x_ref                  : (T_CHUNK*Bp, Ep)    bf16  time-major chunk
#   per layer l: wih_l (Din_p, 4Hp) bf16, whh_l (Hp, 4Hp) bf16, bias_l (1,4Hp) f32
#   out_ref                : (T_CHUNK*Bp, Hp)    f32   last-layer output chunk
#   h_out_ref, c_out_ref   : (L, Bp, Hp)         f32   running h/c state (resident)
#   gx_ref   (scratch)     : (T_CHUNK*Bp, 4Hp)   f32   hoisted input gates
#   act_ref  (scratch)     : (T_CHUNK*Bp, Hp)    bf16  inter-layer activation
#
# Gate order matches PyTorch: [i, f, g, o], each of width Hp (lane aligned).
# ----------------------------------------------------------------------------
def _encoder_lstm_kernel(num_layers, batch_p, t_chunk, seq_len, x_ref, *args):
    n_w = 3 * num_layers
    w_refs = args[:n_w]
    out_ref, h_out_ref, c_out_ref = args[n_w:n_w + 3]
    gx_ref, act_ref = args[n_w + 3:n_w + 5]

    hp = out_ref.shape[-1]
    chunk = pl.program_id(0)
    need_mask = (seq_len % t_chunk) != 0  # static

    @pl.when(chunk == 0)
    def _():
        h_out_ref[...] = jnp.zeros_like(h_out_ref)
        c_out_ref[...] = jnp.zeros_like(c_out_ref)

    for l in range(num_layers):
        w_ih_ref = w_refs[3 * l]
        w_hh_ref = w_refs[3 * l + 1]
        bias_ref = w_refs[3 * l + 2]
        last_layer = (l + 1 == num_layers)

        # Hoisted input projection for the whole chunk: one big MXU matmul,
        # bias folded once.  Operands are read inline from VMEM refs.
        src_vals = x_ref[...] if l == 0 else act_ref[...]
        gx_ref[...] = jnp.dot(src_vals, w_ih_ref[...],
                              preferred_element_type=jnp.float32) + bias_ref[...]

        def step(t, carry, _whh_ref=w_hh_ref, _last=last_layer):
            h, c = carry
            row = pl.multiple_of(t * batch_p, batch_p)
            g = gx_ref[pl.ds(row, batch_p), :] + jnp.dot(
                h.astype(jnp.bfloat16), _whh_ref[...],
                preferred_element_type=jnp.float32)          # (Bp, 4Hp) f32
            i_g = jax.nn.sigmoid(g[:, 0 * hp:1 * hp])
            f_g = jax.nn.sigmoid(g[:, 1 * hp:2 * hp])
            g_g = jnp.tanh(g[:, 2 * hp:3 * hp])
            o_g = jax.nn.sigmoid(g[:, 3 * hp:4 * hp])
            c_new = f_g * c + i_g * g_g
            h_new = o_g * jnp.tanh(c_new)
            if _last:
                out_ref[pl.ds(row, batch_p), :] = h_new      # lane-dense f32 store
            else:
                act_ref[pl.ds(row, batch_p), :] = h_new.astype(jnp.bfloat16)
            if need_mask:
                valid = (chunk * t_chunk + t) < seq_len
                h_new = jnp.where(valid, h_new, h)
                c_new = jnp.where(valid, c_new, c)
            return (h_new, c_new)

        h0 = h_out_ref[l]
        c0 = c_out_ref[l]
        h_f, c_f = lax.fori_loop(0, t_chunk, step, (h0, c0),
                                 unroll=min(8, t_chunk))
        h_out_ref[l] = h_f
        c_out_ref[l] = c_f


# ----------------------------------------------------------------------------
# Weight padding helpers (gate-wise zero padding so padded lanes stay inert).
# ----------------------------------------------------------------------------
def _pad_gate_matrix(w, h, hp, din, dinp):
    """w: (4H, Din) PyTorch layout -> (Dinp, 4*Hp) bf16, gate-major columns."""
    w4 = w.reshape(4, h, din)
    w4 = jnp.pad(w4, ((0, 0), (0, hp - h), (0, dinp - din)))
    wt = jnp.transpose(w4, (2, 0, 1)).reshape(dinp, 4 * hp)
    return wt.astype(jnp.bfloat16)


def _pad_gate_bias(b, h, hp):
    """b: (4H,) -> (1, 4*Hp) f32, gate-major."""
    b4 = b.reshape(4, h)
    b4 = jnp.pad(b4, ((0, 0), (0, hp - h)))
    return b4.reshape(1, 4 * hp).astype(jnp.float32)


# ----------------------------------------------------------------------------
# Encoder forward (wrapper / glue)
# ----------------------------------------------------------------------------
def encoder_forward(src, params, *, t_chunk=32):
    """src: (B, S) int32. Returns (outputs (B,S,H), hidden (L,B,H), cell (L,B,H))."""
    emb_table = params["embedding"]                  # (V, E)
    layers = params["lstm"]
    num_layers = len(layers)
    hidden_dim = layers[0]["w_hh"].shape[1]

    batch, seq = src.shape
    emb_dim = emb_table.shape[1]

    # Build the embedding time-major directly (no (B,S,E) transpose afterwards).
    x = jnp.take(emb_table, src.T, axis=0)           # (S, B, E)
    # dropout on embeddings: identity (eval mode)

    bp = _round_up(batch, 16)         # bf16 sublane packing
    ep = _round_up(emb_dim, 128)      # lane alignment
    hp = _round_up(hidden_dim, 128)   # lane alignment
    tc = max(1, min(t_chunk, seq))    # timesteps per grid step
    seq_p = _round_up(seq, tc)
    num_chunks = seq_p // tc

    x = jnp.pad(x, ((0, seq_p - seq), (0, bp - batch), (0, ep - emb_dim)))
    x = x.reshape(seq_p * bp, ep).astype(jnp.bfloat16)

    flat_inputs = [x]
    in_specs = [pl.BlockSpec((tc * bp, ep), lambda c: (c, 0))]
    w_bytes = 0
    for l, layer in enumerate(layers):
        din = emb_dim if l == 0 else hidden_dim
        dinp = ep if l == 0 else hp
        wih = _pad_gate_matrix(layer["w_ih"], hidden_dim, hp, din, dinp)
        whh = _pad_gate_matrix(layer["w_hh"], hidden_dim, hp, hidden_dim, hp)
        bias = _pad_gate_bias(layer["b_ih"] + layer["b_hh"], hidden_dim, hp)
        flat_inputs += [wih, whh, bias]
        in_specs += [
            pl.BlockSpec((dinp, 4 * hp), lambda c: (0, 0)),
            pl.BlockSpec((hp, 4 * hp), lambda c: (0, 0)),
            pl.BlockSpec((1, 4 * hp), lambda c: (0, 0)),
        ]
        w_bytes += dinp * 4 * hp * 2 + hp * 4 * hp * 2 + 4 * hp * 4

    # VMEM budget: x chunk + out chunk (double-buffered), weights, h/c state,
    # gx + inter-layer scratch; headroom, capped below v7x physical (64 MiB).
    vmem_est = (2 * tc * bp * ep * 2            # x chunk (bf16, 2 bufs)
                + 2 * tc * bp * hp * 4          # out chunk (f32, 2 bufs)
                + 2 * num_layers * bp * hp * 4 * 2  # h/c outputs
                + tc * bp * 4 * hp * 4          # gx scratch (f32)
                + tc * bp * hp * 2              # inter-layer scratch (bf16)
                + 2 * w_bytes)                  # weights (buffered)
    vmem_limit = min(max(int(vmem_est * 1.5) + (4 << 20), 32 << 20), 64 << 20)

    kernel = functools.partial(_encoder_lstm_kernel, num_layers, bp, tc, seq)

    out_p, h_p, c_p = pl.pallas_call(
        kernel,
        out_shape=(
            jax.ShapeDtypeStruct((seq_p * bp, hp), jnp.float32),
            jax.ShapeDtypeStruct((num_layers, bp, hp), jnp.float32),
            jax.ShapeDtypeStruct((num_layers, bp, hp), jnp.float32),
        ),
        grid_spec=pltpu.PrefetchScalarGridSpec(
            num_scalar_prefetch=0,
            grid=(num_chunks,),
            in_specs=in_specs,
            out_specs=[
                pl.BlockSpec((tc * bp, hp), lambda c: (c, 0)),
                pl.BlockSpec((num_layers, bp, hp), lambda c: (0, 0, 0)),
                pl.BlockSpec((num_layers, bp, hp), lambda c: (0, 0, 0)),
            ],
            scratch_shapes=[
                pltpu.VMEM((tc * bp, 4 * hp), jnp.float32),   # hoisted input gates
                pltpu.VMEM((tc * bp, hp), jnp.bfloat16),      # inter-layer activation
            ],
        ),
        compiler_params=pltpu.CompilerParams(
            dimension_semantics=("arbitrary",),
            vmem_limit_bytes=vmem_limit),
    )(*flat_inputs)

    # Strip padding, restore batch_first layout.
    outputs = out_p.reshape(seq_p, bp, hp)[:seq, :batch, :hidden_dim]
    outputs = jnp.transpose(outputs, (1, 0, 2))               # (B, S, H)
    hidden = h_p[:, :batch, :hidden_dim]                      # (L, B, H)
    cell = c_p[:, :batch, :hidden_dim]                        # (L, B, H)
    return outputs, hidden, cell


# ----------------------------------------------------------------------------
# Pure-JAX f32 reference (correctness sanity check)
# ----------------------------------------------------------------------------
def encoder_reference(src, params):
    emb = jnp.take(params["embedding"], src, axis=0)   # (B, S, E)
    x = jnp.transpose(emb, (1, 0, 2))                  # (S, B, E)
    hiddens, cells = [], []
    for layer in params["lstm"]:
        w_ih, w_hh = layer["w_ih"], layer["w_hh"]
        bias = layer["b_ih"] + layer["b_hh"]
        h_dim = w_hh.shape[1]
        batch = x.shape[1]

        def step(carry, x_t, w_ih=w_ih, w_hh=w_hh, bias=bias, h_dim=h_dim):
            h, c = carry
            g = x_t @ w_ih.T + h @ w_hh.T + bias
            i = jax.nn.sigmoid(g[:, 0 * h_dim:1 * h_dim])
            f = jax.nn.sigmoid(g[:, 1 * h_dim:2 * h_dim])
            gg = jnp.tanh(g[:, 2 * h_dim:3 * h_dim])
            o = jax.nn.sigmoid(g[:, 3 * h_dim:4 * h_dim])
            c_new = f * c + i * gg
            h_new = o * jnp.tanh(c_new)
            return (h_new, c_new), h_new

        init = (jnp.zeros((batch, h_dim), jnp.float32),
                jnp.zeros((batch, h_dim), jnp.float32))
        (h_f, c_f), ys = lax.scan(step, init, x)
        x = ys
        hiddens.append(h_f)
        cells.append(c_f)
    return jnp.transpose(x, (1, 0, 2)), jnp.stack(hiddens), jnp.stack(cells)


# ----------------------------------------------------------------------------
# Deterministic parameter init (shapes follow nn.Embedding + nn.LSTM)
# ----------------------------------------------------------------------------
def init_params(key, input_dim, emb_dim, hidden_dim, num_layers):
    keys = jax.random.split(key, 1 + 4 * num_layers)
    params = {"embedding": 0.1 * jax.random.normal(
        keys[0], (input_dim, emb_dim), jnp.float32)}
    layers = []
    for l in range(num_layers):
        in_dim = emb_dim if l == 0 else hidden_dim
        k = keys[1 + 4 * l: 1 + 4 * (l + 1)]
        layers.append({
            "w_ih": 0.1 * jax.random.normal(k[0], (4 * hidden_dim, in_dim), jnp.float32),
            "w_hh": 0.1 * jax.random.normal(k[1], (4 * hidden_dim, hidden_dim), jnp.float32),
            "b_ih": 0.1 * jax.random.normal(k[2], (4 * hidden_dim,), jnp.float32),
            "b_hh": 0.1 * jax.random.normal(k[3], (4 * hidden_dim,), jnp.float32),
        })
    params["lstm"] = layers
    return params


if __name__ == "__main__":
    # Small shapes consistent with the module
    input_dim = 50     # vocab size
    emb_dim = 32
    hidden_dim = 32
    num_layers = 2
    batch = 2
    seq = 8

    key = jax.random.PRNGKey(0)
    k_param, k_src = jax.random.split(key)
    params = init_params(k_param, input_dim, emb_dim, hidden_dim, num_layers)
    src = jax.random.randint(k_src, (batch, seq), 0, input_dim, dtype=jnp.int32)

    ref_out, ref_h, ref_c = encoder_reference(src, params)

    # Single-chunk path (S <= T_CHUNK).
    outputs, hidden, cell = encoder_forward(src, params)
    jax.block_until_ready((outputs, hidden, cell))
    assert outputs.shape == (batch, seq, hidden_dim)
    assert hidden.shape == (num_layers, batch, hidden_dim)
    assert cell.shape == (num_layers, batch, hidden_dim)
    assert jnp.allclose(outputs, ref_out, atol=2e-2, rtol=2e-2)
    assert jnp.allclose(hidden, ref_h, atol=2e-2, rtol=2e-2)
    assert jnp.allclose(cell, ref_c, atol=2e-2, rtol=2e-2)

    # Multi-chunk path with a remainder chunk (exercises state masking).
    outputs2, hidden2, cell2 = encoder_forward(src, params, t_chunk=5)
    jax.block_until_ready((outputs2, hidden2, cell2))
    assert jnp.allclose(outputs2, ref_out, atol=2e-2, rtol=2e-2)
    assert jnp.allclose(hidden2, ref_h, atol=2e-2, rtol=2e-2)
    assert jnp.allclose(cell2, ref_c, atol=2e-2, rtol=2e-2)

    print("KERNEL_OK")
</pallas_src>

<mosaic_0001>
module attributes {stable_mosaic.version = 11 : i64} {
  func.func @_encoder_lstm_kernel(%arg0: i32, %arg1: memref<128x128xbf16, #tpu.memory_space<vmem>>, %arg2: memref<128x512xbf16, #tpu.memory_space<vmem>>, %arg3: memref<128x512xbf16, #tpu.memory_space<vmem>>, %arg4: memref<1x512xf32, #tpu.memory_space<vmem>>, %arg5: memref<128x512xbf16, #tpu.memory_space<vmem>>, %arg6: memref<128x512xbf16, #tpu.memory_space<vmem>>, %arg7: memref<1x512xf32, #tpu.memory_space<vmem>>, %arg8: memref<128x128xf32, #tpu.memory_space<vmem>>, %arg9: memref<2x16x128xf32, #tpu.memory_space<vmem>>, %arg10: memref<2x16x128xf32, #tpu.memory_space<vmem>>, %arg11: memref<128x512xf32, #tpu.memory_space<vmem>>, %arg12: memref<128x128xbf16, #tpu.memory_space<vmem>>) attributes {dimension_semantics = [#tpu.dimension_semantics<arbitrary>], iteration_bounds = array<i64: 1>, scalar_prefetch = 0 : i64, scratch_operands = 2 : i64, tpu.core_type = #tpu.core_type<tc>, window_params = [{transform_indices = @transform_0, window_bounds = array<i64: 128, 128>}, {pipeline_mode = #tpu.pipeline_mode<synchronous>, transform_indices = @transform_1, window_bounds = array<i64: 128, 512>}, {pipeline_mode = #tpu.pipeline_mode<synchronous>, transform_indices = @transform_2, window_bounds = array<i64: 128, 512>}, {pipeline_mode = #tpu.pipeline_mode<synchronous>, transform_indices = @transform_3, window_bounds = array<i64: 1, 512>}, {pipeline_mode = #tpu.pipeline_mode<synchronous>, transform_indices = @transform_4, window_bounds = array<i64: 128, 512>}, {pipeline_mode = #tpu.pipeline_mode<synchronous>, transform_indices = @transform_5, window_bounds = array<i64: 128, 512>}, {pipeline_mode = #tpu.pipeline_mode<synchronous>, transform_indices = @transform_6, window_bounds = array<i64: 1, 512>}, {transform_indices = @transform_7, window_bounds = array<i64: 128, 128>}, {pipeline_mode = #tpu.pipeline_mode<synchronous>, transform_indices = @transform_8, window_bounds = array<i64: 2, 16, 128>}, {pipeline_mode = #tpu.pipeline_mode<synchronous>, transform_indices = @transform_9, window_bounds = array<i64: 2, 16, 128>}]} {
    %c0_i32 = arith.constant 0 : i32
    %0 = arith.cmpi eq, %arg0, %c0_i32 : i32
    %1 = arith.extui %0 : i1 to i32
    %c0_i32_0 = arith.constant 0 : i32
    %2 = arith.cmpi ne, %1, %c0_i32_0 : i32
    scf.if %2 {
      %cst_193 = arith.constant 0.000000e+00 : f32
      %605 = vector.broadcast %cst_193 : f32 to vector<2x16x128xf32>
      %c0_194 = arith.constant 0 : index
      %c0_195 = arith.constant 0 : index
      %c0_196 = arith.constant 0 : index
      %606 = vector.load %arg9[%c0_194, %c0_195, %c0_196] : memref<2x16x128xf32, #tpu.memory_space<vmem>>, vector<2x16x128xf32>
      tpu.vector_store %arg9[%c0_194, %c0_195, %c0_196], %605 {strides = array<i32>} : memref<2x16x128xf32, #tpu.memory_space<vmem>>, vector<2x16x128xf32>,
      %cst_197 = arith.constant 0.000000e+00 : f32
      %607 = vector.broadcast %cst_197 : f32 to vector<2x16x128xf32>
      %c0_198 = arith.constant 0 : index
      %c0_199 = arith.constant 0 : index
      %c0_200 = arith.constant 0 : index
      %608 = vector.load %arg10[%c0_198, %c0_199, %c0_200] : memref<2x16x128xf32, #tpu.memory_space<vmem>>, vector<2x16x128xf32>
      tpu.vector_store %arg10[%c0_198, %c0_199, %c0_200], %607 {strides = array<i32>} : memref<2x16x128xf32, #tpu.memory_space<vmem>>, vector<2x16x128xf32>,
    } else {
    }
    %c0 = arith.constant 0 : index
    %c0_1 = arith.constant 0 : index
    %3 = vector.load %arg1[%c0, %c0_1] : memref<128x128xbf16, #tpu.memory_space<vmem>>, vector<128x128xbf16>
    %c0_2 = arith.constant 0 : index
    %c0_3 = arith.constant 0 : index
    %4 = vector.load %arg2[%c0_2, %c0_3] : memref<128x512xbf16, #tpu.memory_space<vmem>>, vector<128x512xbf16>
    %cst = arith.constant dense<0.000000e+00> : vector<128x512xf32>
    %5 = tpu.matmul %3, %4, %cst {dimension_numbers = #tpu.dot_dimension_numbers<[1], [0], [0], [1], [0, 0, 1, 1], [], []>} : vector<128x128xbf16>, vector<128x512xbf16>, vector<128x512xf32> -> vector<128x512xf32>
    %c0_4 = arith.constant 0 : index
    %c0_5 = arith.constant 0 : index
    %6 = vector.load %arg4[%c0_4, %c0_5] : memref<1x512xf32, #tpu.memory_space<vmem>>, vector<1x512xf32>
    %7 = vector.broadcast %6 : vector<1x512xf32> to vector<128x512xf32>
    %8 = arith.addf %5, %7 : vector<128x512xf32>
    %c0_6 = arith.constant 0 : index
    %c0_7 = arith.constant 0 : index
    %9 = vector.load %arg11[%c0_6, %c0_7] : memref<128x512xf32, #tpu.memory_space<vmem>>, vector<128x512xf32>
    tpu.vector_store %arg11[%c0_6, %c0_7], %8 {strides = array<i32>} : memref<128x512xf32, #tpu.memory_space<vmem>>, vector<128x512xf32>,
    %c0_8 = arith.constant 0 : index
    %c0_9 = arith.constant 0 : index
    %c0_10 = arith.constant 0 : index
    %10 = vector.load %arg9[%c0_8, %c0_9, %c0_10] : memref<2x16x128xf32, #tpu.memory_space<vmem>>, vector<1x16x128xf32>
    %11 = vector.shape_cast %10 : vector<1x16x128xf32> to vector<16x128xf32>
    %c0_11 = arith.constant 0 : index
    %c0_12 = arith.constant 0 : index
    %c0_13 = arith.constant 0 : index
    %12 = vector.load %arg10[%c0_11, %c0_12, %c0_13] : memref<2x16x128xf32, #tpu.memory_space<vmem>>, vector<1x16x128xf32>
    %13 = vector.shape_cast %12 : vector<1x16x128xf32> to vector<16x128xf32>
    %c0_i32_14 = arith.constant 0 : i32
    %c16_i32 = arith.constant 16 : i32
    %14 = arith.muli %c0_i32_14, %c16_i32 : i32
    %15 = tpu.assume_multiple %14, 16 : i32
    %16 = arith.index_cast %15 : i32 to index
    %c0_15 = arith.constant 0 : index
    %17 = vector.load %arg11[%16, %c0_15] : memref<128x512xf32, #tpu.memory_space<vmem>>, vector<16x512xf32>
    %18 = arith.truncf %11 : vector<16x128xf32> to vector<16x128xbf16>
    %c0_16 = arith.constant 0 : index
    %c0_17 = arith.constant 0 : index
    %19 = vector.load %arg3[%c0_16, %c0_17] : memref<128x512xbf16, #tpu.memory_space<vmem>>, vector<128x512xbf16>
    %cst_18 = arith.constant dense<0.000000e+00> : vector<16x512xf32>
    %20 = tpu.matmul %18, %19, %cst_18 {dimension_numbers = #tpu.dot_dimension_numbers<[1], [0], [0], [1], [0, 0, 1, 1], [], []>} : vector<16x128xbf16>, vector<128x512xbf16>, vector<16x512xf32> -> vector<16x512xf32>
    %21 = arith.addf %17, %20 : vector<16x512xf32>
    %22 = vector.extract_strided_slice %21 {offsets = [0, 0], sizes = [16, 128], strides = [1, 1]} : vector<16x512xf32> to vector<16x128xf32>
    %23 = arith.negf %22 : vector<16x128xf32>
    %24 = math.exp %23 : vector<16x128xf32>
    %cst_19 = arith.constant 1.000000e+00 : f32
    %25 = vector.broadcast %cst_19 : f32 to vector<16x128xf32>
    %26 = arith.addf %25, %24 : vector<16x128xf32>
    %27 = arith.divf %25, %26 : vector<16x128xf32>
    %28 = vector.extract_strided_slice %21 {offsets = [0, 128], sizes = [16, 128], strides = [1, 1]} : vector<16x512xf32> to vector<16x128xf32>
    %29 = arith.negf %28 : vector<16x128xf32>
    %30 = math.exp %29 : vector<16x128xf32>
    %cst_20 = arith.constant 1.000000e+00 : f32
    %31 = vector.broadcast %cst_20 : f32 to vector<16x128xf32>
    %32 = arith.addf %31, %30 : vector<16x128xf32>
    %33 = arith.divf %31, %32 : vector<16x128xf32>
    %34 = vector.extract_strided_slice %21 {offsets = [0, 256], sizes = [16, 128], strides = [1, 1]} : vector<16x512xf32> to vector<16x128xf32>
    %35 = math.tanh %34 : vector<16x128xf32>
    %36 = vector.extract_strided_slice %21 {offsets = [0, 384], sizes = [16, 128], strides = [1, 1]} : vector<16x512xf32> to vector<16x128xf32>
    %37 = arith.negf %36 : vector<16x128xf32>
    %38 = math.exp %37 : vector<16x128xf32>
    %cst_21 = arith.constant 1.000000e+00 : f32
    %39 = vector.broadcast %cst_21 : f32 to vector<16x128xf32>
    %40 = arith.addf %39, %38 : vector<16x128xf32>
    %41 = arith.divf %39, %40 : vector<16x128xf32>
    %42 = arith.mulf %33, %13 : vector<16x128xf32>
    %43 = arith.mulf %27, %35 : vector<16x128xf32>
    %44 = arith.addf %42, %43 : vector<16x128xf32>
    %45 = math.tanh %44 : vector<16x128xf32>
    %46 = arith.mulf %41, %45 : vector<16x128xf32>
    %47 = arith.truncf %46 : vector<16x128xf32> to vector<16x128xbf16>
    %48 = arith.index_cast %15 : i32 to index
    %c0_22 = arith.constant 0 : index
    %49 = vector.load %arg12[%48, %c0_22] : memref<128x128xbf16, #tpu.memory_space<vmem>>, vector<16x128xbf16>
    tpu.vector_store %arg12[%48, %c0_22], %47 {strides = array<i32>} : memref<128x128xbf16, #tpu.memory_space<vmem>>, vector<16x128xbf16>,
    %c1_i32 = arith.constant 1 : i32
    %c16_i32_23 = arith.constant 16 : i32
    %50 = arith.muli %c1_i32, %c16_i32_23 : i32
    %51 = tpu.assume_multiple %50, 16 : i32
    %52 = arith.index_cast %51 : i32 to index
    %c0_24 = arith.constant 0 : index
    %53 = vector.load %arg11[%52, %c0_24] : memref<128x512xf32, #tpu.memory_space<vmem>>, vector<16x512xf32>
    %54 = arith.truncf %46 : vector<16x128xf32> to vector<16x128xbf16>
    %c0_25 = arith.constant 0 : index
    %c0_26 = arith.constant 0 : index
    %55 = vector.load %arg3[%c0_25, %c0_26] : memref<128x512xbf16, #tpu.memory_space<vmem>>, vector<128x512xbf16>
    %cst_27 = arith.constant dense<0.000000e+00> : vector<16x512xf32>
    %56 = tpu.matmul %54, %55, %cst_27 {dimension_numbers = #tpu.dot_dimension_numbers<[1], [0], [0], [1], [0, 0, 1, 1], [], []>} : vector<16x128xbf16>, vector<128x512xbf16>, vector<16x512xf32> -> vector<16x512xf32>
    %57 = arith.addf %53, %56 : vector<16x512xf32>
    %58 = vector.extract_strided_slice %57 {offsets = [0, 0], sizes = [16, 128], strides = [1, 1]} : vector<16x512xf32> to vector<16x128xf32>
    %59 = arith.negf %58 : vector<16x128xf32>
    %60 = math.exp %59 : vector<16x128xf32>
    %cst_28 = arith.constant 1.000000e+00 : f32
    %61 = vector.broadcast %cst_28 : f32 to vector<16x128xf32>
    %62 = arith.addf %61, %60 : vector<16x128xf32>
    %63 = arith.divf %61, %62 : vector<16x128xf32>
    %64 = vector.extract_strided_slice %57 {offsets = [0, 128], sizes = [16, 128], strides = [1, 1]} : vector<16x512xf32> to vector<16x128xf32>
    %65 = arith.negf %64 : vector<16x128xf32>
    %66 = math.exp %65 : vector<16x128xf32>
    %cst_29 = arith.constant 1.000000e+00 : f32
    %67 = vector.broadcast %cst_29 : f32 to vector<16x128xf32>
    %68 = arith.addf %67, %66 : vector<16x128xf32>
    %69 = arith.divf %67, %68 : vector<16x128xf32>
    %70 = vector.extract_strided_slice %57 {offsets = [0, 256], sizes = [16, 128], strides = [1, 1]} : vector<16x512xf32> to vector<16x128xf32>
    %71 = math.tanh %70 : vector<16x128xf32>
    %72 = vector.extract_strided_slice %57 {offsets = [0, 384], sizes = [16, 128], strides = [1, 1]} : vector<16x512xf32> to vector<16x128xf32>
    %73 = arith.negf %72 : vector<16x128xf32>
    %74 = math.exp %73 : vector<16x128xf32>
    %cst_30 = arith.constant 1.000000e+00 : f32
    %75 = vector.broadcast %cst_30 : f32 to vector<16x128xf32>
    %76 = arith.addf %75, %74 : vector<16x128xf32>
    %77 = arith.divf %75, %76 : vector<16x128xf32>
    %78 = arith.mulf %69, %44 : vector<16x128xf32>
    %79 = arith.mulf %63, %71 : vector<16x128xf32>
    %80 = arith.addf %78, %79 : vector<16x128xf32>
    %81 = math.tanh %80 : vector<16x128xf32>
    %82 = arith.mulf %77, %81 : vector<16x128xf32>
    %83 = arith.truncf %82 : vector<16x128xf32> to vector<16x128xbf16>
    %84 = arith.index_cast %51 : i32 to index
    %c0_31 = arith.constant 0 : index
    %85 = vector.load %arg12[%84, %c0_31] : memref<128x128xbf16, #tpu.memory_space<vmem>>, vector<16x128xbf16>
    tpu.vector_store %arg12[%84, %c0_31], %83 {strides = array<i32>} : memref<128x128xbf16, #tpu.memory_space<vmem>>, vector<16x128xbf16>,
    %c2_i32 = arith.constant 2 : i32
    %c16_i32_32 = arith.constant 16 : i32
    %86 = arith.muli %c2_i32, %c16_i32_32 : i32
    %87 = tpu.assume_multiple %86, 16 : i32
    %88 = arith.index_cast %87 : i32 to index
    %c0_33 = arith.constant 0 : index
    %89 = vector.load %arg11[%88, %c0_33] : memref<128x512xf32, #tpu.memory_space<vmem>>, vector<16x512xf32>
    %90 = arith.truncf %82 : vector<16x128xf32> to vector<16x128xbf16>
    %c0_34 = arith.constant 0 : index
    %c0_35 = arith.constant 0 : index
    %91 = vector.load %arg3[%c0_34, %c0_35] : memref<128x512xbf16, #tpu.memory_space<vmem>>, vector<128x512xbf16>
    %cst_36 = arith.constant dense<0.000000e+00> : vector<16x512xf32>
    %92 = tpu.matmul %90, %91, %cst_36 {dimension_numbers = #tpu.dot_dimension_numbers<[1], [0], [0], [1], [0, 0, 1, 1], [], []>} : vector<16x128xbf16>, vector<128x512xbf16>, vector<16x512xf32> -> vector<16x512xf32>
    %93 = arith.addf %89, %92 : vector<16x512xf32>
    %94 = vector.extract_strided_slice %93 {offsets = [0, 0], sizes = [16, 128], strides = [1, 1]} : vector<16x512xf32> to vector<16x128xf32>
    %95 = arith.negf %94 : vector<16x128xf32>
    %96 = math.exp %95 : vector<16x128xf32>
    %cst_37 = arith.constant 1.000000e+00 : f32
    %97 = vector.broadcast %cst_37 : f32 to vector<16x128xf32>
    %98 = arith.addf %97, %96 : vector<16x128xf32>
    %99 = arith.divf %97, %98 : vector<16x128xf32>
    %100 = vector.extract_strided_slice %93 {offsets = [0, 128], sizes = [16, 128], strides = [1, 1]} : vector<16x512xf32> to vector<16x128xf32>
    %101 = arith.negf %100 : vector<16x128xf32>
    %102 = math.exp %101 : vector<16x128xf32>
    %cst_38 = arith.constant 1.000000e+00 : f32
    %103 = vector.broadcast %cst_38 : f32 to vector<16x128xf32>
    %104 = arith.addf %103, %102 : vector<16x128xf32>
    %105 = arith.divf %103, %104 : vector<16x128xf32>
    %106 = vector.extract_strided_slice %93 {offsets = [0, 256], sizes = [16, 128], strides = [1, 1]} : vector<16x512xf32> to vector<16x128xf32>
    %107 = math.tanh %106 : vector<16x128xf32>
    %108 = vector.extract_strided_slice %93 {offsets = [0, 384], sizes = [16, 128], strides = [1, 1]} : vector<16x512xf32> to vector<16x128xf32>
    %109 = arith.negf %108 : vector<16x128xf32>
    %110 = math.exp %109 : vector<16x128xf32>
    %cst_39 = arith.constant 1.000000e+00 : f32
    %111 = vector.broadcast %cst_39 : f32 to vector<16x128xf32>
    %112 = arith.addf %111, %110 : vector<16x128xf32>
    %113 = arith.divf %111, %112 : vector<16x128xf32>
    %114 = arith.mulf %105, %80 : vector<16x128xf32>
    %115 = arith.mulf %99, %107 : vector<16x128xf32>
    %116 = arith.addf %114, %115 : vector<16x128xf32>
    %117 = math.tanh %116 : vector<16x128xf32>
    %118 = arith.mulf %113, %117 : vector<16x128xf32>
    %119 = arith.truncf %118 : vector<16x128xf32> to vector<16x128xbf16>
    %120 = arith.index_cast %87 : i32 to index
    %c0_40 = arith.constant 0 : index
    %121 = vector.load %arg12[%120, %c0_40] : memref<128x128xbf16, #tpu.memory_space<vmem>>, vector<16x128xbf16>
    tpu.vector_store %arg12[%120, %c0_40], %119 {strides = array<i32>} : memref<128x128xbf16, #tpu.memory_space<vmem>>, vector<16x128xbf16>,
    %c3_i32 = arith.constant 3 : i32
    %c16_i32_41 = arith.constant 16 : i32
    %122 = arith.muli %c3_i32, %c16_i32_41 : i32
    %123 = tpu.assume_multiple %122, 16 : i32
    %124 = arith.index_cast %123 : i32 to index
    %c0_42 = arith.constant 0 : index
    %125 = vector.load %arg11[%124, %c0_42] : memref<128x512xf32, #tpu.memory_space<vmem>>, vector<16x512xf32>
    %126 = arith.truncf %118 : vector<16x128xf32> to vector<16x128xbf16>
    %c0_43 = arith.constant 0 : index
    %c0_44 = arith.constant 0 : index
    %127 = vector.load %arg3[%c0_43, %c0_44] : memref<128x512xbf16, #tpu.memory_space<vmem>>, vector<128x512xbf16>
    %cst_45 = arith.constant dense<0.000000e+00> : vector<16x512xf32>
    %128 = tpu.matmul %126, %127, %cst_45 {dimension_numbers = #tpu.dot_dimension_numbers<[1], [0], [0], [1], [0, 0, 1, 1], [], []>} : vector<16x128xbf16>, vector<128x512xbf16>, vector<16x512xf32> -> vector<16x512xf32>
    %129 = arith.addf %125, %128 : vector<16x512xf32>
    %130 = vector.extract_strided_slice %129 {offsets = [0, 0], sizes = [16, 128], strides = [1, 1]} : vector<16x512xf32> to vector<16x128xf32>
    %131 = arith.negf %130 : vector<16x128xf32>
    %132 = math.exp %131 : vector<16x128xf32>
    %cst_46 = arith.constant 1.000000e+00 : f32
    %133 = vector.broadcast %cst_46 : f32 to vector<16x128xf32>
    %134 = arith.addf %133, %132 : vector<16x128xf32>
    %135 = arith.divf %133, %134 : vector<16x128xf32>
    %136 = vector.extract_strided_slice %129 {offsets = [0, 128], sizes = [16, 128], strides = [1, 1]} : vector<16x512xf32> to vector<16x128xf32>
    %137 = arith.negf %136 : vector<16x128xf32>
    %138 = math.exp %137 : vector<16x128xf32>
    %cst_47 = arith.constant 1.000000e+00 : f32
    %139 = vector.broadcast %cst_47 : f32 to vector<16x128xf32>
    %140 = arith.addf %139, %138 : vector<16x128xf32>
    %141 = arith.divf %139, %140 : vector<16x128xf32>
    %142 = vector.extract_strided_slice %129 {offsets = [0, 256], sizes = [16, 128], strides = [1, 1]} : vector<16x512xf32> to vector<16x128xf32>
    %143 = math.tanh %142 : vector<16x128xf32>
    %144 = vector.extract_strided_slice %129 {offsets = [0, 384], sizes = [16, 128], strides = [1, 1]} : vector<16x512xf32> to vector<16x128xf32>
    %145 = arith.negf %144 : vector<16x128xf32>
    %146 = math.exp %145 : vector<16x128xf32>
    %cst_48 = arith.constant 1.000000e+00 : f32
    %147 = vector.broadcast %cst_48 : f32 to vector<16x128xf32>
    %148 = arith.addf %147, %146 : vector<16x128xf32>
    %149 = arith.divf %147, %148 : vector<16x128xf32>
    %150 = arith.mulf %141, %116 : vector<16x128xf32>
    %151 = arith.mulf %135, %143 : vector<16x128xf32>
    %152 = arith.addf %150, %151 : vector<16x128xf32>
    %153 = math.tanh %152 : vector<16x128xf32>
    %154 = arith.mulf %149, %153 : vector<16x128xf32>
    %155 = arith.truncf %154 : vector<16x128xf32> to vector<16x128xbf16>
    %156 = arith.index_cast %123 : i32 to index
    %c0_49 = arith.constant 0 : index
    %157 = vector.load %arg12[%156, %c0_49] : memref<128x128xbf16, #tpu.memory_space<vmem>>, vector<16x128xbf16>
    tpu.vector_store %arg12[%156, %c0_49], %155 {strides = array<i32>} : memref<128x128xbf16, #tpu.memory_space<vmem>>, vector<16x128xbf16>,
    %c4_i32 = arith.constant 4 : i32
    %c16_i32_50 = arith.constant 16 : i32
    %158 = arith.muli %c4_i32, %c16_i32_50 : i32
    %159 = tpu.assume_multiple %158, 16 : i32
    %160 = arith.index_cast %159 : i32 to index
    %c0_51 = arith.constant 0 : index
    %161 = vector.load %arg11[%160, %c0_51] : memref<128x512xf32, #tpu.memory_space<vmem>>, vector<16x512xf32>
    %162 = arith.truncf %154 : vector<16x128xf32> to vector<16x128xbf16>
    %c0_52 = arith.constant 0 : index
    %c0_53 = arith.constant 0 : index
    %163 = vector.load %arg3[%c0_52, %c0_53] : memref<128x512xbf16, #tpu.memory_space<vmem>>, vector<128x512xbf16>
    %cst_54 = arith.constant dense<0.000000e+00> : vector<16x512xf32>
    %164 = tpu.matmul %162, %163, %cst_54 {dimension_numbers = #tpu.dot_dimension_numbers<[1], [0], [0], [1], [0, 0, 1, 1], [], []>} : vector<16x128xbf16>, vector<128x512xbf16>, vector<16x512xf32> -> vector<16x512xf32>
    %165 = arith.addf %161, %164 : vector<16x512xf32>
    %166 = vector.extract_strided_slice %165 {offsets = [0, 0], sizes = [16, 128], strides = [1, 1]} : vector<16x512xf32> to vector<16x128xf32>
    %167 = arith.negf %166 : vector<16x128xf32>
    %168 = math.exp %167 : vector<16x128xf32>
    %cst_55 = arith.constant 1.000000e+00 : f32
    %169 = vector.broadcast %cst_55 : f32 to vector<16x128xf32>
    %170 = arith.addf %169, %168 : vector<16x128xf32>
    %171 = arith.divf %169, %170 : vector<16x128xf32>
    %172 = vector.extract_strided_slice %165 {offsets = [0, 128], sizes = [16, 128], strides = [1, 1]} : vector<16x512xf32> to vector<16x128xf32>
    %173 = arith.negf %172 : vector<16x128xf32>
    %174 = math.exp %173 : vector<16x128xf32>
    %cst_56 = arith.constant 1.000000e+00 : f32
    %175 = vector.broadcast %cst_56 : f32 to vector<16x128xf32>
    %176 = arith.addf %175, %174 : vector<16x128xf32>
    %177 = arith.divf %175, %176 : vector<16x128xf32>
    %178 = vector.extract_strided_slice %165 {offsets = [0, 256], sizes = [16, 128], strides = [1, 1]} : vector<16x512xf32> to vector<16x128xf32>
    %179 = math.tanh %178 : vector<16x128xf32>
    %180 = vector.extract_strided_slice %165 {offsets = [0, 384], sizes = [16, 128], strides = [1, 1]} : vector<16x512xf32> to vector<16x128xf32>
    %181 = arith.negf %180 : vector<16x128xf32>
    %182 = math.exp %181 : vector<16x128xf32>
    %cst_57 = arith.constant 1.000000e+00 : f32
    %183 = vector.broadcast %cst_57 : f32 to vector<16x128xf32>
    %184 = arith.addf %183, %182 : vector<16x128xf32>
    %185 = arith.divf %183, %184 : vector<16x128xf32>
    %186 = arith.mulf %177, %152 : vector<16x128xf32>
    %187 = arith.mulf %171, %179 : vector<16x128xf32>
    %188 = arith.addf %186, %187 : vector<16x128xf32>
    %189 = math.tanh %188 : vector<16x128xf32>
    %190 = arith.mulf %185, %189 : vector<16x128xf32>
    %191 = arith.truncf %190 : vector<16x128xf32> to vector<16x128xbf16>
    %192 = arith.index_cast %159 : i32 to index
    %c0_58 = arith.constant 0 : index
    %193 = vector.load %arg12[%192, %c0_58] : memref<128x128xbf16, #tpu.memory_space<vmem>>, vector<16x128xbf16>
    tpu.vector_store %arg12[%192, %c0_58], %191 {strides = array<i32>} : memref<128x128xbf16, #tpu.memory_space<vmem>>, vector<16x128xbf16>,
    %c5_i32 = arith.constant 5 : i32
    %c16_i32_59 = arith.constant 16 : i32
    %194 = arith.muli %c5_i32, %c16_i32_59 : i32
    %195 = tpu.assume_multiple %194, 16 : i32
    %196 = arith.index_cast %195 : i32 to index
    %c0_60 = arith.constant 0 : index
    %197 = vector.load %arg11[%196, %c0_60] : memref<128x512xf32, #tpu.memory_space<vmem>>, vector<16x512xf32>
    %198 = arith.truncf %190 : vector<16x128xf32> to vector<16x128xbf16>
    %c0_61 = arith.constant 0 : index
    %c0_62 = arith.constant 0 : index
    %199 = vector.load %arg3[%c0_61, %c0_62] : memref<128x512xbf16, #tpu.memory_space<vmem>>, vector<128x512xbf16>
    %cst_63 = arith.constant dense<0.000000e+00> : vector<16x512xf32>
    %200 = tpu.matmul %198, %199, %cst_63 {dimension_numbers = #tpu.dot_dimension_numbers<[1], [0], [0], [1], [0, 0, 1, 1], [], []>} : vector<16x128xbf16>, vector<128x512xbf16>, vector<16x512xf32> -> vector<16x512xf32>
    %201 = arith.addf %197, %200 : vector<16x512xf32>
    %202 = vector.extract_strided_slice %201 {offsets = [0, 0], sizes = [16, 128], strides = [1, 1]} : vector<16x512xf32> to vector<16x128xf32>
    %203 = arith.negf %202 : vector<16x128xf32>
    %204 = math.exp %203 : vector<16x128xf32>
    %cst_64 = arith.constant 1.000000e+00 : f32
    %205 = vector.broadcast %cst_64 : f32 to vector<16x128xf32>
    %206 = arith.addf %205, %204 : vector<16x128xf32>
    %207 = arith.divf %205, %206 : vector<16x128xf32>
    %208 = vector.extract_strided_slice %201 {offsets = [0, 128], sizes = [16, 128], strides = [1, 1]} : vector<16x512xf32> to vector<16x128xf32>
    %209 = arith.negf %208 : vector<16x128xf32>
    %210 = math.exp %209 : vector<16x128xf32>
    %cst_65 = arith.constant 1.000000e+00 : f32
    %211 = vector.broadcast %cst_65 : f32 to vector<16x128xf32>
    %212 = arith.addf %211, %210 : vector<16x128xf32>
    %213 = arith.divf %211, %212 : vector<16x128xf32>
    %214 = vector.extract_strided_slice %201 {offsets = [0, 256], sizes = [16, 128], strides = [1, 1]} : vector<16x512xf32> to vector<16x128xf32>
    %215 = math.tanh %214 : vector<16x128xf32>
    %216 = vector.extract_strided_slice %201 {offsets = [0, 384], sizes = [16, 128], strides = [1, 1]} : vector<16x512xf32> to vector<16x128xf32>
    %217 = arith.negf %216 : vector<16x128xf32>
    %218 = math.exp %217 : vector<16x128xf32>
    %cst_66 = arith.constant 1.000000e+00 : f32
    %219 = vector.broadcast %cst_66 : f32 to vector<16x128xf32>
    %220 = arith.addf %219, %218 : vector<16x128xf32>
    %221 = arith.divf %219, %220 : vector<16x128xf32>
    %222 = arith.mulf %213, %188 : vector<16x128xf32>
    %223 = arith.mulf %207, %215 : vector<16x128xf32>
    %224 = arith.addf %222, %223 : vector<16x128xf32>
    %225 = math.tanh %224 : vector<16x128xf32>
    %226 = arith.mulf %221, %225 : vector<16x128xf32>
    %227 = arith.truncf %226 : vector<16x128xf32> to vector<16x128xbf16>
    %228 = arith.index_cast %195 : i32 to index
    %c0_67 = arith.constant 0 : index
    %229 = vector.load %arg12[%228, %c0_67] : memref<128x128xbf16, #tpu.memory_space<vmem>>, vector<16x128xbf16>
    tpu.vector_store %arg12[%228, %c0_67], %227 {strides = array<i32>} : memref<128x128xbf16, #tpu.memory_space<vmem>>, vector<16x128xbf16>,
    %c6_i32 = arith.constant 6 : i32
    %c16_i32_68 = arith.constant 16 : i32
    %230 = arith.muli %c6_i32, %c16_i32_68 : i32
    %231 = tpu.assume_multiple %230, 16 : i32
    %232 = arith.index_cast %231 : i32 to index
    %c0_69 = arith.constant 0 : index
    %233 = vector.load %arg11[%232, %c0_69] : memref<128x512xf32, #tpu.memory_space<vmem>>, vector<16x512xf32>
    %234 = arith.truncf %226 : vector<16x128xf32> to vector<16x128xbf16>
    %c0_70 = arith.constant 0 : index
    %c0_71 = arith.constant 0 : index
    %235 = vector.load %arg3[%c0_70, %c0_71] : memref<128x512xbf16, #tpu.memory_space<vmem>>, vector<128x512xbf16>
    %cst_72 = arith.constant dense<0.000000e+00> : vector<16x512xf32>
    %236 = tpu.matmul %234, %235, %cst_72 {dimension_numbers = #tpu.dot_dimension_numbers<[1], [0], [0], [1], [0, 0, 1, 1], [], []>} : vector<16x128xbf16>, vector<128x512xbf16>, vector<16x512xf32> -> vector<16x512xf32>
    %237 = arith.addf %233, %236 : vector<16x512xf32>
    %238 = vector.extract_strided_slice %237 {offsets = [0, 0], sizes = [16, 128], strides = [1, 1]} : vector<16x512xf32> to vector<16x128xf32>
    %239 = arith.negf %238 : vector<16x128xf32>
    %240 = math.exp %239 : vector<16x128xf32>
    %cst_73 = arith.constant 1.000000e+00 : f32
    %241 = vector.broadcast %cst_73 : f32 to vector<16x128xf32>
    %242 = arith.addf %241, %240 : vector<16x128xf32>
    %243 = arith.divf %241, %242 : vector<16x128xf32>
    %244 = vector.extract_strided_slice %237 {offsets = [0, 128], sizes = [16, 128], strides = [1, 1]} : vector<16x512xf32> to vector<16x128xf32>
    %245 = arith.negf %244 : vector<16x128xf32>
    %246 = math.exp %245 : vector<16x128xf32>
    %cst_74 = arith.constant 1.000000e+00 : f32
    %247 = vector.broadcast %cst_74 : f32 to vector<16x128xf32>
    %248 = arith.addf %247, %246 : vector<16x128xf32>
    %249 = arith.divf %247, %248 : vector<16x128xf32>
    %250 = vector.extract_strided_slice %237 {offsets = [0, 256], sizes = [16, 128], strides = [1, 1]} : vector<16x512xf32> to vector<16x128xf32>
    %251 = math.tanh %250 : vector<16x128xf32>
    %252 = vector.extract_strided_slice %237 {offsets = [0, 384], sizes = [16, 128], strides = [1, 1]} : vector<16x512xf32> to vector<16x128xf32>
    %253 = arith.negf %252 : vector<16x128xf32>
    %254 = math.exp %253 : vector<16x128xf32>
    %cst_75 = arith.constant 1.000000e+00 : f32
    %255 = vector.broadcast %cst_75 : f32 to vector<16x128xf32>
    %256 = arith.addf %255, %254 : vector<16x128xf32>
    %257 = arith.divf %255, %256 : vector<16x128xf32>
    %258 = arith.mulf %249, %224 : vector<16x128xf32>
    %259 = arith.mulf %243, %251 : vector<16x128xf32>
    %260 = arith.addf %258, %259 : vector<16x128xf32>
    %261 = math.tanh %260 : vector<16x128xf32>
    %262 = arith.mulf %257, %261 : vector<16x128xf32>
    %263 = arith.truncf %262 : vector<16x128xf32> to vector<16x128xbf16>
    %264 = arith.index_cast %231 : i32 to index
    %c0_76 = arith.constant 0 : index
    %265 = vector.load %arg12[%264, %c0_76] : memref<128x128xbf16, #tpu.memory_space<vmem>>, vector<16x128xbf16>
    tpu.vector_store %arg12[%264, %c0_76], %263 {strides = array<i32>} : memref<128x128xbf16, #tpu.memory_space<vmem>>, vector<16x128xbf16>,
    %c7_i32 = arith.constant 7 : i32
    %c16_i32_77 = arith.constant 16 : i32
    %266 = arith.muli %c7_i32, %c16_i32_77 : i32
    %267 = tpu.assume_multiple %266, 16 : i32
    %268 = arith.index_cast %267 : i32 to index
    %c0_78 = arith.constant 0 : index
    %269 = vector.load %arg11[%268, %c0_78] : memref<128x512xf32, #tpu.memory_space<vmem>>, vector<16x512xf32>
    %270 = arith.truncf %262 : vector<16x128xf32> to vector<16x128xbf16>
    %c0_79 = arith.constant 0 : index
    %c0_80 = arith.constant 0 : index
    %271 = vector.load %arg3[%c0_79, %c0_80] : memref<128x512xbf16, #tpu.memory_space<vmem>>, vector<128x512xbf16>
    %cst_81 = arith.constant dense<0.000000e+00> : vector<16x512xf32>
    %272 = tpu.matmul %270, %271, %cst_81 {dimension_numbers = #tpu.dot_dimension_numbers<[1], [0], [0], [1], [0, 0, 1, 1], [], []>} : vector<16x128xbf16>, vector<128x512xbf16>, vector<16x512xf32> -> vector<16x512xf32>
    %273 = arith.addf %269, %272 : vector<16x512xf32>
    %274 = vector.extract_strided_slice %273 {offsets = [0, 0], sizes = [16, 128], strides = [1, 1]} : vector<16x512xf32> to vector<16x128xf32>
    %275 = arith.negf %274 : vector<16x128xf32>
    %276 = math.exp %275 : vector<16x128xf32>
    %cst_82 = arith.constant 1.000000e+00 : f32
    %277 = vector.broadcast %cst_82 : f32 to vector<16x128xf32>
    %278 = arith.addf %277, %276 : vector<16x128xf32>
    %279 = arith.divf %277, %278 : vector<16x128xf32>
    %280 = vector.extract_strided_slice %273 {offsets = [0, 128], sizes = [16, 128], strides = [1, 1]} : vector<16x512xf32> to vector<16x128xf32>
    %281 = arith.negf %280 : vector<16x128xf32>
    %282 = math.exp %281 : vector<16x128xf32>
    %cst_83 = arith.constant 1.000000e+00 : f32
    %283 = vector.broadcast %cst_83 : f32 to vector<16x128xf32>
    %284 = arith.addf %283, %282 : vector<16x128xf32>
    %285 = arith.divf %283, %284 : vector<16x128xf32>
    %286 = vector.extract_strided_slice %273 {offsets = [0, 256], sizes = [16, 128], strides = [1, 1]} : vector<16x512xf32> to vector<16x128xf32>
    %287 = math.tanh %286 : vector<16x128xf32>
    %288 = vector.extract_strided_slice %273 {offsets = [0, 384], sizes = [16, 128], strides = [1, 1]} : vector<16x512xf32> to vector<16x128xf32>
    %289 = arith.negf %288 : vector<16x128xf32>
    %290 = math.exp %289 : vector<16x128xf32>
    %cst_84 = arith.constant 1.000000e+00 : f32
    %291 = vector.broadcast %cst_84 : f32 to vector<16x128xf32>
    %292 = arith.addf %291, %290 : vector<16x128xf32>
    %293 = arith.divf %291, %292 : vector<16x128xf32>
    %294 = arith.mulf %285, %260 : vector<16x128xf32>
    %295 = arith.mulf %279, %287 : vector<16x128xf32>
    %296 = arith.addf %294, %295 : vector<16x128xf32>
    %297 = math.tanh %296 : vector<16x128xf32>
    %298 = arith.mulf %293, %297 : vector<16x128xf32>
    %299 = arith.truncf %298 : vector<16x128xf32> to vector<16x128xbf16>
    %300 = arith.index_cast %267 : i32 to index
    %c0_85 = arith.constant 0 : index
    %301 = vector.load %arg12[%300, %c0_85] : memref<128x128xbf16, #tpu.memory_space<vmem>>, vector<16x128xbf16>
    tpu.vector_store %arg12[%300, %c0_85], %299 {strides = array<i32>} : memref<128x128xbf16, #tpu.memory_space<vmem>>, vector<16x128xbf16>,
    %c8_i32 = arith.constant 8 : i32
    %c0_86 = arith.constant 0 : index
    %c0_87 = arith.constant 0 : index
    %c0_88 = arith.constant 0 : index
    %302 = vector.load %arg9[%c0_86, %c0_87, %c0_88] : memref<2x16x128xf32, #tpu.memory_space<vmem>>, vector<1x16x128xf32>
    %303 = vector.shape_cast %302 : vector<1x16x128xf32> to vector<16x128xf32>
    %304 = vector.shape_cast %298 : vector<16x128xf32> to vector<1x16x128xf32>
    tpu.vector_store %arg9[%c0_86, %c0_87, %c0_88], %304 {strides = array<i32>} : memref<2x16x128xf32, #tpu.memory_space<vmem>>, vector<1x16x128xf32>,
    %c0_89 = arith.constant 0 : index
    %c0_90 = arith.constant 0 : index
    %c0_91 = arith.constant 0 : index
    %305 = vector.load %arg10[%c0_89, %c0_90, %c0_91] : memref<2x16x128xf32, #tpu.memory_space<vmem>>, vector<1x16x128xf32>
    %306 = vector.shape_cast %305 : vector<1x16x128xf32> to vector<16x128xf32>
    %307 = vector.shape_cast %296 : vector<16x128xf32> to vector<1x16x128xf32>
    tpu.vector_store %arg10[%c0_89, %c0_90, %c0_91], %307 {strides = array<i32>} : memref<2x16x128xf32, #tpu.memory_space<vmem>>, vector<1x16x128xf32>,
    %c0_92 = arith.constant 0 : index
    %c0_93 = arith.constant 0 : index
    %308 = vector.load %arg12[%c0_92, %c0_93] : memref<128x128xbf16, #tpu.memory_space<vmem>>, vector<128x128xbf16>
    %c0_94 = arith.constant 0 : index
    %c0_95 = arith.constant 0 : index
    %309 = vector.load %arg5[%c0_94, %c0_95] : memref<128x512xbf16, #tpu.memory_space<vmem>>, vector<128x512xbf16>
    %cst_96 = arith.constant dense<0.000000e+00> : vector<128x512xf32>
    %310 = tpu.matmul %308, %309, %cst_96 {dimension_numbers = #tpu.dot_dimension_numbers<[1], [0], [0], [1], [0, 0, 1, 1], [], []>} : vector<128x128xbf16>, vector<128x512xbf16>, vector<128x512xf32> -> vector<128x512xf32>
    %c0_97 = arith.constant 0 : index
    %c0_98 = arith.constant 0 : index
    %311 = vector.load %arg7[%c0_97, %c0_98] : memref<1x512xf32, #tpu.memory_space<vmem>>, vector<1x512xf32>
    %312 = vector.broadcast %311 : vector<1x512xf32> to vector<128x512xf32>
    %313 = arith.addf %310, %312 : vector<128x512xf32>
    %c0_99 = arith.constant 0 : index
    %c0_100 = arith.constant 0 : index
    %314 = vector.load %arg11[%c0_99, %c0_100] : memref<128x512xf32, #tpu.memory_space<vmem>>, vector<128x512xf32>
    tpu.vector_store %arg11[%c0_99, %c0_100], %313 {strides = array<i32>} : memref<128x512xf32, #tpu.memory_space<vmem>>, vector<128x512xf32>,
    %c1 = arith.constant 1 : index
    %c0_101 = arith.constant 0 : index
    %c0_102 = arith.constant 0 : index
    %315 = vector.load %arg9[%c1, %c0_101, %c0_102] : memref<2x16x128xf32, #tpu.memory_space<vmem>>, vector<1x16x128xf32>
    %316 = vector.shape_cast %315 : vector<1x16x128xf32> to vector<16x128xf32>
    %c1_103 = arith.constant 1 : index
    %c0_104 = arith.constant 0 : index
    %c0_105 = arith.constant 0 : index
    %317 = vector.load %arg10[%c1_103, %c0_104, %c0_105] : memref<2x16x128xf32, #tpu.memory_space<vmem>>, vector<1x16x128xf32>
    %318 = vector.shape_cast %317 : vector<1x16x128xf32> to vector<16x128xf32>
    %c0_i32_106 = arith.constant 0 : i32
    %c16_i32_107 = arith.constant 16 : i32
    %319 = arith.muli %c0_i32_106, %c16_i32_107 : i32
    %320 = tpu.assume_multiple %319, 16 : i32
    %321 = arith.index_cast %320 : i32 to index
    %c0_108 = arith.constant 0 : index
    %322 = vector.load %arg11[%321, %c0_108] : memref<128x512xf32, #tpu.memory_space<vmem>>, vector<16x512xf32>
    %323 = arith.truncf %316 : vector<16x128xf32> to vector<16x128xbf16>
    %c0_109 = arith.constant 0 : index
    %c0_110 = arith.constant 0 : index
    %324 = vector.load %arg6[%c0_109, %c0_110] : memref<128x512xbf16, #tpu.memory_space<vmem>>, vector<128x512xbf16>
    %cst_111 = arith.constant dense<0.000000e+00> : vector<16x512xf32>
    %325 = tpu.matmul %323, %324, %cst_111 {dimension_numbers = #tpu.dot_dimension_numbers<[1], [0], [0], [1], [0, 0, 1, 1], [], []>} : vector<16x128xbf16>, vector<128x512xbf16>, vector<16x512xf32> -> vector<16x512xf32>
    %326 = arith.addf %322, %325 : vector<16x512xf32>
    %327 = vector.extract_strided_slice %326 {offsets = [0, 0], sizes = [16, 128], strides = [1, 1]} : vector<16x512xf32> to vector<16x128xf32>
    %328 = arith.negf %327 : vector<16x128xf32>
    %329 = math.exp %328 : vector<16x128xf32>
    %cst_112 = arith.constant 1.000000e+00 : f32
    %330 = vector.broadcast %cst_112 : f32 to vector<16x128xf32>
    %331 = arith.addf %330, %329 : vector<16x128xf32>
    %332 = arith.divf %330, %331 : vector<16x128xf32>
    %333 = vector.extract_strided_slice %326 {offsets = [0, 128], sizes = [16, 128], strides = [1, 1]} : vector<16x512xf32> to vector<16x128xf32>
    %334 = arith.negf %333 : vector<16x128xf32>
    %335 = math.exp %334 : vector<16x128xf32>
    %cst_113 = arith.constant 1.000000e+00 : f32
    %336 = vector.broadcast %cst_113 : f32 to vector<16x128xf32>
    %337 = arith.addf %336, %335 : vector<16x128xf32>
    %338 = arith.divf %336, %337 : vector<16x128xf32>
    %339 = vector.extract_strided_slice %326 {offsets = [0, 256], sizes = [16, 128], strides = [1, 1]} : vector<16x512xf32> to vector<16x128xf32>
    %340 = math.tanh %339 : vector<16x128xf32>
    %341 = vector.extract_strided_slice %326 {offsets = [0, 384], sizes = [16, 128], strides = [1, 1]} : vector<16x512xf32> to vector<16x128xf32>
    %342 = arith.negf %341 : vector<16x128xf32>
    %343 = math.exp %342 : vector<16x128xf32>
    %cst_114 = arith.constant 1.000000e+00 : f32
    %344 = vector.broadcast %cst_114 : f32 to vector<16x128xf32>
    %345 = arith.addf %344, %343 : vector<16x128xf32>
    %346 = arith.divf %344, %345 : vector<16x128xf32>
    %347 = arith.mulf %338, %318 : vector<16x128xf32>
    %348 = arith.mulf %332, %340 : vector<16x128xf32>
    %349 = arith.addf %347, %348 : vector<16x128xf32>
    %350 = math.tanh %349 : vector<16x128xf32>
    %351 = arith.mulf %346, %350 : vector<16x128xf32>
    %352 = arith.index_cast %320 : i32 to index
    %c0_115 = arith.constant 0 : index
    %353 = vector.load %arg8[%352, %c0_115] : memref<128x128xf32, #tpu.memory_space<vmem>>, vector<16x128xf32>
    tpu.vector_store %arg8[%352, %c0_115], %351 {strides = array<i32>} : memref<128x128xf32, #tpu.memory_space<vmem>>, vector<16x128xf32>,
    %c1_i32_116 = arith.constant 1 : i32
    %c16_i32_117 = arith.constant 16 : i32
    %354 = arith.muli %c1_i32_116, %c16_i32_117 : i32
    %355 = tpu.assume_multiple %354, 16 : i32
    %356 = arith.index_cast %355 : i32 to index
    %c0_118 = arith.constant 0 : index
    %357 = vector.load %arg11[%356, %c0_118] : memref<128x512xf32, #tpu.memory_space<vmem>>, vector<16x512xf32>
    %358 = arith.truncf %351 : vector<16x128xf32> to vector<16x128xbf16>
    %c0_119 = arith.constant 0 : index
    %c0_120 = arith.constant 0 : index
    %359 = vector.load %arg6[%c0_119, %c0_120] : memref<128x512xbf16, #tpu.memory_space<vmem>>, vector<128x512xbf16>
    %cst_121 = arith.constant dense<0.000000e+00> : vector<16x512xf32>
    %360 = tpu.matmul %358, %359, %cst_121 {dimension_numbers = #tpu.dot_dimension_numbers<[1], [0], [0], [1], [0, 0, 1, 1], [], []>} : vector<16x128xbf16>, vector<128x512xbf16>, vector<16x512xf32> -> vector<16x512xf32>
    %361 = arith.addf %357, %360 : vector<16x512xf32>
    %362 = vector.extract_strided_slice %361 {offsets = [0, 0], sizes = [16, 128], strides = [1, 1]} : vector<16x512xf32> to vector<16x128xf32>
    %363 = arith.negf %362 : vector<16x128xf32>
    %364 = math.exp %363 : vector<16x128xf32>
    %cst_122 = arith.constant 1.000000e+00 : f32
    %365 = vector.broadcast %cst_122 : f32 to vector<16x128xf32>
    %366 = arith.addf %365, %364 : vector<16x128xf32>
    %367 = arith.divf %365, %366 : vector<16x128xf32>
    %368 = vector.extract_strided_slice %361 {offsets = [0, 128], sizes = [16, 128], strides = [1, 1]} : vector<16x512xf32> to vector<16x128xf32>
    %369 = arith.negf %368 : vector<16x128xf32>
    %370 = math.exp %369 : vector<16x128xf32>
    %cst_123 = arith.constant 1.000000e+00 : f32
    %371 = vector.broadcast %cst_123 : f32 to vector<16x128xf32>
    %372 = arith.addf %371, %370 : vector<16x128xf32>
    %373 = arith.divf %371, %372 : vector<16x128xf32>
    %374 = vector.extract_strided_slice %361 {offsets = [0, 256], sizes = [16, 128], strides = [1, 1]} : vector<16x512xf32> to vector<16x128xf32>
    %375 = math.tanh %374 : vector<16x128xf32>
    %376 = vector.extract_strided_slice %361 {offsets = [0, 384], sizes = [16, 128], strides = [1, 1]} : vector<16x512xf32> to vector<16x128xf32>
    %377 = arith.negf %376 : vector<16x128xf32>
    %378 = math.exp %377 : vector<16x128xf32>
    %cst_124 = arith.constant 1.000000e+00 : f32
    %379 = vector.broadcast %cst_124 : f32 to vector<16x128xf32>
    %380 = arith.addf %379, %378 : vector<16x128xf32>
    %381 = arith.divf %379, %380 : vector<16x128xf32>
    %382 = arith.mulf %373, %349 : vector<16x128xf32>
    %383 = arith.mulf %367, %375 : vector<16x128xf32>
    %384 = arith.addf %382, %383 : vector<16x128xf32>
    %385 = math.tanh %384 : vector<16x128xf32>
    %386 = arith.mulf %381, %385 : vector<16x128xf32>
    %387 = arith.index_cast %355 : i32 to index
    %c0_125 = arith.constant 0 : index
    %388 = vector.load %arg8[%387, %c0_125] : memref<128x128xf32, #tpu.memory_space<vmem>>, vector<16x128xf32>
    tpu.vector_store %arg8[%387, %c0_125], %386 {strides = array<i32>} : memref<128x128xf32, #tpu.memory_space<vmem>>, vector<16x128xf32>,
    %c2_i32_126 = arith.constant 2 : i32
    %c16_i32_127 = arith.constant 16 : i32
    %389 = arith.muli %c2_i32_126, %c16_i32_127 : i32
    %390 = tpu.assume_multiple %389, 16 : i32
    %391 = arith.index_cast %390 : i32 to index
    %c0_128 = arith.constant 0 : index
    %392 = vector.load %arg11[%391, %c0_128] : memref<128x512xf32, #tpu.memory_space<vmem>>, vector<16x512xf32>
    %393 = arith.truncf %386 : vector<16x128xf32> to vector<16x128xbf16>
    %c0_129 = arith.constant 0 : index
    %c0_130 = arith.constant 0 : index
    %394 = vector.load %arg6[%c0_129, %c0_130] : memref<128x512xbf16, #tpu.memory_space<vmem>>, vector<128x512xbf16>
    %cst_131 = arith.constant dense<0.000000e+00> : vector<16x512xf32>
    %395 = tpu.matmul %393, %394, %cst_131 {dimension_numbers = #tpu.dot_dimension_numbers<[1], [0], [0], [1], [0, 0, 1, 1], [], []>} : vector<16x128xbf16>, vector<128x512xbf16>, vector<16x512xf32> -> vector<16x512xf32>
    %396 = arith.addf %392, %395 : vector<16x512xf32>
    %397 = vector.extract_strided_slice %396 {offsets = [0, 0], sizes = [16, 128], strides = [1, 1]} : vector<16x512xf32> to vector<16x128xf32>
    %398 = arith.negf %397 : vector<16x128xf32>
    %399 = math.exp %398 : vector<16x128xf32>
    %cst_132 = arith.constant 1.000000e+00 : f32
    %400 = vector.broadcast %cst_132 : f32 to vector<16x128xf32>
    %401 = arith.addf %400, %399 : vector<16x128xf32>
    %402 = arith.divf %400, %401 : vector<16x128xf32>
    %403 = vector.extract_strided_slice %396 {offsets = [0, 128], sizes = [16, 128], strides = [1, 1]} : vector<16x512xf32> to vector<16x128xf32>
    %404 = arith.negf %403 : vector<16x128xf32>
    %405 = math.exp %404 : vector<16x128xf32>
    %cst_133 = arith.constant 1.000000e+00 : f32
    %406 = vector.broadcast %cst_133 : f32 to vector<16x128xf32>
    %407 = arith.addf %406, %405 : vector<16x128xf32>
    %408 = arith.divf %406, %407 : vector<16x128xf32>
    %409 = vector.extract_strided_slice %396 {offsets = [0, 256], sizes = [16, 128], strides = [1, 1]} : vector<16x512xf32> to vector<16x128xf32>
    %410 = math.tanh %409 : vector<16x128xf32>
    %411 = vector.extract_strided_slice %396 {offsets = [0, 384], sizes = [16, 128], strides = [1, 1]} : vector<16x512xf32> to vector<16x128xf32>
    %412 = arith.negf %411 : vector<16x128xf32>
    %413 = math.exp %412 : vector<16x128xf32>
    %cst_134 = arith.constant 1.000000e+00 : f32
    %414 = vector.broadcast %cst_134 : f32 to vector<16x128xf32>
    %415 = arith.addf %414, %413 : vector<16x128xf32>
    %416 = arith.divf %414, %415 : vector<16x128xf32>
    %417 = arith.mulf %408, %384 : vector<16x128xf32>
    %418 = arith.mulf %402, %410 : vector<16x128xf32>
    %419 = arith.addf %417, %418 : vector<16x128xf32>
    %420 = math.tanh %419 : vector<16x128xf32>
    %421 = arith.mulf %416, %420 : vector<16x128xf32>
    %422 = arith.index_cast %390 : i32 to index
    %c0_135 = arith.constant 0 : index
    %423 = vector.load %arg8[%422, %c0_135] : memref<128x128xf32, #tpu.memory_space<vmem>>, vector<16x128xf32>
    tpu.vector_store %arg8[%422, %c0_135], %421 {strides = array<i32>} : memref<128x128xf32, #tpu.memory_space<vmem>>, vector<16x128xf32>,
    %c3_i32_136 = arith.constant 3 : i32
    %c16_i32_137 = arith.constant 16 : i32
    %424 = arith.muli %c3_i32_136, %c16_i32_137 : i32
    %425 = tpu.assume_multiple %424, 16 : i32
    %426 = arith.index_cast %425 : i32 to index
    %c0_138 = arith.constant 0 : index
    %427 = vector.load %arg11[%426, %c0_138] : memref<128x512xf32, #tpu.memory_space<vmem>>, vector<16x512xf32>
    %428 = arith.truncf %421 : vector<16x128xf32> to vector<16x128xbf16>
    %c0_139 = arith.constant 0 : index
    %c0_140 = arith.constant 0 : index
    %429 = vector.load %arg6[%c0_139, %c0_140] : memref<128x512xbf16, #tpu.memory_space<vmem>>, vector<128x512xbf16>
    %cst_141 = arith.constant dense<0.000000e+00> : vector<16x512xf32>
    %430 = tpu.matmul %428, %429, %cst_141 {dimension_numbers = #tpu.dot_dimension_numbers<[1], [0], [0], [1], [0, 0, 1, 1], [], []>} : vector<16x128xbf16>, vector<128x512xbf16>, vector<16x512xf32> -> vector<16x512xf32>
    %431 = arith.addf %427, %430 : vector<16x512xf32>
    %432 = vector.extract_strided_slice %431 {offsets = [0, 0], sizes = [16, 128], strides = [1, 1]} : vector<16x512xf32> to vector<16x128xf32>
    %433 = arith.negf %432 : vector<16x128xf32>
    %434 = math.exp %433 : vector<16x128xf32>
    %cst_142 = arith.constant 1.000000e+00 : f32
    %435 = vector.broadcast %cst_142 : f32 to vector<16x128xf32>
    %436 = arith.addf %435, %434 : vector<16x128xf32>
    %437 = arith.divf %435, %436 : vector<16x128xf32>
    %438 = vector.extract_strided_slice %431 {offsets = [0, 128], sizes = [16, 128], strides = [1, 1]} : vector<16x512xf32> to vector<16x128xf32>
    %439 = arith.negf %438 : vector<16x128xf32>
    %440 = math.exp %439 : vector<16x128xf32>
    %cst_143 = arith.constant 1.000000e+00 : f32
    %441 = vector.broadcast %cst_143 : f32 to vector<16x128xf32>
    %442 = arith.addf %441, %440 : vector<16x128xf32>
    %443 = arith.divf %441, %442 : vector<16x128xf32>
    %444 = vector.extract_strided_slice %431 {offsets = [0, 256], sizes = [16, 128], strides = [1, 1]} : vector<16x512xf32> to vector<16x128xf32>
    %445 = math.tanh %444 : vector<16x128xf32>
    %446 = vector.extract_strided_slice %431 {offsets = [0, 384], sizes = [16, 128], strides = [1, 1]} : vector<16x512xf32> to vector<16x128xf32>
    %447 = arith.negf %446 : vector<16x128xf32>
    %448 = math.exp %447 : vector<16x128xf32>
    %cst_144 = arith.constant 1.000000e+00 : f32
    %449 = vector.broadcast %cst_144 : f32 to vector<16x128xf32>
    %450 = arith.addf %449, %448 : vector<16x128xf32>
    %451 = arith.divf %449, %450 : vector<16x128xf32>
    %452 = arith.mulf %443, %419 : vector<16x128xf32>
    %453 = arith.mulf %437, %445 : vector<16x128xf32>
    %454 = arith.addf %452, %453 : vector<16x128xf32>
    %455 = math.tanh %454 : vector<16x128xf32>
    %456 = arith.mulf %451, %455 : vector<16x128xf32>
    %457 = arith.index_cast %425 : i32 to index
    %c0_145 = arith.constant 0 : index
    %458 = vector.load %arg8[%457, %c0_145] : memref<128x128xf32, #tpu.memory_space<vmem>>, vector<16x128xf32>
    tpu.vector_store %arg8[%457, %c0_145], %456 {strides = array<i32>} : memref<128x128xf32, #tpu.memory_space<vmem>>, vector<16x128xf32>,
    %c4_i32_146 = arith.constant 4 : i32
    %c16_i32_147 = arith.constant 16 : i32
    %459 = arith.muli %c4_i32_146, %c16_i32_147 : i32
    %460 = tpu.assume_multiple %459, 16 : i32
    %461 = arith.index_cast %460 : i32 to index
    %c0_148 = arith.constant 0 : index
    %462 = vector.load %arg11[%461, %c0_148] : memref<128x512xf32, #tpu.memory_space<vmem>>, vector<16x512xf32>
    %463 = arith.truncf %456 : vector<16x128xf32> to vector<16x128xbf16>
    %c0_149 = arith.constant 0 : index
    %c0_150 = arith.constant 0 : index
    %464 = vector.load %arg6[%c0_149, %c0_150] : memref<128x512xbf16, #tpu.memory_space<vmem>>, vector<128x512xbf16>
    %cst_151 = arith.constant dense<0.000000e+00> : vector<16x512xf32>
    %465 = tpu.matmul %463, %464, %cst_151 {dimension_numbers = #tpu.dot_dimension_numbers<[1], [0], [0], [1], [0, 0, 1, 1], [], []>} : vector<16x128xbf16>, vector<128x512xbf16>, vector<16x512xf32> -> vector<16x512xf32>
    %466 = arith.addf %462, %465 : vector<16x512xf32>
    %467 = vector.extract_strided_slice %466 {offsets = [0, 0], sizes = [16, 128], strides = [1, 1]} : vector<16x512xf32> to vector<16x128xf32>
    %468 = arith.negf %467 : vector<16x128xf32>
    %469 = math.exp %468 : vector<16x128xf32>
    %cst_152 = arith.constant 1.000000e+00 : f32
    %470 = vector.broadcast %cst_152 : f32 to vector<16x128xf32>
    %471 = arith.addf %470, %469 : vector<16x128xf32>
    %472 = arith.divf %470, %471 : vector<16x128xf32>
    %473 = vector.extract_strided_slice %466 {offsets = [0, 128], sizes = [16, 128], strides = [1, 1]} : vector<16x512xf32> to vector<16x128xf32>
    %474 = arith.negf %473 : vector<16x128xf32>
    %475 = math.exp %474 : vector<16x128xf32>
    %cst_153 = arith.constant 1.000000e+00 : f32
    %476 = vector.broadcast %cst_153 : f32 to vector<16x128xf32>
    %477 = arith.addf %476, %475 : vector<16x128xf32>
    %478 = arith.divf %476, %477 : vector<16x128xf32>
    %479 = vector.extract_strided_slice %466 {offsets = [0, 256], sizes = [16, 128], strides = [1, 1]} : vector<16x512xf32> to vector<16x128xf32>
    %480 = math.tanh %479 : vector<16x128xf32>
    %481 = vector.extract_strided_slice %466 {offsets = [0, 384], sizes = [16, 128], strides = [1, 1]} : vector<16x512xf32> to vector<16x128xf32>
    %482 = arith.negf %481 : vector<16x128xf32>
    %483 = math.exp %482 : vector<16x128xf32>
    %cst_154 = arith.constant 1.000000e+00 : f32
    %484 = vector.broadcast %cst_154 : f32 to vector<16x128xf32>
    %485 = arith.addf %484, %483 : vector<16x128xf32>
    %486 = arith.divf %484, %485 : vector<16x128xf32>
    %487 = arith.mulf %478, %454 : vector<16x128xf32>
    %488 = arith.mulf %472, %480 : vector<16x128xf32>
    %489 = arith.addf %487, %488 : vector<16x128xf32>
    %490 = math.tanh %489 : vector<16x128xf32>
    %491 = arith.mulf %486, %490 : vector<16x128xf32>
    %492 = arith.index_cast %460 : i32 to index
    %c0_155 = arith.constant 0 : index
    %493 = vector.load %arg8[%492, %c0_155] : memref<128x128xf32, #tpu.memory_space<vmem>>, vector<16x128xf32>
    tpu.vector_store %arg8[%492, %c0_155], %491 {strides = array<i32>} : memref<128x128xf32, #tpu.memory_space<vmem>>, vector<16x128xf32>,
    %c5_i32_156 = arith.constant 5 : i32
    %c16_i32_157 = arith.constant 16 : i32
    %494 = arith.muli %c5_i32_156, %c16_i32_157 : i32
    %495 = tpu.assume_multiple %494, 16 : i32
    %496 = arith.index_cast %495 : i32 to index
    %c0_158 = arith.constant 0 : index
    %497 = vector.load %arg11[%496, %c0_158] : memref<128x512xf32, #tpu.memory_space<vmem>>, vector<16x512xf32>
    %498 = arith.truncf %491 : vector<16x128xf32> to vector<16x128xbf16>
    %c0_159 = arith.constant 0 : index
    %c0_160 = arith.constant 0 : index
    %499 = vector.load %arg6[%c0_159, %c0_160] : memref<128x512xbf16, #tpu.memory_space<vmem>>, vector<128x512xbf16>
    %cst_161 = arith.constant dense<0.000000e+00> : vector<16x512xf32>
    %500 = tpu.matmul %498, %499, %cst_161 {dimension_numbers = #tpu.dot_dimension_numbers<[1], [0], [0], [1], [0, 0, 1, 1], [], []>} : vector<16x128xbf16>, vector<128x512xbf16>, vector<16x512xf32> -> vector<16x512xf32>
    %501 = arith.addf %497, %500 : vector<16x512xf32>
    %502 = vector.extract_strided_slice %501 {offsets = [0, 0], sizes = [16, 128], strides = [1, 1]} : vector<16x512xf32> to vector<16x128xf32>
    %503 = arith.negf %502 : vector<16x128xf32>
    %504 = math.exp %503 : vector<16x128xf32>
    %cst_162 = arith.constant 1.000000e+00 : f32
    %505 = vector.broadcast %cst_162 : f32 to vector<16x128xf32>
    %506 = arith.addf %505, %504 : vector<16x128xf32>
    %507 = arith.divf %505, %506 : vector<16x128xf32>
    %508 = vector.extract_strided_slice %501 {offsets = [0, 128], sizes = [16, 128], strides = [1, 1]} : vector<16x512xf32> to vector<16x128xf32>
    %509 = arith.negf %508 : vector<16x128xf32>
    %510 = math.exp %509 : vector<16x128xf32>
    %cst_163 = arith.constant 1.000000e+00 : f32
    %511 = vector.broadcast %cst_163 : f32 to vector<16x128xf32>
    %512 = arith.addf %511, %510 : vector<16x128xf32>
    %513 = arith.divf %511, %512 : vector<16x128xf32>
    %514 = vector.extract_strided_slice %501 {offsets = [0, 256], sizes = [16, 128], strides = [1, 1]} : vector<16x512xf32> to vector<16x128xf32>
    %515 = math.tanh %514 : vector<16x128xf32>
    %516 = vector.extract_strided_slice %501 {offsets = [0, 384], sizes = [16, 128], strides = [1, 1]} : vector<16x512xf32> to vector<16x128xf32>
    %517 = arith.negf %516 : vector<16x128xf32>
    %518 = math.exp %517 : vector<16x128xf32>
    %cst_164 = arith.constant 1.000000e+00 : f32
    %519 = vector.broadcast %cst_164 : f32 to vector<16x128xf32>
    %520 = arith.addf %519, %518 : vector<16x128xf32>
    %521 = arith.divf %519, %520 : vector<16x128xf32>
    %522 = arith.mulf %513, %489 : vector<16x128xf32>
    %523 = arith.mulf %507, %515 : vector<16x128xf32>
    %524 = arith.addf %522, %523 : vector<16x128xf32>
    %525 = math.tanh %524 : vector<16x128xf32>
    %526 = arith.mulf %521, %525 : vector<16x128xf32>
    %527 = arith.index_cast %495 : i32 to index
    %c0_165 = arith.constant 0 : index
    %528 = vector.load %arg8[%527, %c0_165] : memref<128x128xf32, #tpu.memory_space<vmem>>, vector<16x128xf32>
    tpu.vector_store %arg8[%527, %c0_165], %526 {strides = array<i32>} : memref<128x128xf32, #tpu.memory_space<vmem>>, vector<16x128xf32>,
    %c6_i32_166 = arith.constant 6 : i32
    %c16_i32_167 = arith.constant 16 : i32
    %529 = arith.muli %c6_i32_166, %c16_i32_167 : i32
    %530 = tpu.assume_multiple %529, 16 : i32
    %531 = arith.index_cast %530 : i32 to index
    %c0_168 = arith.constant 0 : index
    %532 = vector.load %arg11[%531, %c0_168] : memref<128x512xf32, #tpu.memory_space<vmem>>, vector<16x512xf32>
    %533 = arith.truncf %526 : vector<16x128xf32> to vector<16x128xbf16>
    %c0_169 = arith.constant 0 : index
    %c0_170 = arith.constant 0 : index
    %534 = vector.load %arg6[%c0_169, %c0_170] : memref<128x512xbf16, #tpu.memory_space<vmem>>, vector<128x512xbf16>
    %cst_171 = arith.constant dense<0.000000e+00> : vector<16x512xf32>
    %535 = tpu.matmul %533, %534, %cst_171 {dimension_numbers = #tpu.dot_dimension_numbers<[1], [0], [0], [1], [0, 0, 1, 1], [], []>} : vector<16x128xbf16>, vector<128x512xbf16>, vector<16x512xf32> -> vector<16x512xf32>
    %536 = arith.addf %532, %535 : vector<16x512xf32>
    %537 = vector.extract_strided_slice %536 {offsets = [0, 0], sizes = [16, 128], strides = [1, 1]} : vector<16x512xf32> to vector<16x128xf32>
    %538 = arith.negf %537 : vector<16x128xf32>
    %539 = math.exp %538 : vector<16x128xf32>
    %cst_172 = arith.constant 1.000000e+00 : f32
    %540 = vector.broadcast %cst_172 : f32 to vector<16x128xf32>
    %541 = arith.addf %540, %539 : vector<16x128xf32>
    %542 = arith.divf %540, %541 : vector<16x128xf32>
    %543 = vector.extract_strided_slice %536 {offsets = [0, 128], sizes = [16, 128], strides = [1, 1]} : vector<16x512xf32> to vector<16x128xf32>
    %544 = arith.negf %543 : vector<16x128xf32>
    %545 = math.exp %544 : vector<16x128xf32>
    %cst_173 = arith.constant 1.000000e+00 : f32
    %546 = vector.broadcast %cst_173 : f32 to vector<16x128xf32>
    %547 = arith.addf %546, %545 : vector<16x128xf32>
    %548 = arith.divf %546, %547 : vector<16x128xf32>
    %549 = vector.extract_strided_slice %536 {offsets = [0, 256], sizes = [16, 128], strides = [1, 1]} : vector<16x512xf32> to vector<16x128xf32>
    %550 = math.tanh %549 : vector<16x128xf32>
    %551 = vector.extract_strided_slice %536 {offsets = [0, 384], sizes = [16, 128], strides = [1, 1]} : vector<16x512xf32> to vector<16x128xf32>
    %552 = arith.negf %551 : vector<16x128xf32>
    %553 = math.exp %552 : vector<16x128xf32>
    %cst_174 = arith.constant 1.000000e+00 : f32
    %554 = vector.broadcast %cst_174 : f32 to vector<16x128xf32>
    %555 = arith.addf %554, %553 : vector<16x128xf32>
    %556 = arith.divf %554, %555 : vector<16x128xf32>
    %557 = arith.mulf %548, %524 : vector<16x128xf32>
    %558 = arith.mulf %542, %550 : vector<16x128xf32>
    %559 = arith.addf %557, %558 : vector<16x128xf32>
    %560 = math.tanh %559 : vector<16x128xf32>
    %561 = arith.mulf %556, %560 : vector<16x128xf32>
    %562 = arith.index_cast %530 : i32 to index
    %c0_175 = arith.constant 0 : index
    %563 = vector.load %arg8[%562, %c0_175] : memref<128x128xf32, #tpu.memory_space<vmem>>, vector<16x128xf32>
    tpu.vector_store %arg8[%562, %c0_175], %561 {strides = array<i32>} : memref<128x128xf32, #tpu.memory_space<vmem>>, vector<16x128xf32>,
    %c7_i32_176 = arith.constant 7 : i32
    %c16_i32_177 = arith.constant 16 : i32
    %564 = arith.muli %c7_i32_176, %c16_i32_177 : i32
    %565 = tpu.assume_multiple %564, 16 : i32
    %566 = arith.index_cast %565 : i32 to index
    %c0_178 = arith.constant 0 : index
    %567 = vector.load %arg11[%566, %c0_178] : memref<128x512xf32, #tpu.memory_space<vmem>>, vector<16x512xf32>
    %568 = arith.truncf %561 : vector<16x128xf32> to vector<16x128xbf16>
    %c0_179 = arith.constant 0 : index
    %c0_180 = arith.constant 0 : index
    %569 = vector.load %arg6[%c0_179, %c0_180] : memref<128x512xbf16, #tpu.memory_space<vmem>>, vector<128x512xbf16>
    %cst_181 = arith.constant dense<0.000000e+00> : vector<16x512xf32>
    %570 = tpu.matmul %568, %569, %cst_181 {dimension_numbers = #tpu.dot_dimension_numbers<[1], [0], [0], [1], [0, 0, 1, 1], [], []>} : vector<16x128xbf16>, vector<128x512xbf16>, vector<16x512xf32> -> vector<16x512xf32>
    %571 = arith.addf %567, %570 : vector<16x512xf32>
    %572 = vector.extract_strided_slice %571 {offsets = [0, 0], sizes = [16, 128], strides = [1, 1]} : vector<16x512xf32> to vector<16x128xf32>
    %573 = arith.negf %572 : vector<16x128xf32>
    %574 = math.exp %573 : vector<16x128xf32>
    %cst_182 = arith.constant 1.000000e+00 : f32
    %575 = vector.broadcast %cst_182 : f32 to vector<16x128xf32>
    %576 = arith.addf %575, %574 : vector<16x128xf32>
    %577 = arith.divf %575, %576 : vector<16x128xf32>
    %578 = vector.extract_strided_slice %571 {offsets = [0, 128], sizes = [16, 128], strides = [1, 1]} : vector<16x512xf32> to vector<16x128xf32>
    %579 = arith.negf %578 : vector<16x128xf32>
    %580 = math.exp %579 : vector<16x128xf32>
    %cst_183 = arith.constant 1.000000e+00 : f32
    %581 = vector.broadcast %cst_183 : f32 to vector<16x128xf32>
    %582 = arith.addf %581, %580 : vector<16x128xf32>
    %583 = arith.divf %581, %582 : vector<16x128xf32>
    %584 = vector.extract_strided_slice %571 {offsets = [0, 256], sizes = [16, 128], strides = [1, 1]} : vector<16x512xf32> to vector<16x128xf32>
    %585 = math.tanh %584 : vector<16x128xf32>
    %586 = vector.extract_strided_slice %571 {offsets = [0, 384], sizes = [16, 128], strides = [1, 1]} : vector<16x512xf32> to vector<16x128xf32>
    %587 = arith.negf %586 : vector<16x128xf32>
    %588 = math.exp %587 : vector<16x128xf32>
    %cst_184 = arith.constant 1.000000e+00 : f32
    %589 = vector.broadcast %cst_184 : f32 to vector<16x128xf32>
    %590 = arith.addf %589, %588 : vector<16x128xf32>
    %591 = arith.divf %589, %590 : vector<16x128xf32>
    %592 = arith.mulf %583, %559 : vector<16x128xf32>
    %593 = arith.mulf %577, %585 : vector<16x128xf32>
    %594 = arith.addf %592, %593 : vector<16x128xf32>
    %595 = math.tanh %594 : vector<16x128xf32>
    %596 = arith.mulf %591, %595 : vector<16x128xf32>
    %597 = arith.index_cast %565 : i32 to index
    %c0_185 = arith.constant 0 : index
    %598 = vector.load %arg8[%597, %c0_185] : memref<128x128xf32, #tpu.memory_space<vmem>>, vector<16x128xf32>
    tpu.vector_store %arg8[%597, %c0_185], %596 {strides = array<i32>} : memref<128x128xf32, #tpu.memory_space<vmem>>, vector<16x128xf32>,
    %c8_i32_186 = arith.constant 8 : i32
    %c1_187 = arith.constant 1 : index
    %c0_188 = arith.constant 0 : index
    %c0_189 = arith.constant 0 : index
    %599 = vector.load %arg9[%c1_187, %c0_188, %c0_189] : memref<2x16x128xf32, #tpu.memory_space<vmem>>, vector<1x16x128xf32>
    %600 = vector.shape_cast %599 : vector<1x16x128xf32> to vector<16x128xf32>
    %601 = vector.shape_cast %596 : vector<16x128xf32> to vector<1x16x128xf32>
    tpu.vector_store %arg9[%c1_187, %c0_188, %c0_189], %601 {strides = array<i32>} : memref<2x16x128xf32, #tpu.memory_space<vmem>>, vector<1x16x128xf32>,
    %c1_190 = arith.constant 1 : index
    %c0_191 = arith.constant 0 : index
    %c0_192 = arith.constant 0 : index
    %602 = vector.load %arg10[%c1_190, %c0_191, %c0_192] : memref<2x16x128xf32, #tpu.memory_space<vmem>>, vector<1x16x128xf32>
    %603 = vector.shape_cast %602 : vector<1x16x128xf32> to vector<16x128xf32>
    %604 = vector.shape_cast %594 : vector<16x128xf32> to vector<1x16x128xf32>
    tpu.vector_store %arg10[%c1_190, %c0_191, %c0_192], %604 {strides = array<i32>} : memref<2x16x128xf32, #tpu.memory_space<vmem>>, vector<1x16x128xf32>,
    return
  }
  func.func @transform_0(%arg0: i32) -> (i32, i32) {
    %c0_i32 = arith.constant 0 : i32
    %c0_i32_0 = arith.constant 0 : i32
    return %arg0, %c0_i32 : i32, i32
  }
  func.func @transform_1(%arg0: i32) -> (i32, i32) {
    %c0_i32 = arith.constant 0 : i32
    %c0_i32_0 = arith.constant 0 : i32
    %c0_i32_1 = arith.constant 0 : i32
    return %c0_i32, %c0_i32_0 : i32, i32
  }
  func.func @transform_2(%arg0: i32) -> (i32, i32) {
    %c0_i32 = arith.constant 0 : i32
    %c0_i32_0 = arith.constant 0 : i32
    %c0_i32_1 = arith.constant 0 : i32
    return %c0_i32, %c0_i32_0 : i32, i32
  }
  func.func @transform_3(%arg0: i32) -> (i32, i32) {
    %c0_i32 = arith.constant 0 : i32
    %c0_i32_0 = arith.constant 0 : i32
    %c0_i32_1 = arith.constant 0 : i32
    return %c0_i32, %c0_i32_0 : i32, i32
  }
  func.func @transform_4(%arg0: i32) -> (i32, i32) {
    %c0_i32 = arith.constant 0 : i32
    %c0_i32_0 = arith.constant 0 : i32
    %c0_i32_1 = arith.constant 0 : i32
    return %c0_i32, %c0_i32_0 : i32, i32
  }
  func.func @transform_5(%arg0: i32) -> (i32, i32) {
    %c0_i32 = arith.constant 0 : i32
    %c0_i32_0 = arith.constant 0 : i32
    %c0_i32_1 = arith.constant 0 : i32
    return %c0_i32, %c0_i32_0 : i32, i32
  }
  func.func @transform_6(%arg0: i32) -> (i32, i32) {
    %c0_i32 = arith.constant 0 : i32
    %c0_i32_0 = arith.constant 0 : i32
    %c0_i32_1 = arith.constant 0 : i32
    return %c0_i32, %c0_i32_0 : i32, i32
  }
  func.func @transform_7(%arg0: i32) -> (i32, i32) {
    %c0_i32 = arith.constant 0 : i32
    %c0_i32_0 = arith.constant 0 : i32
    return %arg0, %c0_i32 : i32, i32
  }
  func.func @transform_8(%arg0: i32) -> (i32, i32, i32) {
    %c0_i32 = arith.constant 0 : i32
    %c0_i32_0 = arith.constant 0 : i32
    %c0_i32_1 = arith.constant 0 : i32
    %c0_i32_2 = arith.constant 0 : i32
    return %c0_i32, %c0_i32_0, %c0_i32_1 : i32, i32, i32
  }
  func.func @transform_9(%arg0: i32) -> (i32, i32, i32) {
    %c0_i32 = arith.constant 0 : i32
    %c0_i32_0 = arith.constant 0 : i32
    %c0_i32_1 = arith.constant 0 : i32
    %c0_i32_2 = arith.constant 0 : i32
    return %c0_i32, %c0_i32_0, %c0_i32_1 : i32, i32, i32
  }
}

</mosaic_0001>

<bundles_post_ra>
// kernel: tpu_custom_call.1
= control target key start
LH: loop header
LB: loop body
LE: loop exit
PB: predicated region body
PF: predicated region fallthrough
CT: control target
= control target key end

     0   :  { %15 = vsyncpa [#allocation5], 0  ;;  %s10129_s0 = inlined_call_operand.hbm [shape: bf16[128,128], index: 0, kind: input, shape index: {}]   ;;  %s10130_s1 = inlined_call_operand.hbm [shape: bf16[128,512], index: 1, kind: input, shape index: {}]   ;;  %s10131_s2 = inlined_call_operand.hbm [shape: bf16[128,512], index: 2, kind: input, shape index: {}]   ;;  %s10132_s3 = inlined_call_operand.vmem [shape: f32[1,512], index: 3, kind: input, shape index: {}]   ;;  %s10133_s4 = inlined_call_operand.hbm [shape: bf16[128,512], index: 4, kind: input, shape index: {}]   ;;  %s10134_s5 = inlined_call_operand.hbm [shape: bf16[128,512], index: 5, kind: input, shape index: {}]   ;;  %s10135_s6 = inlined_call_operand.vmem [shape: f32[1,512], index: 6, kind: input, shape index: {}]   ;;  %s10136_s7 = inlined_call_operand.hbm [shape: f32[128,128], index: 7, kind: output, shape index: {0}]   ;;  %s10137_s8 = inlined_call_operand.hbm [shape: f32[2,16,128], index: 8, kind: output, shape index: {1}]   ;;  %s10138_s9 = inlined_call_operand.hbm [shape: f32[2,16,128], index: 9, kind: output, shape index: {2}]  }
   0x1   :  { %16 = vsyncpa [#allocation8], 0 }
   0x2   :  { %17 = vsyncpa [#allocation11], 0 }
   0x3   :  { %18 = vsyncpa [#allocation6], 0 }
   0x4   :  { %19 = vsyncpa [#allocation15], 0  ;;  %s8782_s30 = smov [#allocation7]   ;;  %s8596_s13 = scalar_lea.hbm %s10130_s1, 4096 }
   0x5   :  { %s37_s10 = sshll.u32 %s8782_s30, 4  ;;  %p8597_p0 = scmp.ne.s32.totalorder %s10130_s1, %s8596_s13  ;;  %s38_s10 = int_to_ptr.vmem [resolvable:$true] %s37_s10 }
   0x6   :  { %p8600_p1 = scmp.lt.u32.totalorder %s8596_s13, %s10130_s1 }
   0x8   :  { %p8602_p2 = pnand %p8600_p1, %p8597_p0 }
   0xa   :  { %8605 = shalt.err (!%p8602_p2)
}
   0xb   :  { %s8606_s18 = scalar_lea.vmem %s38_s10, 4096  ;;  %p8611_p4 = scmp.lt.s32.totalorder %s38_s10, %s38_s10 }
   0xc   :  { %p8607_p3 = scmp.ne.s32.totalorder %s38_s10, %s8606_s18  ;;  %p8612_p5 = scmp.lt.s32.totalorder %s8606_s18, %s8606_s18 }
   0xe   :  { %p8613_p6 = por %p8612_p5, %p8611_p4 }
  0x10   :  { %p8614_p7 = pnand %p8613_p6, %p8607_p3 }
  0x12   :  { %8617 = shalt.err (!%p8614_p7)
}
  0x13   :  { %s8783_s19 = smov 256   ;;  %s8784_s20 = smov 16  }
  0x14   :  { %43 = dma.hbm_to_vmem [thread:$0]  %s10130_s1, 4096, %s38_s10, [#allocation8], %s8783_s19, %s8783_s19, %s8784_s20  }
  0x15   :  { %s8785_s23 = smov [#allocation10]   ;;  %s8786_s25 = smov [#allocation4]  }
  0x16   :  { %s63_s24 = sshll.u32 %s8785_s23, 4  ;;  %s25_s26 = sshll.u32 %s8786_s25, 4  ;;  %s64_s24 = int_to_ptr.vmem [resolvable:$true] %s63_s24  ;;  %s26_s26 = int_to_ptr.vmem [resolvable:$true] %s25_s26 }
  0x17   :  { %s8618_s29 = scalar_lea.hbm %s10133_s4, 4096 }
  0x18   :  { %p8619_p8 = scmp.ne.s32.totalorder %s10133_s4, %s8618_s29  ;;  %p8622_p9 = scmp.lt.u32.totalorder %s8618_s29, %s10133_s4 }
  0x1a   :  { %p8624_p10 = pnand %p8622_p9, %p8619_p8 }
  0x1c   :  { %8627 = shalt.err (!%p8624_p10)
}
  0x1d   :  { %s8628_s1 = scalar_lea.vmem %s64_s24, 4096  ;;  %p8633_p12 = scmp.lt.s32.totalorder %s64_s24, %s64_s24 }
  0x1e   :  { %p8629_p11 = scmp.ne.s32.totalorder %s64_s24, %s8628_s1  ;;  %p8634_p13 = scmp.lt.s32.totalorder %s8628_s1, %s8628_s1 }
  0x20   :  { %p8635_p0 = por %p8634_p13, %p8633_p12 }
  0x22   :  { %p8636_p1 = pnand %p8635_p0, %p8629_p11 }
  0x24   :  { %8639 = shalt.err (!%p8636_p1)
}
  0x25   :  { %69 = dma.hbm_to_vmem [thread:$0]  %s10133_s4, 4096, %s64_s24, [#allocation11], %s8783_s19, %s8783_s19, %s8784_s20  }
  0x26   :  { %s8640_s17 = scalar_lea.hbm %s10129_s0, 1024 }
  0x27   :  { %p8641_p2 = scmp.ne.s32.totalorder %s10129_s0, %s8640_s17  ;;  %p8644_p3 = scmp.lt.u32.totalorder %s8640_s17, %s10129_s0 }
  0x29   :  { %p8646_p4 = pnand %p8644_p3, %p8641_p2 }
  0x2b   :  { %8649 = shalt.err (!%p8646_p4)
}
  0x2c   :  { %s8650_s25 = scalar_lea.vmem %s26_s26, 1024  ;;  %p8655_p6 = scmp.lt.s32.totalorder %s26_s26, %s26_s26 }
  0x2d   :  { %p8651_p5 = scmp.ne.s32.totalorder %s26_s26, %s8650_s25  ;;  %p8656_p7 = scmp.lt.s32.totalorder %s8650_s25, %s8650_s25 }
  0x2f   :  { %p8657_p8 = por %p8656_p7, %p8655_p6 }
  0x31   :  { %p8658_p9 = pnand %p8657_p8, %p8651_p5 }
  0x33   :  { %8661 = shalt.err (!%p8658_p9)
}
  0x34   :  { %s8787_s4 = smov 64   ;;  %s8788_s24 = smov 4  }
  0x35   :  { %31 = dma.hbm_to_vmem [thread:$0]  %s10129_s0, 1024, %s26_s26, [#allocation5], %s8787_s4, %s8787_s4, %s8788_s24  }
  0x36   :  { %s8789_s29 = smov [#allocation9]   ;;  %s8790_s11 = smov [#allocation12]  }
  0x37   :  { %s49_s30 = sshll.u32 %s8789_s29, 4  ;;  %s75_s12 = sshll.u32 %s8790_s11, 4  ;;  %s50_s30 = int_to_ptr.vmem [resolvable:$true] %s49_s30  ;;  %s76_s12 = int_to_ptr.vmem [resolvable:$true] %s75_s12 }
  0x38   :  { %s8662_s10 = scalar_lea.hbm %s10131_s2, 4096 }
  0x39   :  { %p8663_p10 = scmp.ne.s32.totalorder %s10131_s2, %s8662_s10  ;;  %p8666_p11 = scmp.lt.u32.totalorder %s8662_s10, %s10131_s2 }
  0x3b   :  { %p8668_p12 = pnand %p8666_p11, %p8663_p10 }
  0x3d   :  { %8671 = shalt.err (!%p8668_p12)
}
  0x3e   :  { %s8672_s0 = scalar_lea.vmem %s50_s30, 4096  ;;  %p8677_p0 = scmp.lt.s32.totalorder %s50_s30, %s50_s30 }
  0x3f   :  { %p8673_p13 = scmp.ne.s32.totalorder %s50_s30, %s8672_s0  ;;  %p8678_p1 = scmp.lt.s32.totalorder %s8672_s0, %s8672_s0 }
  0x41   :  { %p8679_p2 = por %p8678_p1, %p8677_p0 }
  0x43   :  { %p8680_p3 = pnand %p8679_p2, %p8673_p13 }
  0x45   :  { %8683 = shalt.err (!%p8680_p3)
}
  0x46   :  { %55 = dma.hbm_to_vmem [thread:$0]  %s10131_s2, 4096, %s50_s30, [#allocation8], %s8783_s19, %s8783_s19, %s8784_s20  }
  0x47   :  { %s8684_s23 = scalar_lea.hbm %s10134_s5, 4096 }
  0x48   :  { %p8685_p4 = scmp.ne.s32.totalorder %s10134_s5, %s8684_s23  ;;  %p8688_p5 = scmp.lt.u32.totalorder %s8684_s23, %s10134_s5 }
  0x4a   :  { %p8690_p6 = pnand %p8688_p5, %p8685_p4 }
  0x4c   :  { %8693 = shalt.err (!%p8690_p6)
}
  0x4d   :  { %s8694_s28 = scalar_lea.vmem %s76_s12, 4096  ;;  %p8699_p8 = scmp.lt.s32.totalorder %s76_s12, %s76_s12 }
  0x4e   :  { %p8695_p7 = scmp.ne.s32.totalorder %s76_s12, %s8694_s28  ;;  %p8700_p9 = scmp.lt.s32.totalorder %s8694_s28, %s8694_s28 }
  0x50   :  { %p8701_p10 = por %p8700_p9, %p8699_p8 }
  0x52   :  { %p8702_p11 = pnand %p8701_p10, %p8695_p7 }
  0x54   :  { %8705 = shalt.err (!%p8702_p11)
}
  0x55   :  { %81 = dma.hbm_to_vmem [thread:$0]  %s10134_s5, 4096, %s76_s12, [#allocation11], %s8783_s19, %s8783_s19, %s8784_s20  }
  0x56   :  { %8772 = dma.done.wait [#allocation5], 1024  }
  0x57   :  { %8773 = vsyncadd [#allocation5], 4294966272 }
  0x58   :  { %8774 = dma.done.wait [#allocation8], 8192  }
  0x59   :  { %8775 = vsyncadd [#allocation8], 4294959104 }
  0x5a   :  { %8776 = dma.done.wait [#allocation11], 8192  }
  0x5b   :  { %8777 = vsyncadd [#allocation11], 4294959104  ;;  %v8791_v0 = vmov 0   ;;  %v7770_v1 = vld [vmem:[#allocation7 + $0x4] ss:$16 sps:$4 sm:$0xff]   ;;  %v7822_v43 = vld [vmem:[#allocation4 + $0x8] sm:$0xff]  }
  0x5c   :  { %422 = vmatprep.mubr.bf16.mxu0 %v8791_v0  ;;  %535 = vmatprep.mubr.bf16.mxu1 %v8791_v0  ;;  %v7772_v2 = vld [vmem:[#allocation7 + $0xc] ss:$16 sps:$4 sm:$0xff]   ;;  %v7774_v3 = vld [vmem:[#allocation7] ss:$16 sps:$4 sm:$0xff]   ;;  %v7775_v4 = vld [vmem:[#allocation7 + $0x8] ss:$16 sps:$4 sm:$0xff]  }
  0x5d   :  { %390 = vmatprep.subr.bf16.mxu0 %v7770_v1  ;;  %503 = vmatprep.subr.bf16.mxu1 %v7772_v2  ;;  %v7776_v5 = vld [vmem:[#allocation7 + $0x24] ss:$16 sps:$4 sm:$0xff]   ;;  %v7778_v6 = vld [vmem:[#allocation7 + $0x2c] ss:$16 sps:$4 sm:$0xff]   ;;  %v7780_v7 = vld [vmem:[#allocation7 + $0x20] ss:$16 sps:$4 sm:$0xff]  }
  0x5e   :  { %391 = vmatpush1.bf16.msra.mxu0 %v7774_v3  ;;  %504 = vmatpush1.bf16.msra.mxu1 %v7775_v4  ;;  %v7781_v8 = vld [vmem:[#allocation7 + $0x28] ss:$16 sps:$4 sm:$0xff]   ;;  %v7782_v9 = vld [vmem:[#allocation7 + $0x44] ss:$16 sps:$4 sm:$0xff]   ;;  %v7784_v10 = vld [vmem:[#allocation7 + $0x4c] ss:$16 sps:$4 sm:$0xff]  }
  0x5f   :  { %392 = vmatprep.subr.bf16.mxu0 %v7776_v5  ;;  %505 = vmatprep.subr.bf16.mxu1 %v7778_v6  ;;  %v7786_v11 = vld [vmem:[#allocation7 + $0x40] ss:$16 sps:$4 sm:$0xff]   ;;  %v7787_v12 = vld [vmem:[#allocation7 + $0x48] ss:$16 sps:$4 sm:$0xff]   ;;  %v7788_v13 = vld [vmem:[#allocation7 + $0x64] ss:$16 sps:$4 sm:$0xff]  }
  0x60   :  { %v7790_v14 = vld [vmem:[#allocation7 + $0x6c] ss:$16 sps:$4 sm:$0xff]   ;;  %v7792_v15 = vld [vmem:[#allocation7 + $0x60] ss:$16 sps:$4 sm:$0xff]   ;;  %v7793_v16 = vld [vmem:[#allocation7 + $0x68] ss:$16 sps:$4 sm:$0xff]  }
  0x61   :  { %v7794_v17 = vld [vmem:[#allocation7 + $0x84] ss:$16 sps:$4 sm:$0xff]   ;;  %v7796_v18 = vld [vmem:[#allocation7 + $0x8c] ss:$16 sps:$4 sm:$0xff]   ;;  %v7798_v19 = vld [vmem:[#allocation7 + $0x80] ss:$16 sps:$4 sm:$0xff]  }
  0x62   :  { %393 = vmatpush1.bf16.msra.mxu0 %v7780_v7  ;;  %506 = vmatpush1.bf16.msra.mxu1 %v7781_v8  ;;  %v7799_v20 = vld [vmem:[#allocation7 + $0x88] ss:$16 sps:$4 sm:$0xff]   ;;  %v7800_v21 = vld [vmem:[#allocation7 + $0xa4] ss:$16 sps:$4 sm:$0xff]   ;;  %v7802_v22 = vld [vmem:[#allocation7 + $0xac] ss:$16 sps:$4 sm:$0xff]  }
  0x63   :  { %394 = vmatprep.subr.bf16.mxu0 %v7782_v9  ;;  %507 = vmatprep.subr.bf16.mxu1 %v7784_v10  ;;  %v7804_v23 = vld [vmem:[#allocation7 + $0xa0] ss:$16 sps:$4 sm:$0xff]   ;;  %v7805_v24 = vld [vmem:[#allocation7 + $0xa8] ss:$16 sps:$4 sm:$0xff]   ;;  %v7806_v25 = vld [vmem:[#allocation7 + $0xc4] ss:$16 sps:$4 sm:$0xff]  }
  0x64   :  { %v7808_v26 = vld [vmem:[#allocation7 + $0xcc] ss:$16 sps:$4 sm:$0xff]   ;;  %v7810_v27 = vld [vmem:[#allocation7 + $0xc0] ss:$16 sps:$4 sm:$0xff]   ;;  %v7811_v28 = vld [vmem:[#allocation7 + $0xc8] ss:$16 sps:$4 sm:$0xff]  }
  0x65   :  { %v7812_v29 = vld [vmem:[#allocation7 + $0xe4] ss:$16 sps:$4 sm:$0xff]   ;;  %v7814_v30 = vld [vmem:[#allocation7 + $0xec] ss:$16 sps:$4 sm:$0xff]   ;;  %v7816_v31 = vld [vmem:[#allocation7 + $0xe0] ss:$16 sps:$4 sm:$0xff]  }
  0x66   :  { %395 = vmatpush1.bf16.msra.mxu0 %v7786_v11  ;;  %508 = vmatpush1.bf16.msra.mxu1 %v7787_v12  ;;  %v7817_v32 = vld [vmem:[#allocation7 + $0xe8] ss:$16 sps:$4 sm:$0xff]   ;;  %v8922_v33 = vld [vmem:[#allocation9 + $0x4] ss:$16 sps:$4 sm:$0xff]   ;;  %v8924_v34 = vld [vmem:[#allocation9 + $0xc] ss:$16 sps:$4 sm:$0xff]   ;;  %v162_v11 = vlaneseq }
  0x67   :  { %396 = vmatprep.subr.bf16.mxu0 %v7788_v13  ;;  %509 = vmatprep.subr.bf16.mxu1 %v7790_v14  ;;  %v7818_v35 = vld [vmem:[#allocation4] sm:$0xff]   ;;  %v8932_v38 = vld [vmem:[#allocation9 + $0x8] ss:$16 sps:$4 sm:$0xff]   ;;  %v8934_v39 = vld [vmem:[#allocation9 + $0x2c] ss:$16 sps:$4 sm:$0xff]   ;;  %v8792_v10 = vmov 0.0|0.0  }
  0x68   :  { %v8926_v36 = vld [vmem:[#allocation9] ss:$16 sps:$4 sm:$0xff]   ;;  %v8929_v37 = vld [vmem:[#allocation9 + $0x24] ss:$16 sps:$4 sm:$0xff]   ;;  %v8945_v42 = vld [vmem:[#allocation9 + $0x28] ss:$16 sps:$4 sm:$0xff]  }
  0x69   :  { %v8938_v40 = vld [vmem:[#allocation9 + $0x20] ss:$16 sps:$4 sm:$0xff]   ;;  %v8942_v41 = vld [vmem:[#allocation9 + $0x44] ss:$16 sps:$4 sm:$0xff]   ;;  %v8954_v46 = vld [vmem:[#allocation9 + $0x4c] ss:$16 sps:$4 sm:$0xff]  }
  0x6a   :  { %397 = vmatpush1.bf16.msra.mxu0 %v7792_v15  ;;  %510 = vmatpush1.bf16.msra.mxu1 %v7793_v16  ;;  %v8949_v44 = vld [vmem:[#allocation9 + $0x40] ss:$16 sps:$4 sm:$0xff]   ;;  %v8952_v45 = vld [vmem:[#allocation9 + $0x64] ss:$16 sps:$4 sm:$0xff]   ;;  %v8957_v47 = vld [vmem:[#allocation9 + $0x48] ss:$16 sps:$4 sm:$0xff]  }
  0x6b   :  { %398 = vmatprep.subr.bf16.mxu0 %v7794_v17  ;;  %511 = vmatprep.subr.bf16.mxu1 %v7796_v18  ;;  %v8959_v48 = vld [vmem:[#allocation9 + $0x6c] ss:$16 sps:$4 sm:$0xff]   ;;  %v8964_v49 = vld [vmem:[#allocation9 + $0x60] ss:$16 sps:$4 sm:$0xff]   ;;  %v8967_v50 = vld [vmem:[#allocation9 + $0x84] ss:$16 sps:$4 sm:$0xff]  }
  0x6c   :  { %v8971_v51 = vld [vmem:[#allocation9 + $0x68] ss:$16 sps:$4 sm:$0xff]   ;;  %v7829_v52 = vld [vmem:[#allocation4 + $0x10] sm:$0xff]   ;;  %v8977_v54 = vld [vmem:[#allocation9 + $0x8c] ss:$16 sps:$4 sm:$0xff]   ;;  %v9072_v12 = vshrl.u32 %v162_v11, 7 }
  0x6d   :  { %v8974_v53 = vld [vmem:[#allocation9 + $0x80] ss:$16 sps:$4 sm:$0xff]   ;;  %v8980_v55 = vld [vmem:[#allocation9 + $0xa4] ss:$16 sps:$4 sm:$0xff]   ;;  %v8983_v56 = vld [vmem:[#allocation9 + $0x88] ss:$16 sps:$4 sm:$0xff]  }
  0x6e   :  { %399 = vmatpush1.bf16.msra.mxu0 %v7798_v19  ;;  %512 = vmatpush1.bf16.msra.mxu1 %v7799_v20  ;;  %v8985_v57 = vld [vmem:[#allocation9 + $0xac] ss:$16 sps:$4 sm:$0xff]   ;;  %v8987_v58 = vld [vmem:[#allocation9 + $0xa0] ss:$16 sps:$4 sm:$0xff]   ;;  %v8991_v59 = vld [vmem:[#allocation9 + $0xc4] ss:$16 sps:$4 sm:$0xff]  }
  0x6f   :  { %400 = vmatprep.subr.bf16.mxu0 %v7800_v21  ;;  %513 = vmatprep.subr.bf16.mxu1 %v7802_v22  ;;  %v8993_v60 = vld [vmem:[#allocation9 + $0xa8] ss:$16 sps:$4 sm:$0xff]   ;;  %v8999_v62 = vld [vmem:[#allocation9 + $0xc0] ss:$16 sps:$4 sm:$0xff]   ;;  %v9002_v63 = vld [vmem:[#allocation9 + $0xcc] ss:$16 sps:$4 sm:$0xff]  }
  0x70   :  { %v7836_v61 = vld [vmem:[#allocation4 + $0x18] sm:$0xff]   ;;  %v9004_v1 = vld [vmem:[#allocation9 + $0xe4] ss:$16 sps:$4 sm:$0xff]   ;;  %v9013_v4 = vld [vmem:[#allocation9 + $0xe0] ss:$16 sps:$4 sm:$0xff]   ;;  %v164_v13 = vsub.s32 0, %v9072_v12 }
  0x71   :  { %v9006_v2 = vld [vmem:[#allocation9 + $0xc8] ss:$16 sps:$4 sm:$0xff]   ;;  %v9009_v3 = vld [vmem:[#allocation9 + $0xec] ss:$16 sps:$4 sm:$0xff]   ;;  %v7843_v6 = vld [vmem:[#allocation4 + $0x20] sm:$0xff]   ;;  %v10141_v15 = vsub.s32 1, %v9072_v12 }
  0x72   :  { %401 = vmatpush1.bf16.msra.mxu0 %v7804_v23  ;;  %514 = vmatpush1.bf16.msra.mxu1 %v7805_v24  ;;  %v9017_v5 = vld [vmem:[#allocation9 + $0xe8] ss:$16 sps:$4 sm:$0xff]   ;;  %v7857_v8 = vld [vmem:[#allocation4 + $0x30] sm:$0xff]   ;;  %v160_v14 = vld [vmem:[%s10132_s3] sm:$0xf]  ;;  %v10140_v20 = vsub.s32 3, %v9072_v12 }
  0x73   :  { %402 = vmatprep.subr.bf16.mxu0 %v7806_v25  ;;  %515 = vmatprep.subr.bf16.mxu1 %v7808_v26  ;;  %v7850_v7 = vld [vmem:[#allocation4 + $0x28] sm:$0xff]   ;;  %v7864_v9 = vld [vmem:[#allocation4 + $0x38] sm:$0xff]   ;;  %v9081_v16 = vrot.slane %v160_v14, %v164_v13  ;;  %v9085_v17 = vrot.slane %v160_v14, %v10141_v15  ;;  %s8794_s11 = smov [#allocation13]   ;;  %s8795_s13 = smov [#allocation16]  }
  0x74   :  { %s6766_s12 = sshll.u32 %s8794_s11, 4  ;;  %s6790_s1 = sshll.u32 %s8795_s13, 4  ;;  %s10070_s12 = int_to_ptr.vmem [resolvable:$true] %s6766_s12  ;;  %s10072_s1 = int_to_ptr.vmem [resolvable:$true] %s6790_s1 }
  0x76   :  { %403 = vmatpush1.bf16.msra.mxu0 %v7810_v27  ;;  %516 = vmatpush1.bf16.msra.mxu1 %v7811_v28  ;;  %v10139_v28 = vsub.s32 2, %v9072_v12 }
  0x77   :  { %404 = vmatprep.subr.bf16.mxu0 %v7812_v29  ;;  %517 = vmatprep.subr.bf16.mxu1 %v7814_v30 }
  0x7a   :  { %405 = vmatpush1.bf16.msra.mxu0 %v7816_v31  ;;  %518 = vmatpush1.bf16.msra.mxu1 %v7817_v32 }
  0x7b   :  { %888 = vmatprep.subr.bf16.mxu0 %v8922_v33  ;;  %931 = vmatprep.subr.bf16.mxu1 %v8924_v34 }
  0x7d   :  { %423 = vmatmul.mubr.bf16.vlgmr.msra.gmra.mrb[0].mxu0 %v7818_v35  ;;  %536 = vmatmul.mubr.bf16.vlgmr.msra.gmra.mrb[0].mxu1 %v7818_v35 }
  0x7e   :  { %889 = vmatpush1.bf16.msra.mxu0 %v8926_v36  ;;  %432 = vmatprep.mubr.bf16.mxu0 %v8791_v0 }
  0x7f   :  { %545 = vmatprep.mubr.bf16.mxu1 %v8791_v0  ;;  %890 = vmatprep.subr.bf16.mxu0 %v8929_v37 }
  0x80   :  { %932 = vmatpush1.bf16.msra.mxu1 %v8932_v38 }
  0x81   :  { %933 = vmatprep.subr.bf16.mxu1 %v8934_v39 }
  0x82   :  { %891 = vmatpush1.bf16.msra.mxu0 %v8938_v40 }
  0x83   :  { %892 = vmatprep.subr.bf16.mxu0 %v8942_v41 }
  0x84   :  { %934 = vmatpush1.bf16.msra.mxu1 %v8945_v42 }
  0x85   :  { %433 = vmatmul.mubr.bf16.gmra.mrb[4].mxu0 %v7822_v43  ;;  %546 = vmatmul.mubr.bf16.gmra.mrb[4].mxu1 %v7822_v43 }
  0x86   :  { %442 = vmatprep.mubr.bf16.mxu0 %v8791_v0  ;;  %555 = vmatprep.mubr.bf16.mxu1 %v8791_v0 }
  0x87   :  { %893 = vmatpush1.bf16.msra.mxu0 %v8949_v44  ;;  %935 = vmatprep.subr.bf16.mxu1 %v8954_v46 }
  0x88   :  { %894 = vmatprep.subr.bf16.mxu0 %v8952_v45  ;;  %936 = vmatpush1.bf16.msra.mxu1 %v8957_v47 }
  0x89   :  { %937 = vmatprep.subr.bf16.mxu1 %v8959_v48 }
  0x8b   :  { %895 = vmatpush1.bf16.msra.mxu0 %v8964_v49 }
  0x8c   :  { %896 = vmatprep.subr.bf16.mxu0 %v8967_v50  ;;  %938 = vmatpush1.bf16.msra.mxu1 %v8971_v51 }
  0x8d   :  { %443 = vmatmul.mubr.bf16.gmra.mrb[8].mxu0 %v7829_v52  ;;  %556 = vmatmul.mubr.bf16.gmra.mrb[8].mxu1 %v7829_v52  ;;  %v9099_v52 = vrot.slane %v160_v14, %v10139_v28 }
  0x8e   :  { %452 = vmatprep.mubr.bf16.mxu0 %v8791_v0  ;;  %565 = vmatprep.mubr.bf16.mxu1 %v8791_v0 }
  0x8f   :  { %897 = vmatpush1.bf16.msra.mxu0 %v8974_v53  ;;  %939 = vmatprep.subr.bf16.mxu1 %v8977_v54 }
  0x90   :  { %898 = vmatprep.subr.bf16.mxu0 %v8980_v55  ;;  %940 = vmatpush1.bf16.msra.mxu1 %v8983_v56 }
  0x91   :  { %941 = vmatprep.subr.bf16.mxu1 %v8985_v57 }
  0x93   :  { %899 = vmatpush1.bf16.msra.mxu0 %v8987_v58 }
  0x94   :  { %900 = vmatprep.subr.bf16.mxu0 %v8991_v59  ;;  %942 = vmatpush1.bf16.msra.mxu1 %v8993_v60 }
  0x95   :  { %453 = vmatmul.mubr.bf16.gmra.mrb[12].mxu0 %v7836_v61  ;;  %566 = vmatmul.mubr.bf16.gmra.mrb[12].mxu1 %v7836_v61 }
  0x96   :  { %462 = vmatprep.mubr.bf16.mxu0 %v8791_v0  ;;  %575 = vmatprep.mubr.bf16.mxu1 %v8791_v0 }
  0x97   :  { %901 = vmatpush1.bf16.msra.mxu0 %v8999_v62  ;;  %943 = vmatprep.subr.bf16.mxu1 %v9002_v63 }
  0x98   :  { %902 = vmatprep.subr.bf16.mxu0 %v9004_v1  ;;  %944 = vmatpush1.bf16.msra.mxu1 %v9006_v2 }
  0x99   :  { %945 = vmatprep.subr.bf16.mxu1 %v9009_v3 }
  0x9b   :  { %903 = vmatpush1.bf16.msra.mxu0 %v9013_v4 }
  0x9c   :  { %946 = vmatpush1.bf16.msra.mxu1 %v9017_v5  ;;  %1235 = vmatprep.subr.bf16.mxu0 %v8922_v33 }
  0x9d   :  { %463 = vmatmul.mubr.bf16.gmra.mrb[16].mxu0 %v7843_v6  ;;  %576 = vmatmul.mubr.bf16.gmra.mrb[16].mxu1 %v7843_v6 }
  0x9e   :  { %472 = vmatprep.mubr.bf16.mxu0 %v8791_v0  ;;  %585 = vmatprep.mubr.bf16.mxu1 %v8791_v0 }
  0x9f   :  { %1278 = vmatprep.subr.bf16.mxu1 %v8924_v34 }
  0xa5   :  { %473 = vmatmul.mubr.bf16.gmra.mrb[20].mxu0 %v7850_v7  ;;  %586 = vmatmul.mubr.bf16.gmra.mrb[20].mxu1 %v7850_v7 }
  0xa6   :  { %482 = vmatprep.mubr.bf16.mxu0 %v8791_v0  ;;  %595 = vmatprep.mubr.bf16.mxu1 %v8791_v0 }
  0xad   :  { %483 = vmatmul.mubr.bf16.gmra.mrb[24].mxu0 %v7857_v8  ;;  %596 = vmatmul.mubr.bf16.gmra.mrb[24].mxu1 %v7857_v8 }
  0xae   :  { %492 = vmatprep.mubr.bf16.mxu0 %v8791_v0  ;;  %605 = vmatprep.mubr.bf16.mxu1 %v8791_v0 }
  0xb5   :  { %493 = vmatmul.mubr.bf16.gmra.mrb[28].mxu0 %v7864_v9  ;;  %606 = vmatmul.mubr.bf16.gmra.mrb[28].mxu1 %v7864_v9 }
  0xb6   :  { %920 = vmatprep.mubr.bf16.mxu0 %v8791_v0  ;;  %963 = vmatprep.mubr.bf16.mxu1 %v8791_v0 }
  0xbd   :  { %921 = vmatmul.mubr.bf16.vlgmr.msra.gmra.mrb[0].mxu0 %v8792_v10  ;;  %964 = vmatmul.mubr.bf16.vlgmr.msra.gmra.mrb[0].mxu1 %v8792_v10 }
  0xbe   :  { %1236 = vmatpush1.bf16.msra.mxu0 %v8926_v36  ;;  %1279 = vmatpush1.bf16.msra.mxu1 %v8932_v38 }
  0xbf   :  { %1237 = vmatprep.subr.bf16.mxu0 %v8929_v37  ;;  %1280 = vmatprep.subr.bf16.mxu1 %v8934_v39 }
  0xc0   :  { %1267 = vmatprep.mubr.bf16.mxu0 %v8791_v0  ;;  %1310 = vmatprep.mubr.bf16.mxu1 %v8791_v0 }
  0xc2   :  { %1238 = vmatpush1.bf16.msra.mxu0 %v8938_v40  ;;  %1281 = vmatpush1.bf16.msra.mxu1 %v8945_v42 }
  0xc3   :  { %1239 = vmatprep.subr.bf16.mxu0 %v8942_v41  ;;  %1282 = vmatprep.subr.bf16.mxu1 %v8954_v46 }
  0xc6   :  { %1240 = vmatpush1.bf16.msra.mxu0 %v8949_v44  ;;  %1283 = vmatpush1.bf16.msra.mxu1 %v8957_v47 }
  0xc7   :  { %1241 = vmatprep.subr.bf16.mxu0 %v8952_v45  ;;  %1284 = vmatprep.subr.bf16.mxu1 %v8959_v48 }
  0xca   :  { %1242 = vmatpush1.bf16.msra.mxu0 %v8964_v49  ;;  %1285 = vmatpush1.bf16.msra.mxu1 %v8971_v51 }
  0xcb   :  { %1243 = vmatprep.subr.bf16.mxu0 %v8967_v50  ;;  %1286 = vmatprep.subr.bf16.mxu1 %v8977_v54 }
  0xce   :  { %1244 = vmatpush1.bf16.msra.mxu0 %v8974_v53  ;;  %1287 = vmatpush1.bf16.msra.mxu1 %v8983_v56 }
  0xcf   :  { %1245 = vmatprep.subr.bf16.mxu0 %v8980_v55  ;;  %1288 = vmatprep.subr.bf16.mxu1 %v8985_v57 }
  0xd2   :  { %1246 = vmatpush1.bf16.msra.mxu0 %v8987_v58  ;;  %1289 = vmatpush1.bf16.msra.mxu1 %v8993_v60 }
  0xd3   :  { %1247 = vmatprep.subr.bf16.mxu0 %v8991_v59  ;;  %1290 = vmatprep.subr.bf16.mxu1 %v9002_v63 }
  0xd6   :  { %1248 = vmatpush1.bf16.msra.mxu0 %v8999_v62  ;;  %1291 = vmatpush1.bf16.msra.mxu1 %v9006_v2 }
  0xd7   :  { %1249 = vmatprep.subr.bf16.mxu0 %v9004_v1  ;;  %1292 = vmatprep.subr.bf16.mxu1 %v9009_v3 }
  0xda   :  { %1250 = vmatpush1.bf16.msra.mxu0 %v9013_v4  ;;  %1293 = vmatpush1.bf16.msra.mxu1 %v9017_v5 }
  0xdb   :  { %1583 = vmatprep.subr.bf16.mxu0 %v8922_v33  ;;  %1626 = vmatprep.subr.bf16.mxu1 %v8924_v34  ;;  %v9094_v33 = vrot.slane %v160_v14, %v10140_v20 }
 0x190   :  { %v922_v18 = vpop.f32.mrb[0].mxu0  ;;  %v965_v19 = vpop.f32.mrb[0].mxu1 }
 0x191   :  { %v7498_v21 = vadd.f32 %v922_v18, %v9081_v16  ;;  %v924_v22 = vpop.f32.mrb[1].mxu0  ;;  %v967_v23 = vpop.f32.mrb[1].mxu1  ;;  %v7530_v6 = vadd.f32 %v965_v19, %v9099_v52 }
 0x192   :  { %v7499_v24 = vadd.f32 %v924_v22, %v9085_v17  ;;  %v926_v25 = vpop.f32.mrb[2].mxu0  ;;  %v969_v26 = vpop.f32.mrb[2].mxu1  ;;  %v7531_v61 = vadd.f32 %v967_v23, %v9094_v33 }
 0x193   :  { %v6890_v27 = vmul.f32 -1.442695, %v7498_v21  ;;  %v7500_v29 = vadd.f32 %v926_v25, %v9081_v16  ;;  %v928_v30 = vpop.f32.mrb[3].mxu0  ;;  %v971_v31 = vpop.f32.mrb[3].mxu1  ;;  %v7532_v9 = vadd.f32 %v969_v26, %v9099_v52 }
 0x194   :  { %v6892_v32 = vmul.f32 -1.442695, %v7499_v24  ;;  %v7501_v34 = vadd.f32 %v928_v30, %v9085_v17  ;;  %v6894_v7 = vmul.f32 -1.442695, %v7531_v61  ;;  %v7533_v8 = vadd.f32 %v971_v31, %v9094_v33 }
 0x195   :  { %8084 = vpow2.f32 %v6890_v27  ;;  %v6891_v35 = vmul.f32 -1.442695, %v7500_v29 }
 0x196   :  { %8086 = vpow2.f32 %v6892_v32  ;;  %v6893_v43 = vmul.f32 -1.442695, %v7501_v34  ;;  %v6895_v22 = vmul.f32 -1.442695, %v7533_v8 }
 0x197   :  { %8088 = vpow2.f32 %v6891_v35 }
 0x198   :  { %8090 = vpow2.f32 %v6893_v43 }
 0x199   :  { %8092 = vtanh.f32 %v7530_v6 }
 0x19a   :  { %8094 = vpow2.f32 %v6894_v7 }
 0x19b   :  { %8096 = vtanh.f32 %v7532_v9 }
 0x19f   :  { %v8085_v11 = vpop.eup %8084 }
 0x1a0   :  { %v8087_v18 = vpop.eup %8086  ;;  %v988_v21 = vadd.f32 1.0, %v8085_v11 }
 0x1a1   :  { %v1000_v24 = vadd.f32 1.0, %v8087_v18  ;;  %v8089_v14 = vpop.eup %8088 }
 0x1a2   :  { %8098 = vrcp.f32 %v988_v21  ;;  %v989_v23 = vadd.f32 1.0, %v8089_v14  ;;  %v8091_v25 = vpop.eup %8090 }
 0x1a3   :  { %8100 = vrcp.f32 %v1000_v24  ;;  %v1001_v19 = vadd.f32 1.0, %v8091_v25  ;;  %v8093_v27 = vpop.eup %8092 }
 0x1a4   :  { %8102 = vpow2.f32 %v6895_v22  ;;  %v8095_v29 = vpop.eup %8094 }
 0x1a5   :  { %8104 = vrcp.f32 %v989_v23  ;;  %v8097_v26 = vpop.eup %8096  ;;  %v1014_v61 = vadd.f32 1.0, %v8095_v29 }
 0x1a6   :  { %8106 = vrcp.f32 %v1001_v19 }
 0x1a7   :  { %8108 = vrcp.f32 %v1014_v61 }
 0x1ac   :  { %v8099_v30 = vpop.eup %8098 }
 0x1ad   :  { %v8101_v31 = vpop.eup %8100  ;;  %v1022_v32 = vmul.f32 %v8099_v30, %v8093_v27 }
 0x1ae   :  { %v8103_v34 = vpop.eup %8102  ;;  %v1020_v35 = vmul.f32 0.0, %v8101_v31 }
 0x1af   :  { %v8105_v43 = vpop.eup %8104  ;;  %v1015_v9 = vadd.f32 1.0, %v8103_v34 }
 0x1b0   :  { %v9105_v6 = vadd.f32 %v1022_v32, %v1020_v35  ;;  %v1023_v7 = vmul.f32 %v8105_v43, %v8097_v26  ;;  %v8107_v8 = vpop.eup %8106 }
 0x1b1   :  { %v1021_v11 = vmul.f32 0.0, %v8107_v8  ;;  %v8109_v21 = vpop.eup %8108 }
 0x1b2   :  { %8110 = vtanh.f32 %v9105_v6 }
 0x1b3   :  { %v9108_v18 = vadd.f32 %v1023_v7, %v1021_v11  ;;  %8112 = vrcp.f32 %v1015_v9 }
 0x1b5   :  { %8114 = vtanh.f32 %v9108_v18 }
 0x1bc   :  { %v8111_v22 = vpop.eup %8110 }
 0x1bd   :  { %v8113_v24 = vpop.eup %8112  ;;  %v1028_v23 = vmul.f32 %v8111_v22, %v8109_v21 }
 0x1bf   :  { %v8115_v14 = vpop.eup %8114 }
 0x1c0   :  { %v1029_v25 = vmul.f32 %v8115_v14, %v8113_v24 }
 0x1c2   :  { %v9111_v19 = vpack.c.bf16 %v1029_v25, %v1028_v23 }
 0x1c4   :  { %1268 = vmatmul.mubr.bf16.vlgmr.msra.gmra.mrb[4].mxu0 %v9111_v19  ;;  %1311 = vmatmul.mubr.bf16.vlgmr.msra.gmra.mrb[4].mxu1 %v9111_v19 }
 0x1c5   :  { %1584 = vmatpush1.bf16.msra.mxu0 %v8926_v36  ;;  %1627 = vmatpush1.bf16.msra.mxu1 %v8932_v38 }
 0x1c6   :  { %1585 = vmatprep.subr.bf16.mxu0 %v8929_v37  ;;  %1628 = vmatprep.subr.bf16.mxu1 %v8934_v39 }
 0x1c7   :  { %1615 = vmatprep.mubr.bf16.mxu0 %v8791_v0  ;;  %1658 = vmatprep.mubr.bf16.mxu1 %v8791_v0 }
 0x1c9   :  { %1586 = vmatpush1.bf16.msra.mxu0 %v8938_v40  ;;  %1629 = vmatpush1.bf16.msra.mxu1 %v8945_v42 }
 0x1ca   :  { %1587 = vmatprep.subr.bf16.mxu0 %v8942_v41  ;;  %1630 = vmatprep.subr.bf16.mxu1 %v8954_v46 }
 0x1cd   :  { %1588 = vmatpush1.bf16.msra.mxu0 %v8949_v44  ;;  %1631 = vmatpush1.bf16.msra.mxu1 %v8957_v47 }
 0x1ce   :  { %1589 = vmatprep.subr.bf16.mxu0 %v8952_v45  ;;  %1632 = vmatprep.subr.bf16.mxu1 %v8959_v48 }
 0x1d1   :  { %1590 = vmatpush1.bf16.msra.mxu0 %v8964_v49  ;;  %1633 = vmatpush1.bf16.msra.mxu1 %v8971_v51 }
 0x1d2   :  { %1591 = vmatprep.subr.bf16.mxu0 %v8967_v50  ;;  %1634 = vmatprep.subr.bf16.mxu1 %v8977_v54 }
 0x1d5   :  { %1592 = vmatpush1.bf16.msra.mxu0 %v8974_v53  ;;  %1635 = vmatpush1.bf16.msra.mxu1 %v8983_v56 }
 0x1d6   :  { %1593 = vmatprep.subr.bf16.mxu0 %v8980_v55  ;;  %1636 = vmatprep.subr.bf16.mxu1 %v8985_v57 }
 0x1d9   :  { %1594 = vmatpush1.bf16.msra.mxu0 %v8987_v58  ;;  %1637 = vmatpush1.bf16.msra.mxu1 %v8993_v60 }
 0x1da   :  { %1595 = vmatprep.subr.bf16.mxu0 %v8991_v59  ;;  %1638 = vmatprep.subr.bf16.mxu1 %v9002_v63 }
 0x1dd   :  { %1596 = vmatpush1.bf16.msra.mxu0 %v8999_v62  ;;  %1639 = vmatpush1.bf16.msra.mxu1 %v9006_v2 }
 0x1de   :  { %1597 = vmatprep.subr.bf16.mxu0 %v9004_v1  ;;  %1640 = vmatprep.subr.bf16.mxu1 %v9009_v3 }
 0x1e1   :  { %1598 = vmatpush1.bf16.msra.mxu0 %v9013_v4  ;;  %1641 = vmatpush1.bf16.msra.mxu1 %v9017_v5 }
 0x297   :  { %v1269_v36 = vpop.f32.mrb[4].mxu0  ;;  %v1312_v37 = vpop.f32.mrb[4].mxu1 }
 0x298   :  { %v7502_v38 = vadd.f32 %v1269_v36, %v9081_v16  ;;  %v1271_v40 = vpop.f32.mrb[5].mxu0  ;;  %v1314_v41 = vpop.f32.mrb[5].mxu1  ;;  %v7534_v61 = vadd.f32 %v1312_v37, %v9099_v52 }
 0x299   :  { %v7503_v44 = vadd.f32 %v1271_v40, %v9085_v17  ;;  %v1273_v45 = vpop.f32.mrb[6].mxu0  ;;  %v1316_v49 = vpop.f32.mrb[6].mxu1  ;;  %v7535_v43 = vadd.f32 %v1314_v41, %v9094_v33 }
 0x29a   :  { %v6928_v27 = vmul.f32 -1.442695, %v7502_v38  ;;  %v7504_v29 = vadd.f32 %v1273_v45, %v9081_v16  ;;  %v1275_v26 = vpop.f32.mrb[7].mxu0  ;;  %v1318_v30 = vpop.f32.mrb[7].mxu1  ;;  %v7536_v9 = vadd.f32 %v1316_v49, %v9099_v52 }
 0x29b   :  { %v6930_v31 = vmul.f32 -1.442695, %v7503_v44  ;;  %v7505_v32 = vadd.f32 %v1275_v26, %v9085_v17  ;;  %v6932_v7 = vmul.f32 -1.442695, %v7535_v43  ;;  %v7537_v8 = vadd.f32 %v1318_v30, %v9094_v33 }
 0x29c   :  { %8116 = vpow2.f32 %v6928_v27  ;;  %v6929_v34 = vmul.f32 -1.442695, %v7504_v29 }
 0x29d   :  { %8118 = vpow2.f32 %v6930_v31  ;;  %v6931_v35 = vmul.f32 -1.442695, %v7505_v32  ;;  %v6933_v24 = vmul.f32 -1.442695, %v7537_v8 }
 0x29e   :  { %8120 = vpow2.f32 %v6929_v34 }
 0x29f   :  { %8122 = vpow2.f32 %v6931_v35 }
 0x2a0   :  { %8124 = vtanh.f32 %v7534_v61 }
 0x2a1   :  { %8126 = vpow2.f32 %v6932_v7 }
 0x2a2   :  { %8128 = vtanh.f32 %v7536_v9 }
 0x2a6   :  { %v8117_v11 = vpop.eup %8116 }
 0x2a7   :  { %v8119_v21 = vpop.eup %8118  ;;  %v1335_v22 = vadd.f32 1.0, %v8117_v11 }
 0x2a8   :  { %v1347_v14 = vadd.f32 1.0, %v8119_v21  ;;  %v8121_v23 = vpop.eup %8120 }
 0x2a9   :  { %8130 = vrcp.f32 %v1335_v22  ;;  %v1336_v25 = vadd.f32 1.0, %v8121_v23  ;;  %v8123_v36 = vpop.eup %8122  ;;  %v9175_v23 = vld [vmem:[#allocation9 + $0x8] ss:$16 sps:$4 sm:$0xff]  }
 0x2aa   :  { %8132 = vrcp.f32 %v1347_v14  ;;  %v1348_v37 = vadd.f32 1.0, %v8123_v36  ;;  %v8125_v38 = vpop.eup %8124  ;;  %v9173_v14 = vld [vmem:[#allocation9] ss:$16 sps:$4 sm:$0xff]  }
 0x2ab   :  { %8134 = vpow2.f32 %v6933_v24  ;;  %v8127_v40 = vpop.eup %8126  ;;  %v9171_v24 = vld [vmem:[#allocation9 + $0xc] ss:$16 sps:$4 sm:$0xff]   ;;  %v9184_v36 = vld [vmem:[#allocation9 + $0x20] ss:$16 sps:$4 sm:$0xff]  }
 0x2ac   :  { %8136 = vrcp.f32 %v1336_v25  ;;  %v8129_v41 = vpop.eup %8128  ;;  %v1361_v30 = vadd.f32 1.0, %v8127_v40  ;;  %1974 = vmatprep.subr.bf16.mxu1 %v9171_v24  ;;  %v9181_v25 = vld [vmem:[#allocation9 + $0x24] ss:$16 sps:$4 sm:$0xff]   ;;  %v9200_v40 = vld [vmem:[#allocation9 + $0x60] ss:$16 sps:$4 sm:$0xff]  }
 0x2ad   :  { %8138 = vrcp.f32 %v1348_v37  ;;  %v9189_v37 = vld [vmem:[#allocation9 + $0x44] ss:$16 sps:$4 sm:$0xff]  }
 0x2ae   :  { %8140 = vrcp.f32 %v1361_v30 }
 0x2b3   :  { %v8131_v44 = vpop.eup %8130 }
 0x2b4   :  { %v8133_v45 = vpop.eup %8132  ;;  %v1369_v49 = vmul.f32 %v8131_v44, %v8125_v38  ;;  %v9192_v38 = vld [vmem:[#allocation9 + $0x40] ss:$16 sps:$4 sm:$0xff]  }
 0x2b5   :  { %v8135_v27 = vpop.eup %8134  ;;  %v1367_v29 = vmul.f32 %v8133_v45, %v9105_v6 }
 0x2b6   :  { %v8137_v26 = vpop.eup %8136  ;;  %v1362_v35 = vadd.f32 1.0, %v8135_v27 }
 0x2b7   :  { %v9156_v31 = vadd.f32 %v1369_v49, %v1367_v29  ;;  %v1370_v32 = vmul.f32 %v8137_v26, %v8129_v41  ;;  %v8139_v34 = vpop.eup %8138 }
 0x2b8   :  { %v1368_v43 = vmul.f32 %v8139_v34, %v9108_v18  ;;  %v8141_v7 = vpop.eup %8140  ;;  %v9169_v18 = vld [vmem:[#allocation9 + $0x4] ss:$16 sps:$4 sm:$0xff]  }
 0x2b9   :  { %8142 = vtanh.f32 %v9156_v31  ;;  %1931 = vmatprep.subr.bf16.mxu0 %v9169_v18 }
 0x2ba   :  { %v9160_v61 = vadd.f32 %v1370_v32, %v1368_v43  ;;  %8144 = vrcp.f32 %v1362_v35 }
 0x2bc   :  { %8146 = vtanh.f32 %v9160_v61 }
 0x2c3   :  { %v8143_v8 = vpop.eup %8142 }
 0x2c4   :  { %v8145_v6 = vpop.eup %8144  ;;  %v1375_v11 = vmul.f32 %v8143_v8, %v8141_v7 }
 0x2c6   :  { %v8147_v9 = vpop.eup %8146 }
 0x2c7   :  { %v1376_v21 = vmul.f32 %v8147_v9, %v8145_v6 }
 0x2c9   :  { %v9163_v22 = vpack.c.bf16 %v1376_v21, %v1375_v11 }
 0x2cb   :  { %1616 = vmatmul.mubr.bf16.vlgmr.msra.gmra.mrb[8].mxu0 %v9163_v22  ;;  %1659 = vmatmul.mubr.bf16.vlgmr.msra.gmra.mrb[8].mxu1 %v9163_v22 }
 0x2cc   :  { %1963 = vmatprep.mubr.bf16.mxu0 %v8791_v0  ;;  %2006 = vmatprep.mubr.bf16.mxu1 %v8791_v0 }
 0x2cd   :  { %1932 = vmatpush1.bf16.msra.mxu0 %v9173_v14  ;;  %1975 = vmatpush1.bf16.msra.mxu1 %v9175_v23 }
 0x2ce   :  { %1976 = vmatprep.subr.bf16.mxu1 %v8934_v39  ;;  %1933 = vmatprep.subr.bf16.mxu0 %v9181_v25  ;;  %v9197_v39 = vld [vmem:[#allocation9 + $0x64] ss:$16 sps:$4 sm:$0xff]  }
 0x2d1   :  { %1934 = vmatpush1.bf16.msra.mxu0 %v9184_v36  ;;  %1977 = vmatpush1.bf16.msra.mxu1 %v8945_v42 }
 0x2d2   :  { %1978 = vmatprep.subr.bf16.mxu1 %v8954_v46  ;;  %1935 = vmatprep.subr.bf16.mxu0 %v9189_v37 }
 0x2d5   :  { %1936 = vmatpush1.bf16.msra.mxu0 %v9192_v38  ;;  %1979 = vmatpush1.bf16.msra.mxu1 %v8957_v47 }
 0x2d6   :  { %1980 = vmatprep.subr.bf16.mxu1 %v8959_v48  ;;  %1937 = vmatprep.subr.bf16.mxu0 %v9197_v39 }
 0x2d9   :  { %1938 = vmatpush1.bf16.msra.mxu0 %v9200_v40  ;;  %1981 = vmatpush1.bf16.msra.mxu1 %v8971_v51 }
 0x2da   :  { %1939 = vmatprep.subr.bf16.mxu0 %v8967_v50  ;;  %1982 = vmatprep.subr.bf16.mxu1 %v8977_v54 }
 0x2dd   :  { %1940 = vmatpush1.bf16.msra.mxu0 %v8974_v53  ;;  %1983 = vmatpush1.bf16.msra.mxu1 %v8983_v56 }
 0x2de   :  { %1941 = vmatprep.subr.bf16.mxu0 %v8980_v55  ;;  %1984 = vmatprep.subr.bf16.mxu1 %v8985_v57 }
 0x2e1   :  { %1942 = vmatpush1.bf16.msra.mxu0 %v8987_v58  ;;  %1985 = vmatpush1.bf16.msra.mxu1 %v8993_v60 }
 0x2e2   :  { %1943 = vmatprep.subr.bf16.mxu0 %v8991_v59  ;;  %1986 = vmatprep.subr.bf16.mxu1 %v9002_v63 }
 0x2e5   :  { %1944 = vmatpush1.bf16.msra.mxu0 %v8999_v62  ;;  %1987 = vmatpush1.bf16.msra.mxu1 %v9006_v2 }
 0x2e6   :  { %1945 = vmatprep.subr.bf16.mxu0 %v9004_v1  ;;  %1988 = vmatprep.subr.bf16.mxu1 %v9009_v3 }
 0x2e9   :  { %1946 = vmatpush1.bf16.msra.mxu0 %v9013_v4  ;;  %1989 = vmatpush1.bf16.msra.mxu1 %v9017_v5 }
 0x2ea   :  { %2279 = vmatprep.subr.bf16.mxu0 %v9169_v18  ;;  %2322 = vmatprep.subr.bf16.mxu1 %v9171_v24 }
 0x39e   :  { %v1617_v42 = vpop.f32.mrb[8].mxu0  ;;  %v1660_v46 = vpop.f32.mrb[8].mxu1 }
 0x39f   :  { %v7506_v47 = vadd.f32 %v1617_v42, %v9081_v16  ;;  %v1619_v48 = vpop.f32.mrb[9].mxu0  ;;  %v1662_v50 = vpop.f32.mrb[9].mxu1  ;;  %v7538_v2 = vadd.f32 %v1660_v46, %v9099_v52 }
 0x3a0   :  { %v7507_v51 = vadd.f32 %v1619_v48, %v9085_v17  ;;  %v1621_v53 = vpop.f32.mrb[10].mxu0  ;;  %v1664_v54 = vpop.f32.mrb[10].mxu1  ;;  %v7539_v1 = vadd.f32 %v1662_v50, %v9094_v33 }
 0x3a1   :  { %v6966_v55 = vmul.f32 -1.442695, %v7506_v47  ;;  %v7508_v56 = vadd.f32 %v1621_v53, %v9081_v16  ;;  %v1623_v57 = vpop.f32.mrb[11].mxu0  ;;  %v1666_v58 = vpop.f32.mrb[11].mxu1  ;;  %v7540_v5 = vadd.f32 %v1664_v54, %v9099_v52 }
 0x3a2   :  { %v6968_v59 = vmul.f32 -1.442695, %v7507_v51  ;;  %v7509_v60 = vadd.f32 %v1623_v57, %v9085_v17  ;;  %v6970_v3 = vmul.f32 -1.442695, %v7539_v1  ;;  %v7541_v4 = vadd.f32 %v1666_v58, %v9094_v33  ;;  %v9265_v1 = vld [vmem:[#allocation9 + $0x6c] ss:$16 sps:$4 sm:$0xff]  }
 0x3a3   :  { %8148 = vpow2.f32 %v6966_v55  ;;  %v6967_v62 = vmul.f32 -1.442695, %v7508_v56 }
 0x3a4   :  { %8150 = vpow2.f32 %v6968_v59  ;;  %v6969_v63 = vmul.f32 -1.442695, %v7509_v60  ;;  %v6971_v49 = vmul.f32 -1.442695, %v7541_v4  ;;  %v9255_v60 = vld [vmem:[#allocation9 + $0x28] ss:$16 sps:$4 sm:$0xff]  }
 0x3a5   :  { %8152 = vpow2.f32 %v6967_v62  ;;  %v9259_v62 = vld [vmem:[#allocation9 + $0x4c] ss:$16 sps:$4 sm:$0xff]  }
 0x3a6   :  { %8154 = vpow2.f32 %v6969_v63  ;;  %v9261_v63 = vld [vmem:[#allocation9 + $0x48] ss:$16 sps:$4 sm:$0xff]   ;;  %v9273_v4 = vld [vmem:[#allocation9 + $0x8c] ss:$16 sps:$4 sm:$0xff]  }
 0x3a7   :  { %8156 = vtanh.f32 %v7538_v2  ;;  %v9267_v2 = vld [vmem:[#allocation9 + $0x68] ss:$16 sps:$4 sm:$0xff]  }
 0x3a8   :  { %8158 = vpow2.f32 %v6970_v3  ;;  %v9271_v3 = vld [vmem:[#allocation9 + $0x84] ss:$16 sps:$4 sm:$0xff]  }
 0x3a9   :  { %8160 = vtanh.f32 %v7540_v5  ;;  %v9275_v5 = vld [vmem:[#allocation9 + $0x80] ss:$16 sps:$4 sm:$0xff]  }
 0x3ad   :  { %v8149_v41 = vpop.eup %8148 }
 0x3ae   :  { %v8151_v44 = vpop.eup %8150  ;;  %v1683_v45 = vadd.f32 1.0, %v8149_v41  ;;  %v9277_v41 = vld [vmem:[#allocation9 + $0x88] ss:$16 sps:$4 sm:$0xff]  }
 0x3af   :  { %v1695_v27 = vadd.f32 1.0, %v8151_v44  ;;  %v8153_v29 = vpop.eup %8152  ;;  %v9281_v44 = vld [vmem:[#allocation9 + $0xa4] ss:$16 sps:$4 sm:$0xff]  }
 0x3b0   :  { %8162 = vrcp.f32 %v1683_v45  ;;  %v1684_v26 = vadd.f32 1.0, %v8153_v29  ;;  %v8155_v30 = vpop.eup %8154  ;;  %v9283_v45 = vld [vmem:[#allocation9 + $0xac] ss:$16 sps:$4 sm:$0xff]   ;;  %v9293_v29 = vld [vmem:[#allocation9 + $0xc4] ss:$16 sps:$4 sm:$0xff]  }
 0x3b1   :  { %8164 = vrcp.f32 %v1695_v27  ;;  %v1696_v32 = vadd.f32 1.0, %v8155_v30  ;;  %v8157_v34 = vpop.eup %8156  ;;  %v9289_v27 = vld [vmem:[#allocation9 + $0xa8] ss:$16 sps:$4 sm:$0xff]   ;;  %v9299_v30 = vld [vmem:[#allocation9 + $0xc0] ss:$16 sps:$4 sm:$0xff]  }
 0x3b2   :  { %8166 = vpow2.f32 %v6971_v49  ;;  %v8159_v35 = vpop.eup %8158  ;;  %v9287_v49 = vld [vmem:[#allocation9 + $0xa0] ss:$16 sps:$4 sm:$0xff]  }
 0x3b3   :  { %8168 = vrcp.f32 %v1684_v26  ;;  %v8161_v43 = vpop.eup %8160  ;;  %v1709_v42 = vadd.f32 1.0, %v8159_v35  ;;  %v9295_v26 = vld [vmem:[#allocation9 + $0xcc] ss:$16 sps:$4 sm:$0xff]  }
 0x3b4   :  { %8170 = vrcp.f32 %v1696_v32  ;;  %v9301_v32 = vld [vmem:[#allocation9 + $0xc8] ss:$16 sps:$4 sm:$0xff]   ;;  %v9307_v35 = vld [vmem:[#allocation9 + $0xec] ss:$16 sps:$4 sm:$0xff]  }
 0x3b5   :  { %8172 = vrcp.f32 %v1709_v42 }
 0x3ba   :  { %v8163_v7 = vpop.eup %8162 }
 0x3bb   :  { %v8165_v8 = vpop.eup %8164  ;;  %v1717_v6 = vmul.f32 %v8163_v7, %v8157_v34  ;;  %v9305_v34 = vld [vmem:[#allocation9 + $0xe4] ss:$16 sps:$4 sm:$0xff]   ;;  %v9313_v7 = vld [vmem:[#allocation9 + $0xe8] ss:$16 sps:$4 sm:$0xff]  }
 0x3bc   :  { %v8167_v9 = vpop.eup %8166  ;;  %v1715_v11 = vmul.f32 %v8165_v8, %v9156_v31 }
 0x3bd   :  { %v8169_v21 = vpop.eup %8168  ;;  %v1710_v50 = vadd.f32 1.0, %v8167_v9 }
 0x3be   :  { %v9232_v46 = vadd.f32 %v1717_v6, %v1715_v11  ;;  %v1718_v47 = vmul.f32 %v8169_v21, %v8161_v43  ;;  %v8171_v48 = vpop.eup %8170  ;;  %v9311_v43 = vld [vmem:[#allocation9 + $0xe0] ss:$16 sps:$4 sm:$0xff]  }
 0x3bf   :  { %v1716_v51 = vmul.f32 %v8171_v48, %v9160_v61  ;;  %v8173_v54 = vpop.eup %8172  ;;  %v9253_v61 = vld [vmem:[#allocation9 + $0x2c] ss:$16 sps:$4 sm:$0xff]  }
 0x3c0   :  { %8174 = vtanh.f32 %v9232_v46 }
 0x3c1   :  { %v9236_v53 = vadd.f32 %v1718_v47, %v1716_v51  ;;  %8176 = vrcp.f32 %v1710_v50 }
 0x3c3   :  { %8178 = vtanh.f32 %v9236_v53 }
 0x3ca   :  { %v8175_v55 = vpop.eup %8174 }
 0x3cb   :  { %v8177_v31 = vpop.eup %8176  ;;  %v1723_v57 = vmul.f32 %v8175_v55, %v8173_v54 }
 0x3cd   :  { %v8179_v56 = vpop.eup %8178 }
 0x3ce   :  { %v1724_v58 = vmul.f32 %v8179_v56, %v8177_v31 }
 0x3d0   :  { %v9239_v59 = vpack.c.bf16 %v1724_v58, %v1723_v57 }
 0x3d2   :  { %1964 = vmatmul.mubr.bf16.vlgmr.msra.gmra.mrb[12].mxu0 %v9239_v59  ;;  %2007 = vmatmul.mubr.bf16.vlgmr.msra.gmra.mrb[12].mxu1 %v9239_v59 }
 0x3d3   :  { %2280 = vmatpush1.bf16.msra.mxu0 %v9173_v14  ;;  %2323 = vmatpush1.bf16.msra.mxu1 %v9175_v23 }
 0x3d4   :  { %2281 = vmatprep.subr.bf16.mxu0 %v9181_v25  ;;  %2311 = vmatprep.mubr.bf16.mxu0 %v8791_v0 }
 0x3d5   :  { %2354 = vmatprep.mubr.bf16.mxu1 %v8791_v0  ;;  %2324 = vmatprep.subr.bf16.mxu1 %v9253_v61 }
 0x3d7   :  { %2282 = vmatpush1.bf16.msra.mxu0 %v9184_v36  ;;  %2325 = vmatpush1.bf16.msra.mxu1 %v9255_v60 }
 0x3d8   :  { %2283 = vmatprep.subr.bf16.mxu0 %v9189_v37  ;;  %2326 = vmatprep.subr.bf16.mxu1 %v9259_v62 }
 0x3db   :  { %2284 = vmatpush1.bf16.msra.mxu0 %v9192_v38  ;;  %2327 = vmatpush1.bf16.msra.mxu1 %v9261_v63 }
 0x3dc   :  { %2285 = vmatprep.subr.bf16.mxu0 %v9197_v39  ;;  %2328 = vmatprep.subr.bf16.mxu1 %v9265_v1 }
 0x3df   :  { %2286 = vmatpush1.bf16.msra.mxu0 %v9200_v40  ;;  %2329 = vmatpush1.bf16.msra.mxu1 %v9267_v2 }
 0x3e0   :  { %2287 = vmatprep.subr.bf16.mxu0 %v9271_v3  ;;  %2330 = vmatprep.subr.bf16.mxu1 %v9273_v4 }
 0x3e3   :  { %2288 = vmatpush1.bf16.msra.mxu0 %v9275_v5  ;;  %2331 = vmatpush1.bf16.msra.mxu1 %v9277_v41 }
 0x3e4   :  { %2289 = vmatprep.subr.bf16.mxu0 %v9281_v44  ;;  %2332 = vmatprep.subr.bf16.mxu1 %v9283_v45 }
 0x3e7   :  { %2290 = vmatpush1.bf16.msra.mxu0 %v9287_v49  ;;  %2333 = vmatpush1.bf16.msra.mxu1 %v9289_v27 }
 0x3e8   :  { %2291 = vmatprep.subr.bf16.mxu0 %v9293_v29  ;;  %2334 = vmatprep.subr.bf16.mxu1 %v9295_v26 }
 0x3eb   :  { %2292 = vmatpush1.bf16.msra.mxu0 %v9299_v30  ;;  %2335 = vmatpush1.bf16.msra.mxu1 %v9301_v32 }
 0x3ec   :  { %2293 = vmatprep.subr.bf16.mxu0 %v9305_v34  ;;  %2336 = vmatprep.subr.bf16.mxu1 %v9307_v35 }
 0x3ef   :  { %2294 = vmatpush1.bf16.msra.mxu0 %v9311_v43  ;;  %2337 = vmatpush1.bf16.msra.mxu1 %v9313_v7 }
 0x3f0   :  { %2627 = vmatprep.subr.bf16.mxu0 %v9169_v18  ;;  %2670 = vmatprep.subr.bf16.mxu1 %v9171_v24 }
 0x4a5   :  { %v1965_v8 = vpop.f32.mrb[12].mxu0  ;;  %v2008_v6 = vpop.f32.mrb[12].mxu1 }
 0x4a6   :  { %v7510_v9 = vadd.f32 %v1965_v8, %v9081_v16  ;;  %v1967_v11 = vpop.f32.mrb[13].mxu0  ;;  %v2010_v21 = vpop.f32.mrb[13].mxu1 }
 0x4a7   :  { %v7511_v42 = vadd.f32 %v1967_v11, %v9085_v17  ;;  %v1969_v47 = vpop.f32.mrb[14].mxu0  ;;  %v2012_v48 = vpop.f32.mrb[14].mxu1  ;;  %v7543_v8 = vadd.f32 %v2010_v21, %v9094_v33  ;;  %v7542_v11 = vadd.f32 %v2008_v6, %v9099_v52 }
 0x4a8   :  { %v7004_v50 = vmul.f32 -1.442695, %v7510_v9  ;;  %v7512_v51 = vadd.f32 %v1969_v47, %v9081_v16  ;;  %v1971_v54 = vpop.f32.mrb[15].mxu0  ;;  %v2014_v55 = vpop.f32.mrb[15].mxu1  ;;  %v7544_v47 = vadd.f32 %v2012_v48, %v9099_v52 }
 0x4a9   :  { %v7006_v31 = vmul.f32 -1.442695, %v7511_v42  ;;  %v7513_v56 = vadd.f32 %v1971_v54, %v9085_v17  ;;  %v7008_v28 = vmul.f32 -1.442695, %v7543_v8  ;;  %v7545_v9 = vadd.f32 %v2014_v55, %v9094_v33 }
 0x4aa   :  { %8180 = vpow2.f32 %v7004_v50  ;;  %v7005_v57 = vmul.f32 -1.442695, %v7512_v51 }
 0x4ab   :  { %8182 = vpow2.f32 %v7006_v31  ;;  %v7007_v58 = vmul.f32 -1.442695, %v7513_v56  ;;  %v7009_v50 = vmul.f32 -1.442695, %v7545_v9 }
 0x4ac   :  { %8184 = vpow2.f32 %v7005_v57 }
 0x4ad   :  { %8186 = vpow2.f32 %v7007_v58 }
 0x4ae   :  { %8188 = vtanh.f32 %v7542_v11 }
 0x4af   :  { %8190 = vpow2.f32 %v7008_v28 }
 0x4b0   :  { %8192 = vtanh.f32 %v7544_v47 }
 0x4b4   :  { %v8181_v20 = vpop.eup %8180 }
 0x4b5   :  { %v8183_v42 = vpop.eup %8182  ;;  %v2031_v15 = vadd.f32 1.0, %v8181_v20 }
 0x4b6   :  { %v2043_v51 = vadd.f32 1.0, %v8183_v42  ;;  %v8185_v54 = vpop.eup %8184 }
 0x4b7   :  { %8194 = vrcp.f32 %v2031_v15  ;;  %v2032_v21 = vadd.f32 1.0, %v8185_v54  ;;  %v8187_v31 = vpop.eup %8186 }
 0x4b8   :  { %8196 = vrcp.f32 %v2043_v51  ;;  %v2044_v6 = vadd.f32 1.0, %v8187_v31  ;;  %v8189_v55 = vpop.eup %8188 }
 0x4b9   :  { %8198 = vpow2.f32 %v7009_v50  ;;  %v8191_v56 = vpop.eup %8190 }
 0x4ba   :  { %8200 = vrcp.f32 %v2032_v21  ;;  %v8193_v48 = vpop.eup %8192  ;;  %v2057_v9 = vadd.f32 1.0, %v8191_v56 }
 0x4bb   :  { %8202 = vrcp.f32 %v2044_v6 }
 0x4bc   :  { %8204 = vrcp.f32 %v2057_v9 }
 0x4c1   :  { %v8195_v57 = vpop.eup %8194 }
 0x4c2   :  { %v8197_v58 = vpop.eup %8196  ;;  %v2065_v8 = vmul.f32 %v8195_v57, %v8189_v55 }
 0x4c3   :  { %v8199_v20 = vpop.eup %8198  ;;  %v2063_v28 = vmul.f32 %v8197_v58, %v9232_v46 }
 0x4c4   :  { %v8201_v11 = vpop.eup %8200  ;;  %v2058_v51 = vadd.f32 1.0, %v8199_v20 }
 0x4c5   :  { %v9330_v47 = vadd.f32 %v2065_v8, %v2063_v28  ;;  %v2066_v15 = vmul.f32 %v8201_v11, %v8193_v48  ;;  %v8203_v42 = vpop.eup %8202 }
 0x4c6   :  { %v2064_v50 = vmul.f32 %v8203_v42, %v9236_v53  ;;  %v8205_v21 = vpop.eup %8204 }
 0x4c7   :  { %8206 = vtanh.f32 %v9330_v47 }
 0x4c8   :  { %v9334_v54 = vadd.f32 %v2066_v15, %v2064_v50  ;;  %8208 = vrcp.f32 %v2058_v51 }
 0x4ca   :  { %8210 = vtanh.f32 %v9334_v54 }
 0x4d1   :  { %v8207_v31 = vpop.eup %8206 }
 0x4d2   :  { %v8209_v46 = vpop.eup %8208  ;;  %v2071_v55 = vmul.f32 %v8207_v31, %v8205_v21 }
 0x4d4   :  { %v8211_v6 = vpop.eup %8210 }
 0x4d5   :  { %v2072_v56 = vmul.f32 %v8211_v6, %v8209_v46 }
 0x4d7   :  { %v9337_v57 = vpack.c.bf16 %v2072_v56, %v2071_v55 }
 0x4d9   :  { %2312 = vmatmul.mubr.bf16.vlgmr.msra.gmra.mrb[16].mxu0 %v9337_v57  ;;  %2355 = vmatmul.mubr.bf16.vlgmr.msra.gmra.mrb[16].mxu1 %v9337_v57 }
 0x4da   :  { %2628 = vmatpush1.bf16.msra.mxu0 %v9173_v14  ;;  %2671 = vmatpush1.bf16.msra.mxu1 %v9175_v23 }
 0x4db   :  { %2629 = vmatprep.subr.bf16.mxu0 %v9181_v25  ;;  %2672 = vmatprep.subr.bf16.mxu1 %v9253_v61 }
 0x4dc   :  { %2659 = vmatprep.mubr.bf16.mxu0 %v8791_v0  ;;  %2702 = vmatprep.mubr.bf16.mxu1 %v8791_v0 }
 0x4de   :  { %2630 = vmatpush1.bf16.msra.mxu0 %v9184_v36  ;;  %2673 = vmatpush1.bf16.msra.mxu1 %v9255_v60 }
 0x4df   :  { %2631 = vmatprep.subr.bf16.mxu0 %v9189_v37  ;;  %2674 = vmatprep.subr.bf16.mxu1 %v9259_v62 }
 0x4e2   :  { %2632 = vmatpush1.bf16.msra.mxu0 %v9192_v38  ;;  %2675 = vmatpush1.bf16.msra.mxu1 %v9261_v63 }
 0x4e3   :  { %2633 = vmatprep.subr.bf16.mxu0 %v9197_v39  ;;  %2676 = vmatprep.subr.bf16.mxu1 %v9265_v1 }
 0x4e6   :  { %2634 = vmatpush1.bf16.msra.mxu0 %v9200_v40  ;;  %2677 = vmatpush1.bf16.msra.mxu1 %v9267_v2 }
 0x4e7   :  { %2635 = vmatprep.subr.bf16.mxu0 %v9271_v3  ;;  %2678 = vmatprep.subr.bf16.mxu1 %v9273_v4 }
 0x4ea   :  { %2636 = vmatpush1.bf16.msra.mxu0 %v9275_v5  ;;  %2679 = vmatpush1.bf16.msra.mxu1 %v9277_v41 }
 0x4eb   :  { %2637 = vmatprep.subr.bf16.mxu0 %v9281_v44  ;;  %2680 = vmatprep.subr.bf16.mxu1 %v9283_v45 }
 0x4ee   :  { %2638 = vmatpush1.bf16.msra.mxu0 %v9287_v49  ;;  %2681 = vmatpush1.bf16.msra.mxu1 %v9289_v27 }
 0x4ef   :  { %2639 = vmatprep.subr.bf16.mxu0 %v9293_v29  ;;  %2682 = vmatprep.subr.bf16.mxu1 %v9295_v26 }
 0x4f2   :  { %2640 = vmatpush1.bf16.msra.mxu0 %v9299_v30  ;;  %2683 = vmatpush1.bf16.msra.mxu1 %v9301_v32 }
 0x4f3   :  { %2641 = vmatprep.subr.bf16.mxu0 %v9305_v34  ;;  %2684 = vmatprep.subr.bf16.mxu1 %v9307_v35 }
 0x4f6   :  { %2642 = vmatpush1.bf16.msra.mxu0 %v9311_v43  ;;  %2685 = vmatpush1.bf16.msra.mxu1 %v9313_v7 }
 0x4f7   :  { %2975 = vmatprep.subr.bf16.mxu0 %v9169_v18  ;;  %3018 = vmatprep.subr.bf16.mxu1 %v9171_v24 }
 0x5ac   :  { %v2313_v53 = vpop.f32.mrb[16].mxu0  ;;  %v2356_v48 = vpop.f32.mrb[16].mxu1 }
 0x5ad   :  { %v7514_v58 = vadd.f32 %v2313_v53, %v9081_v16  ;;  %v2315_v8 = vpop.f32.mrb[17].mxu0  ;;  %v2358_v20 = vpop.f32.mrb[17].mxu1  ;;  %v7546_v6 = vadd.f32 %v2356_v48, %v9099_v52 }
 0x5ae   :  { %v7515_v28 = vadd.f32 %v2315_v8, %v9085_v17  ;;  %v2317_v11 = vpop.f32.mrb[18].mxu0  ;;  %v2360_v9 = vpop.f32.mrb[18].mxu1  ;;  %v7547_v46 = vadd.f32 %v2358_v20, %v9094_v33 }
 0x5af   :  { %v7042_v15 = vmul.f32 -1.442695, %v7514_v58  ;;  %v7516_v42 = vadd.f32 %v2317_v11, %v9081_v16  ;;  %v2319_v51 = vpop.f32.mrb[19].mxu0  ;;  %v2362_v50 = vpop.f32.mrb[19].mxu1  ;;  %v7548_v53 = vadd.f32 %v2360_v9, %v9099_v52 }
 0x5b0   :  { %v7044_v21 = vmul.f32 -1.442695, %v7515_v28  ;;  %v7517_v18 = vadd.f32 %v2319_v51, %v9085_v17  ;;  %v7046_v55 = vmul.f32 -1.442695, %v7547_v46  ;;  %v7549_v56 = vadd.f32 %v2362_v50, %v9094_v33 }
 0x5b1   :  { %8212 = vpow2.f32 %v7042_v15  ;;  %v7043_v24 = vmul.f32 -1.442695, %v7516_v42 }
 0x5b2   :  { %8214 = vpow2.f32 %v7044_v21  ;;  %v7045_v31 = vmul.f32 -1.442695, %v7517_v18  ;;  %v7047_v11 = vmul.f32 -1.442695, %v7549_v56 }
 0x5b3   :  { %8216 = vpow2.f32 %v7043_v24 }
 0x5b4   :  { %8218 = vpow2.f32 %v7045_v31 }
 0x5b5   :  { %8220 = vtanh.f32 %v7546_v6 }
 0x5b6   :  { %8222 = vpow2.f32 %v7046_v55 }
 0x5b7   :  { %8224 = vtanh.f32 %v7548_v53 }
 0x5bb   :  { %v8213_v58 = vpop.eup %8212 }
 0x5bc   :  { %v8215_v8 = vpop.eup %8214  ;;  %v2379_v28 = vadd.f32 1.0, %v8213_v58 }
 0x5bd   :  { %v2391_v15 = vadd.f32 1.0, %v8215_v8  ;;  %v8217_v42 = vpop.eup %8216 }
 0x5be   :  { %8226 = vrcp.f32 %v2379_v28  ;;  %v2380_v20 = vadd.f32 1.0, %v8217_v42  ;;  %v8219_v51 = vpop.eup %8218 }
 0x5bf   :  { %8228 = vrcp.f32 %v2391_v15  ;;  %v2392_v48 = vadd.f32 1.0, %v8219_v51  ;;  %v8221_v50 = vpop.eup %8220 }
 0x5c0   :  { %8230 = vpow2.f32 %v7047_v11  ;;  %v8223_v21 = vpop.eup %8222 }
 0x5c1   :  { %8232 = vrcp.f32 %v2380_v20  ;;  %v8225_v9 = vpop.eup %8224  ;;  %v2405_v56 = vadd.f32 1.0, %v8223_v21 }
 0x5c2   :  { %8234 = vrcp.f32 %v2392_v48 }
 0x5c3   :  { %8236 = vrcp.f32 %v2405_v56 }
 0x5c8   :  { %v8227_v18 = vpop.eup %8226 }
 0x5c9   :  { %v8229_v24 = vpop.eup %8228  ;;  %v2413_v31 = vmul.f32 %v8227_v18, %v8221_v50 }
 0x5ca   :  { %v8231_v46 = vpop.eup %8230  ;;  %v2411_v6 = vmul.f32 %v8229_v24, %v9330_v47 }
 0x5cb   :  { %v8233_v55 = vpop.eup %8232  ;;  %v2406_v28 = vadd.f32 1.0, %v8231_v46 }
 0x5cc   :  { %v9384_v53 = vadd.f32 %v2413_v31, %v2411_v6  ;;  %v2414_v58 = vmul.f32 %v8233_v55, %v8225_v9  ;;  %v8235_v8 = vpop.eup %8234 }
 0x5cd   :  { %v2412_v11 = vmul.f32 %v8235_v8, %v9334_v54  ;;  %v8237_v42 = vpop.eup %8236 }
 0x5ce   :  { %8238 = vtanh.f32 %v9384_v53 }
 0x5cf   :  { %v9388_v15 = vadd.f32 %v2414_v58, %v2412_v11  ;;  %8240 = vrcp.f32 %v2406_v28 }
 0x5d1   :  { %8242 = vtanh.f32 %v9388_v15 }
 0x5d8   :  { %v8239_v20 = vpop.eup %8238 }
 0x5d9   :  { %v8241_v47 = vpop.eup %8240  ;;  %v2419_v48 = vmul.f32 %v8239_v20, %v8237_v42 }
 0x5db   :  { %v8243_v51 = vpop.eup %8242 }
 0x5dc   :  { %v2420_v50 = vmul.f32 %v8243_v51, %v8241_v47 }
 0x5de   :  { %v9391_v21 = vpack.c.bf16 %v2420_v50, %v2419_v48 }
 0x5e0   :  { %2660 = vmatmul.mubr.bf16.vlgmr.msra.gmra.mrb[20].mxu0 %v9391_v21  ;;  %2703 = vmatmul.mubr.bf16.vlgmr.msra.gmra.mrb[20].mxu1 %v9391_v21 }
 0x5e1   :  { %2976 = vmatpush1.bf16.msra.mxu0 %v9173_v14  ;;  %3019 = vmatpush1.bf16.msra.mxu1 %v9175_v23 }
 0x5e2   :  { %2977 = vmatprep.subr.bf16.mxu0 %v9181_v25  ;;  %3020 = vmatprep.subr.bf16.mxu1 %v9253_v61 }
 0x5e3   :  { %3007 = vmatprep.mubr.bf16.mxu0 %v8791_v0  ;;  %3050 = vmatprep.mubr.bf16.mxu1 %v8791_v0 }
 0x5e5   :  { %2978 = vmatpush1.bf16.msra.mxu0 %v9184_v36  ;;  %3021 = vmatpush1.bf16.msra.mxu1 %v9255_v60 }
 0x5e6   :  { %2979 = vmatprep.subr.bf16.mxu0 %v9189_v37  ;;  %3022 = vmatprep.subr.bf16.mxu1 %v9259_v62 }
 0x5e9   :  { %2980 = vmatpush1.bf16.msra.mxu0 %v9192_v38  ;;  %3023 = vmatpush1.bf16.msra.mxu1 %v9261_v63 }
 0x5ea   :  { %2981 = vmatprep.subr.bf16.mxu0 %v9197_v39  ;;  %3024 = vmatprep.subr.bf16.mxu1 %v9265_v1 }
 0x5ed   :  { %2982 = vmatpush1.bf16.msra.mxu0 %v9200_v40  ;;  %3025 = vmatpush1.bf16.msra.mxu1 %v9267_v2 }
 0x5ee   :  { %2983 = vmatprep.subr.bf16.mxu0 %v9271_v3  ;;  %3026 = vmatprep.subr.bf16.mxu1 %v9273_v4 }
 0x5f1   :  { %2984 = vmatpush1.bf16.msra.mxu0 %v9275_v5  ;;  %3027 = vmatpush1.bf16.msra.mxu1 %v9277_v41 }
 0x5f2   :  { %2985 = vmatprep.subr.bf16.mxu0 %v9281_v44  ;;  %3028 = vmatprep.subr.bf16.mxu1 %v9283_v45 }
 0x5f5   :  { %2986 = vmatpush1.bf16.msra.mxu0 %v9287_v49  ;;  %3029 = vmatpush1.bf16.msra.mxu1 %v9289_v27 }
 0x5f6   :  { %2987 = vmatprep.subr.bf16.mxu0 %v9293_v29  ;;  %3030 = vmatprep.subr.bf16.mxu1 %v9295_v26 }
 0x5f9   :  { %2988 = vmatpush1.bf16.msra.mxu0 %v9299_v30  ;;  %3031 = vmatpush1.bf16.msra.mxu1 %v9301_v32 }
 0x5fa   :  { %2989 = vmatprep.subr.bf16.mxu0 %v9305_v34  ;;  %3032 = vmatprep.subr.bf16.mxu1 %v9307_v35 }
 0x5fd   :  { %2990 = vmatpush1.bf16.msra.mxu0 %v9311_v43  ;;  %3033 = vmatpush1.bf16.msra.mxu1 %v9313_v7 }
 0x6b3   :  { %v2661_v14 = vpop.f32.mrb[20].mxu0  ;;  %v2704_v23 = vpop.f32.mrb[20].mxu1 }
 0x6b4   :  { %v7518_v25 = vadd.f32 %v2661_v14, %v9081_v16  ;;  %v2663_v36 = vpop.f32.mrb[21].mxu0  ;;  %v2706_v37 = vpop.f32.mrb[21].mxu1  ;;  %v7550_v58 = vadd.f32 %v2704_v23, %v9099_v52 }
 0x6b5   :  { %v7519_v38 = vadd.f32 %v2663_v36, %v9085_v17  ;;  %v2665_v39 = vpop.f32.mrb[22].mxu0  ;;  %v2708_v40 = vpop.f32.mrb[22].mxu1  ;;  %v7551_v56 = vadd.f32 %v2706_v37, %v9094_v33 }
 0x6b6   :  { %v7080_v54 = vmul.f32 -1.442695, %v7518_v25  ;;  %v7520_v9 = vadd.f32 %v2665_v39, %v9081_v16  ;;  %v2667_v18 = vpop.f32.mrb[23].mxu0  ;;  %v2710_v24 = vpop.f32.mrb[23].mxu1  ;;  %v7552_v11 = vadd.f32 %v2708_v40, %v9099_v52 }
 0x6b7   :  { %v7082_v31 = vmul.f32 -1.442695, %v7519_v38  ;;  %v7521_v46 = vadd.f32 %v2667_v18, %v9085_v17  ;;  %v7084_v8 = vmul.f32 -1.442695, %v7551_v56  ;;  %v7553_v28 = vadd.f32 %v2710_v24, %v9094_v33 }
 0x6b8   :  { %8244 = vpow2.f32 %v7080_v54  ;;  %v7081_v6 = vmul.f32 -1.442695, %v7520_v9 }
 0x6b9   :  { %8246 = vpow2.f32 %v7082_v31  ;;  %v7083_v55 = vmul.f32 -1.442695, %v7521_v46  ;;  %v7085_v51 = vmul.f32 -1.442695, %v7553_v28 }
 0x6ba   :  { %8248 = vpow2.f32 %v7081_v6 }
 0x6bb   :  { %8250 = vpow2.f32 %v7083_v55 }
 0x6bc   :  { %8252 = vtanh.f32 %v7550_v58 }
 0x6bd   :  { %8254 = vpow2.f32 %v7084_v8 }
 0x6be   :  { %8256 = vtanh.f32 %v7552_v11 }
 0x6c2   :  { %v8245_v42 = vpop.eup %8244 }
 0x6c3   :  { %v8247_v20 = vpop.eup %8246  ;;  %v2727_v47 = vadd.f32 1.0, %v8245_v42 }
 0x6c4   :  { %v2739_v48 = vadd.f32 1.0, %v8247_v20  ;;  %v8249_v50 = vpop.eup %8248 }
 0x6c5   :  { %8258 = vrcp.f32 %v2727_v47  ;;  %v2728_v14 = vadd.f32 1.0, %v8249_v50  ;;  %v8251_v25 = vpop.eup %8250  ;;  %v7922_v50 = vld [vmem:[#allocation9] ss:$16 sps:$4 sm:$0xff]  }
 0x6c6   :  { %8260 = vrcp.f32 %v2739_v48  ;;  %v2740_v23 = vadd.f32 1.0, %v8251_v25  ;;  %v8253_v36 = vpop.eup %8252  ;;  %v7927_v48 = vld [vmem:[#allocation9 + $0xc] ss:$16 sps:$4 sm:$0xff]   ;;  %v7930_v25 = vld [vmem:[#allocation9 + $0x24] ss:$16 sps:$4 sm:$0xff]  }
 0x6c7   :  { %8262 = vpow2.f32 %v7085_v51  ;;  %v8255_v37 = vpop.eup %8254  ;;  %3366 = vmatprep.subr.bf16.mxu1 %v7927_v48 }
 0x6c8   :  { %8264 = vrcp.f32 %v2728_v14  ;;  %v8257_v38 = vpop.eup %8256  ;;  %v2753_v31 = vadd.f32 1.0, %v8255_v37  ;;  %v7925_v14 = vld [vmem:[#allocation9 + $0x8] ss:$16 sps:$4 sm:$0xff]   ;;  %v7931_v37 = vld [vmem:[#allocation9 + $0x40] ss:$16 sps:$4 sm:$0xff]  }
 0x6c9   :  { %8266 = vrcp.f32 %v2740_v23  ;;  %v7928_v23 = vld [vmem:[#allocation9 + $0x20] ss:$16 sps:$4 sm:$0xff]  }
 0x6ca   :  { %8268 = vrcp.f32 %v2753_v31 }
 0x6cf   :  { %v8259_v39 = vpop.eup %8258 }
 0x6d0   :  { %v8261_v40 = vpop.eup %8260  ;;  %v2761_v54 = vmul.f32 %v8259_v39, %v8253_v36  ;;  %v7933_v36 = vld [vmem:[#allocation9 + $0x44] ss:$16 sps:$4 sm:$0xff]   ;;  %v7934_v39 = vld [vmem:[#allocation9 + $0x60] ss:$16 sps:$4 sm:$0xff]  }
 0x6d1   :  { %v8263_v9 = vpop.eup %8262  ;;  %v2759_v18 = vmul.f32 %v8261_v40, %v9384_v53 }
 0x6d2   :  { %v8265_v24 = vpop.eup %8264  ;;  %v2754_v56 = vadd.f32 1.0, %v8263_v9 }
 0x6d3   :  { %v9436_v46 = vadd.f32 %v2761_v54, %v2759_v18  ;;  %v2762_v6 = vmul.f32 %v8265_v24, %v8257_v38  ;;  %v8267_v55 = vpop.eup %8266  ;;  %v7936_v38 = vld [vmem:[#allocation9 + $0x64] ss:$16 sps:$4 sm:$0xff]  }
 0x6d4   :  { %v2760_v58 = vmul.f32 %v8267_v55, %v9388_v15  ;;  %v8269_v28 = vpop.eup %8268  ;;  %v7924_v15 = vld [vmem:[#allocation9 + $0x4] ss:$16 sps:$4 sm:$0xff]  }
 0x6d5   :  { %8270 = vtanh.f32 %v9436_v46  ;;  %3323 = vmatprep.subr.bf16.mxu0 %v7924_v15 }
 0x6d6   :  { %v9440_v8 = vadd.f32 %v2762_v6, %v2760_v58  ;;  %8272 = vrcp.f32 %v2754_v56 }
 0x6d8   :  { %8274 = vtanh.f32 %v9440_v8 }
 0x6df   :  { %v8271_v11 = vpop.eup %8270 }
 0x6e0   :  { %v8273_v53 = vpop.eup %8272  ;;  %v2767_v20 = vmul.f32 %v8271_v11, %v8269_v28 }
 0x6e2   :  { %v8275_v42 = vpop.eup %8274 }
 0x6e3   :  { %v2768_v47 = vmul.f32 %v8275_v42, %v8273_v53 }
 0x6e5   :  { %v9443_v51 = vpack.c.bf16 %v2768_v47, %v2767_v20 }
 0x6e7   :  { %3008 = vmatmul.mubr.bf16.vlgmr.msra.gmra.mrb[24].mxu0 %v9443_v51  ;;  %3051 = vmatmul.mubr.bf16.vlgmr.msra.gmra.mrb[24].mxu1 %v9443_v51 }
 0x6e8   :  { %3355 = vmatprep.mubr.bf16.mxu0 %v8791_v0  ;;  %3398 = vmatprep.mubr.bf16.mxu1 %v8791_v0 }
 0x6e9   :  { %3324 = vmatpush1.bf16.msra.mxu0 %v7922_v50  ;;  %3367 = vmatpush1.bf16.msra.mxu1 %v7925_v14 }
 0x6ea   :  { %3368 = vmatprep.subr.bf16.mxu1 %v9253_v61  ;;  %3325 = vmatprep.subr.bf16.mxu0 %v7930_v25  ;;  %v7939_v61 = vld [vmem:[#allocation10 + $0x4] ss:$16 sps:$4 sm:$0xff]  }
 0x6ed   :  { %3326 = vmatpush1.bf16.msra.mxu0 %v7928_v23  ;;  %3369 = vmatpush1.bf16.msra.mxu1 %v9255_v60  ;;  %v7942_v60 = vld [vmem:[#allocation10 + $0xc] ss:$16 sps:$4 sm:$0xff]  }
 0x6ee   :  { %3370 = vmatprep.subr.bf16.mxu1 %v9259_v62  ;;  %3327 = vmatprep.subr.bf16.mxu0 %v7933_v36 }
 0x6f1   :  { %3328 = vmatpush1.bf16.msra.mxu0 %v7931_v37  ;;  %3371 = vmatpush1.bf16.msra.mxu1 %v9261_v63 }
 0x6f2   :  { %3372 = vmatprep.subr.bf16.mxu1 %v9265_v1  ;;  %3329 = vmatprep.subr.bf16.mxu0 %v7936_v38 }
 0x6f5   :  { %3330 = vmatpush1.bf16.msra.mxu0 %v7934_v39  ;;  %3373 = vmatpush1.bf16.msra.mxu1 %v9267_v2 }
 0x6f6   :  { %3331 = vmatprep.subr.bf16.mxu0 %v9271_v3  ;;  %3374 = vmatprep.subr.bf16.mxu1 %v9273_v4 }
 0x6f9   :  { %3332 = vmatpush1.bf16.msra.mxu0 %v9275_v5  ;;  %3375 = vmatpush1.bf16.msra.mxu1 %v9277_v41 }
 0x6fa   :  { %3333 = vmatprep.subr.bf16.mxu0 %v9281_v44  ;;  %3376 = vmatprep.subr.bf16.mxu1 %v9283_v45 }
 0x6fd   :  { %3334 = vmatpush1.bf16.msra.mxu0 %v9287_v49  ;;  %3377 = vmatpush1.bf16.msra.mxu1 %v9289_v27 }
 0x6fe   :  { %3335 = vmatprep.subr.bf16.mxu0 %v9293_v29  ;;  %3378 = vmatprep.subr.bf16.mxu1 %v9295_v26 }
 0x701   :  { %3336 = vmatpush1.bf16.msra.mxu0 %v9299_v30  ;;  %3379 = vmatpush1.bf16.msra.mxu1 %v9301_v32 }
 0x702   :  { %3337 = vmatprep.subr.bf16.mxu0 %v9305_v34  ;;  %3380 = vmatprep.subr.bf16.mxu1 %v9307_v35 }
 0x705   :  { %3338 = vmatpush1.bf16.msra.mxu0 %v9311_v43  ;;  %3381 = vmatpush1.bf16.msra.mxu1 %v9313_v7 }
 0x706   :  { %3694 = vmatprep.subr.bf16.mxu0 %v7939_v61  ;;  %3807 = vmatprep.subr.bf16.mxu1 %v7942_v60 }
 0x7ba   :  { %v3009_v62 = vpop.f32.mrb[24].mxu0  ;;  %v3052_v63 = vpop.f32.mrb[24].mxu1 }
 0x7bb   :  { %v7522_v1 = vadd.f32 %v3009_v62, %v9081_v16  ;;  %v3011_v2 = vpop.f32.mrb[25].mxu0  ;;  %v3054_v3 = vpop.f32.mrb[25].mxu1  ;;  %v7554_v35 = vadd.f32 %v3052_v63, %v9099_v52 }
 0x7bc   :  { %v7523_v4 = vadd.f32 %v3011_v2, %v9085_v17  ;;  %v3013_v5 = vpop.f32.mrb[26].mxu0  ;;  %v3056_v41 = vpop.f32.mrb[26].mxu1  ;;  %v7555_v34 = vadd.f32 %v3054_v3, %v9094_v33  ;;  %v7937_v2 = vld [vmem:[#allocation10] ss:$16 sps:$4 sm:$0xff]   ;;  %v7940_v3 = vld [vmem:[#allocation10 + $0x8] ss:$16 sps:$4 sm:$0xff]  }
 0x7bd   :  { %v7118_v44 = vmul.f32 -1.442695, %v7522_v1  ;;  %v7524_v45 = vadd.f32 %v3013_v5, %v9081_v16  ;;  %v3015_v49 = vpop.f32.mrb[27].mxu0  ;;  %v3058_v27 = vpop.f32.mrb[27].mxu1  ;;  %v7556_v40 = vadd.f32 %v3056_v41, %v9099_v52  ;;  %v7945_v5 = vld [vmem:[#allocation10 + $0x24] ss:$16 sps:$4 sm:$0xff]  }
 0x7be   :  { %v7120_v29 = vmul.f32 -1.442695, %v7523_v4  ;;  %v7525_v26 = vadd.f32 %v3015_v49, %v9085_v17  ;;  %v7122_v43 = vmul.f32 -1.442695, %v7555_v34  ;;  %v7557_v7 = vadd.f32 %v3058_v27, %v9094_v33  ;;  %v7943_v41 = vld [vmem:[#allocation10 + $0x20] ss:$16 sps:$4 sm:$0xff]  }
 0x7bf   :  { %8276 = vpow2.f32 %v7118_v44  ;;  %v7119_v30 = vmul.f32 -1.442695, %v7524_v45  ;;  %v7946_v44 = vld [vmem:[#allocation10 + $0x28] ss:$16 sps:$4 sm:$0xff]   ;;  %v7951_v45 = vld [vmem:[#allocation10 + $0x44] ss:$16 sps:$4 sm:$0xff]  }
 0x7c0   :  { %8278 = vpow2.f32 %v7120_v29  ;;  %v7121_v32 = vmul.f32 -1.442695, %v7525_v26  ;;  %v7123_v24 = vmul.f32 -1.442695, %v7557_v7  ;;  %v7954_v49 = vld [vmem:[#allocation10 + $0x4c] ss:$16 sps:$4 sm:$0xff]  }
 0x7c1   :  { %8280 = vpow2.f32 %v7119_v30  ;;  %v7949_v27 = vld [vmem:[#allocation10 + $0x40] ss:$16 sps:$4 sm:$0xff]   ;;  %v7952_v29 = vld [vmem:[#allocation10 + $0x48] ss:$16 sps:$4 sm:$0xff]   ;;  %v7957_v26 = vld [vmem:[#allocation10 + $0x64] ss:$16 sps:$4 sm:$0xff]  }
 0x7c2   :  { %8282 = vpow2.f32 %v7121_v32  ;;  %v7960_v30 = vld [vmem:[#allocation10 + $0x6c] ss:$16 sps:$4 sm:$0xff]   ;;  %v7955_v32 = vld [vmem:[#allocation10 + $0x60] ss:$16 sps:$4 sm:$0xff]   ;;  %v7958_v34 = vld [vmem:[#allocation10 + $0x68] ss:$16 sps:$4 sm:$0xff]  }
 0x7c3   :  { %8284 = vtanh.f32 %v7554_v35  ;;  %v7963_v35 = vld [vmem:[#allocation10 + $0x84] ss:$16 sps:$4 sm:$0xff]   ;;  %v7961_v7 = vld [vmem:[#allocation10 + $0x80] ss:$16 sps:$4 sm:$0xff]  }
 0x7c4   :  { %8286 = vpow2.f32 %v7122_v43  ;;  %v7966_v43 = vld [vmem:[#allocation10 + $0x8c] ss:$16 sps:$4 sm:$0xff]  }
 0x7c5   :  { %8288 = vtanh.f32 %v7556_v40  ;;  %v7964_v40 = vld [vmem:[#allocation10 + $0x88] ss:$16 sps:$4 sm:$0xff]  }
 0x7c9   :  { %v8277_v54 = vpop.eup %8276 }
 0x7ca   :  { %v8279_v9 = vpop.eup %8278  ;;  %v3075_v18 = vadd.f32 1.0, %v8277_v54  ;;  %v7969_v54 = vld [vmem:[#allocation10 + $0xa4] ss:$16 sps:$4 sm:$0xff]  }
 0x7cb   :  { %v3087_v31 = vadd.f32 1.0, %v8279_v9  ;;  %v8281_v6 = vpop.eup %8280  ;;  %v7972_v9 = vld [vmem:[#allocation10 + $0xac] ss:$16 sps:$4 sm:$0xff]  }
 0x7cc   :  { %8290 = vrcp.f32 %v3075_v18  ;;  %v3076_v55 = vadd.f32 1.0, %v8281_v6  ;;  %v8283_v56 = vpop.eup %8282  ;;  %v7967_v18 = vld [vmem:[#allocation10 + $0xa0] ss:$16 sps:$4 sm:$0xff]   ;;  %v7978_v6 = vld [vmem:[#allocation10 + $0xcc] ss:$16 sps:$4 sm:$0xff]  }
 0x7cd   :  { %8292 = vrcp.f32 %v3087_v31  ;;  %v3088_v58 = vadd.f32 1.0, %v8283_v56  ;;  %v8285_v28 = vpop.eup %8284  ;;  %v7975_v31 = vld [vmem:[#allocation10 + $0xc4] ss:$16 sps:$4 sm:$0xff]   ;;  %v7976_v56 = vld [vmem:[#allocation10 + $0xc8] ss:$16 sps:$4 sm:$0xff]  }
 0x7ce   :  { %8294 = vpow2.f32 %v7123_v24  ;;  %v8287_v11 = vpop.eup %8286  ;;  %v7970_v24 = vld [vmem:[#allocation10 + $0xa8] ss:$16 sps:$4 sm:$0xff]  }
 0x7cf   :  { %8296 = vrcp.f32 %v3076_v55  ;;  %v8289_v53 = vpop.eup %8288  ;;  %v3101_v14 = vadd.f32 1.0, %v8287_v11  ;;  %v7973_v55 = vld [vmem:[#allocation10 + $0xc0] ss:$16 sps:$4 sm:$0xff]  }
 0x7d0   :  { %8298 = vrcp.f32 %v3088_v58  ;;  %v7981_v58 = vld [vmem:[#allocation10 + $0xe4] ss:$16 sps:$4 sm:$0xff]   ;;  %v7979_v11 = vld [vmem:[#allocation10 + $0xe0] ss:$16 sps:$4 sm:$0xff]  }
 0x7d1   :  { %8300 = vrcp.f32 %v3101_v14  ;;  %v9554_v14 = vld [vmem:[#allocation12 + $0x48] ss:$16 sps:$4 sm:$0xff]  }
 0x7d6   :  { %v8291_v42 = vpop.eup %8290 }
 0x7d7   :  { %v8293_v20 = vpop.eup %8292  ;;  %v3109_v47 = vmul.f32 %v8291_v42, %v8285_v28  ;;  %v7984_v28 = vld [vmem:[#allocation10 + $0xec] ss:$16 sps:$4 sm:$0xff]   ;;  %v9493_v42 = vld [vmem:[#allocation12 + $0x4] ss:$16 sps:$4 sm:$0xff]  }
 0x7d8   :  { %v8295_v15 = vpop.eup %8294  ;;  %v3107_v48 = vmul.f32 %v8293_v20, %v9436_v46  ;;  %v9495_v20 = vld [vmem:[#allocation12] ss:$16 sps:$4 sm:$0xff]  }
 0x7d9   :  { %v8297_v50 = vpop.eup %8296  ;;  %v3102_v37 = vadd.f32 1.0, %v8295_v15  ;;  %v9547_v15 = vld [vmem:[#allocation12 + $0x4c] ss:$16 sps:$4 sm:$0xff]  }
 0x7da   :  { %v9480_v25 = vadd.f32 %v3109_v47, %v3107_v48  ;;  %v3110_v23 = vmul.f32 %v8297_v50, %v8289_v53  ;;  %v8299_v36 = vpop.eup %8298  ;;  %v7982_v53 = vld [vmem:[#allocation10 + $0xe8] ss:$16 sps:$4 sm:$0xff]   ;;  %v9545_v47 = vld [vmem:[#allocation12 + $0x44] ss:$16 sps:$4 sm:$0xff]   ;;  %v9549_v48 = vld [vmem:[#allocation12 + $0x40] ss:$16 sps:$4 sm:$0xff]  }
 0x7db   :  { %v3108_v38 = vmul.f32 %v8299_v36, %v9440_v8  ;;  %v8301_v61 = vpop.eup %8300  ;;  %v7948_v8 = vld [vmem:[#allocation10 + $0x2c] ss:$16 sps:$4 sm:$0xff]   ;;  %v9551_v50 = vld [vmem:[#allocation12 + $0x64] ss:$16 sps:$4 sm:$0xff]  }
 0x7dc   :  { %8302 = vtanh.f32 %v9480_v25  ;;  %v9560_v36 = vld [vmem:[#allocation12 + $0x6c] ss:$16 sps:$4 sm:$0xff]  }
 0x7dd   :  { %v9484_v39 = vadd.f32 %v3110_v23, %v3108_v38  ;;  %8304 = vrcp.f32 %v3102_v37  ;;  %v9558_v23 = vld [vmem:[#allocation12 + $0x60] ss:$16 sps:$4 sm:$0xff]   ;;  %v9563_v37 = vld [vmem:[#allocation12 + $0x84] ss:$16 sps:$4 sm:$0xff]   ;;  %v9566_v38 = vld [vmem:[#allocation12 + $0x68] ss:$16 sps:$4 sm:$0xff]  }
 0x7df   :  { %8306 = vtanh.f32 %v9484_v39 }
 0x7e6   :  { %v8303_v60 = vpop.eup %8302 }
 0x7e7   :  { %v8305_v46 = vpop.eup %8304  ;;  %v3115_v63 = vmul.f32 %v8303_v60, %v8301_v61  ;;  %v9569_v61 = vld [vmem:[#allocation12 + $0x8c] ss:$16 sps:$4 sm:$0xff]   ;;  %v9572_v60 = vld [vmem:[#allocation12 + $0x80] ss:$16 sps:$4 sm:$0xff]  }
 0x7e9   :  { %v8307_v62 = vpop.eup %8306 }
 0x7ea   :  { %v3116_v1 = vmul.f32 %v8307_v62, %v8305_v46  ;;  %v9575_v46 = vld [vmem:[#allocation12 + $0xa4] ss:$16 sps:$4 sm:$0xff]   ;;  %v9578_v62 = vld [vmem:[#allocation12 + $0x88] ss:$16 sps:$4 sm:$0xff]  }
 0x7ec   :  { %v9487_v4 = vpack.c.bf16 %v3116_v1, %v3115_v63  ;;  %v9581_v63 = vld [vmem:[#allocation12 + $0xac] ss:$16 sps:$4 sm:$0xff]   ;;  %v9584_v1 = vld [vmem:[#allocation12 + $0xa0] ss:$16 sps:$4 sm:$0xff]  }
 0x7ee   :  { %3356 = vmatmul.mubr.bf16.vlgmr.msra.gmra.mrb[28].mxu0 %v9487_v4  ;;  %3399 = vmatmul.mubr.bf16.vlgmr.msra.gmra.mrb[28].mxu1 %v9487_v4 }
 0x7ef   :  { %3695 = vmatpush1.bf16.msra.mxu0 %v7937_v2  ;;  %3808 = vmatpush1.bf16.msra.mxu1 %v7940_v3  ;;  %v9587_v2 = vld [vmem:[#allocation12 + $0xc4] ss:$16 sps:$4 sm:$0xff]   ;;  %v9590_v3 = vld [vmem:[#allocation12 + $0xa8] ss:$16 sps:$4 sm:$0xff]  }
 0x7f0   :  { %3696 = vmatprep.subr.bf16.mxu0 %v7945_v5  ;;  %3809 = vmatprep.subr.bf16.mxu1 %v7948_v8  ;;  %v9598_v5 = vld [vmem:[#allocation12 + $0xe4] ss:$16 sps:$4 sm:$0xff]   ;;  %v9600_v8 = vld [vmem:[#allocation12 + $0xc8] ss:$16 sps:$4 sm:$0xff]  }
 0x7f1   :  { %3726 = vmatprep.mubr.bf16.mxu0 %v8791_v0  ;;  %3839 = vmatprep.mubr.bf16.mxu1 %v8791_v0 }
 0x7f3   :  { %3697 = vmatpush1.bf16.msra.mxu0 %v7943_v41  ;;  %3810 = vmatpush1.bf16.msra.mxu1 %v7946_v44  ;;  %v9602_v41 = vld [vmem:[#allocation12 + $0xcc] ss:$16 sps:$4 sm:$0xff]  }
 0x7f4   :  { %3698 = vmatprep.subr.bf16.mxu0 %v7951_v45  ;;  %3811 = vmatprep.subr.bf16.mxu1 %v7954_v49  ;;  %v9604_v44 = vld [vmem:[#allocation12 + $0xec] ss:$16 sps:$4 sm:$0xff]   ;;  %v9607_v45 = vld [vmem:[#allocation12 + $0xe0] ss:$16 sps:$4 sm:$0xff]   ;;  %v9612_v49 = vld [vmem:[#allocation12 + $0xe8] ss:$16 sps:$4 sm:$0xff]  }
 0x7f7   :  { %3699 = vmatpush1.bf16.msra.mxu0 %v7949_v27  ;;  %3812 = vmatpush1.bf16.msra.mxu1 %v7952_v29 }
 0x7f8   :  { %3700 = vmatprep.subr.bf16.mxu0 %v7957_v26  ;;  %3813 = vmatprep.subr.bf16.mxu1 %v7960_v30 }
 0x7fb   :  { %3701 = vmatpush1.bf16.msra.mxu0 %v7955_v32  ;;  %3814 = vmatpush1.bf16.msra.mxu1 %v7958_v34 }
 0x7fc   :  { %3702 = vmatprep.subr.bf16.mxu0 %v7963_v35  ;;  %3815 = vmatprep.subr.bf16.mxu1 %v7966_v43 }
 0x7ff   :  { %3703 = vmatpush1.bf16.msra.mxu0 %v7961_v7  ;;  %3816 = vmatpush1.bf16.msra.mxu1 %v7964_v40 }
 0x800   :  { %3704 = vmatprep.subr.bf16.mxu0 %v7969_v54  ;;  %3817 = vmatprep.subr.bf16.mxu1 %v7972_v9 }
 0x803   :  { %3705 = vmatpush1.bf16.msra.mxu0 %v7967_v18  ;;  %3818 = vmatpush1.bf16.msra.mxu1 %v7970_v24 }
 0x804   :  { %3706 = vmatprep.subr.bf16.mxu0 %v7975_v31  ;;  %3819 = vmatprep.subr.bf16.mxu1 %v7978_v6 }
 0x807   :  { %3707 = vmatpush1.bf16.msra.mxu0 %v7973_v55  ;;  %3820 = vmatpush1.bf16.msra.mxu1 %v7976_v56 }
 0x808   :  { %3708 = vmatprep.subr.bf16.mxu0 %v7981_v58  ;;  %3821 = vmatprep.subr.bf16.mxu1 %v7984_v28 }
 0x80b   :  { %3709 = vmatpush1.bf16.msra.mxu0 %v7979_v11  ;;  %3822 = vmatpush1.bf16.msra.mxu1 %v7982_v53 }
 0x80c   :  { %4191 = vmatprep.subr.bf16.mxu0 %v9493_v42 }
 0x80e   :  { %3727 = vmatmul.mubr.bf16.vlgmr.msra.gmra.mrb[32].mxu0 %v9111_v19  ;;  %3840 = vmatmul.mubr.bf16.vlgmr.msra.gmra.mrb[32].mxu1 %v9111_v19  ;;  %v9527_v19 = vld [vmem:[#allocation12 + $0xc] ss:$16 sps:$4 sm:$0xff]  }
 0x80f   :  { %3736 = vmatprep.mubr.bf16.mxu0 %v8791_v0  ;;  %3849 = vmatprep.mubr.bf16.mxu1 %v8791_v0 }
 0x810   :  { %4192 = vmatpush1.bf16.msra.mxu0 %v9495_v20  ;;  %4234 = vmatprep.subr.bf16.mxu1 %v9527_v19 }
 0x816   :  { %3737 = vmatmul.mubr.bf16.gmra.mrb[36].mxu0 %v9163_v22  ;;  %3850 = vmatmul.mubr.bf16.gmra.mrb[36].mxu1 %v9163_v22  ;;  %v9529_v22 = vld [vmem:[#allocation12 + $0x8] ss:$16 sps:$4 sm:$0xff]  }
 0x817   :  { %3746 = vmatprep.mubr.bf16.mxu0 %v8791_v0  ;;  %3859 = vmatprep.mubr.bf16.mxu1 %v8791_v0 }
 0x818   :  { %4235 = vmatpush1.bf16.msra.mxu1 %v9529_v22 }
 0x81e   :  { %3747 = vmatmul.mubr.bf16.gmra.mrb[40].mxu0 %v9239_v59  ;;  %3860 = vmatmul.mubr.bf16.gmra.mrb[40].mxu1 %v9239_v59  ;;  %v9533_v59 = vld [vmem:[#allocation12 + $0x24] ss:$16 sps:$4 sm:$0xff]  }
 0x81f   :  { %3756 = vmatprep.mubr.bf16.mxu0 %v8791_v0  ;;  %3869 = vmatprep.mubr.bf16.mxu1 %v8791_v0 }
 0x820   :  { %4193 = vmatprep.subr.bf16.mxu0 %v9533_v59 }
 0x826   :  { %3757 = vmatmul.mubr.bf16.gmra.mrb[44].mxu0 %v9337_v57  ;;  %3870 = vmatmul.mubr.bf16.gmra.mrb[44].mxu1 %v9337_v57  ;;  %v9535_v57 = vld [vmem:[#allocation12 + $0x2c] ss:$16 sps:$4 sm:$0xff]  }
 0x827   :  { %3766 = vmatprep.mubr.bf16.mxu0 %v8791_v0  ;;  %3879 = vmatprep.mubr.bf16.mxu1 %v8791_v0 }
 0x828   :  { %4236 = vmatprep.subr.bf16.mxu1 %v9535_v57 }
 0x82e   :  { %3767 = vmatmul.mubr.bf16.gmra.mrb[48].mxu0 %v9391_v21  ;;  %3880 = vmatmul.mubr.bf16.gmra.mrb[48].mxu1 %v9391_v21  ;;  %v9537_v21 = vld [vmem:[#allocation12 + $0x20] ss:$16 sps:$4 sm:$0xff]  }
 0x82f   :  { %3776 = vmatprep.mubr.bf16.mxu0 %v8791_v0  ;;  %3889 = vmatprep.mubr.bf16.mxu1 %v8791_v0 }
 0x830   :  { %4194 = vmatpush1.bf16.msra.mxu0 %v9537_v21 }
 0x831   :  { %4195 = vmatprep.subr.bf16.mxu0 %v9545_v47 }
 0x834   :  { %4196 = vmatpush1.bf16.msra.mxu0 %v9549_v48 }
 0x835   :  { %4197 = vmatprep.subr.bf16.mxu0 %v9551_v50 }
 0x836   :  { %3777 = vmatmul.mubr.bf16.gmra.mrb[52].mxu0 %v9443_v51  ;;  %3890 = vmatmul.mubr.bf16.gmra.mrb[52].mxu1 %v9443_v51  ;;  %v9539_v51 = vld [vmem:[#allocation12 + $0x28] ss:$16 sps:$4 sm:$0xff]  }
 0x837   :  { %3786 = vmatprep.mubr.bf16.mxu0 %v8791_v0  ;;  %3899 = vmatprep.mubr.bf16.mxu1 %v8791_v0 }
 0x838   :  { %4237 = vmatpush1.bf16.msra.mxu1 %v9539_v51  ;;  %4198 = vmatpush1.bf16.msra.mxu0 %v9558_v23 }
 0x839   :  { %4238 = vmatprep.subr.bf16.mxu1 %v9547_v15  ;;  %4199 = vmatprep.subr.bf16.mxu0 %v9563_v37 }
 0x83c   :  { %4239 = vmatpush1.bf16.msra.mxu1 %v9554_v14  ;;  %4200 = vmatpush1.bf16.msra.mxu0 %v9572_v60 }
 0x83d   :  { %4240 = vmatprep.subr.bf16.mxu1 %v9560_v36  ;;  %4201 = vmatprep.subr.bf16.mxu0 %v9575_v46 }
 0x83e   :  { %3787 = vmatmul.mubr.bf16.gmra.mrb[56].mxu0 %v9487_v4  ;;  %3900 = vmatmul.mubr.bf16.gmra.mrb[56].mxu1 %v9487_v4  ;;  %v9594_v4 = vld [vmem:[#allocation12 + $0xc0] ss:$16 sps:$4 sm:$0xff]  }
 0x83f   :  { %3796 = vmatprep.mubr.bf16.mxu0 %v8791_v0  ;;  %3909 = vmatprep.mubr.bf16.mxu1 %v8791_v0 }
 0x840   :  { %4241 = vmatpush1.bf16.msra.mxu1 %v9566_v38  ;;  %4202 = vmatpush1.bf16.msra.mxu0 %v9584_v1 }
 0x841   :  { %4242 = vmatprep.subr.bf16.mxu1 %v9569_v61  ;;  %4203 = vmatprep.subr.bf16.mxu0 %v9587_v2 }
 0x844   :  { %4243 = vmatpush1.bf16.msra.mxu1 %v9578_v62  ;;  %4204 = vmatpush1.bf16.msra.mxu0 %v9594_v4 }
 0x845   :  { %4244 = vmatprep.subr.bf16.mxu1 %v9581_v63  ;;  %4205 = vmatprep.subr.bf16.mxu0 %v9598_v5 }
 0x848   :  { %4245 = vmatpush1.bf16.msra.mxu1 %v9590_v3  ;;  %4206 = vmatpush1.bf16.msra.mxu0 %v9607_v45 }
 0x849   :  { %4246 = vmatprep.subr.bf16.mxu1 %v9602_v41  ;;  %4536 = vmatprep.subr.bf16.mxu0 %v9493_v42 }
 0x84c   :  { %4247 = vmatpush1.bf16.msra.mxu1 %v9600_v8 }
 0x84d   :  { %4248 = vmatprep.subr.bf16.mxu1 %v9604_v44 }
 0x850   :  { %4249 = vmatpush1.bf16.msra.mxu1 %v9612_v49 }
 0x851   :  { %4579 = vmatprep.subr.bf16.mxu1 %v9527_v19 }
 0x8c1   :  { %v3357_v27 = vpop.f32.mrb[28].mxu0  ;;  %v3400_v29 = vpop.f32.mrb[28].mxu1 }
 0x8c2   :  { %v7526_v26 = vadd.f32 %v3357_v27, %v9081_v16  ;;  %v3359_v30 = vpop.f32.mrb[29].mxu0  ;;  %v3402_v32 = vpop.f32.mrb[29].mxu1  ;;  %v7558_v56 = vadd.f32 %v3400_v29, %v9099_v52 }
 0x8c3   :  { %v7527_v34 = vadd.f32 %v3359_v30, %v9085_v17  ;;  %v3361_v35 = vpop.f32.mrb[30].mxu0  ;;  %v3404_v43 = vpop.f32.mrb[30].mxu1  ;;  %v7559_v55 = vadd.f32 %v3402_v32, %v9094_v33 }
 0x8c4   :  { %v7156_v7 = vmul.f32 -1.442695, %v7526_v26  ;;  %v7528_v40 = vadd.f32 %v3361_v35, %v9081_v16  ;;  %v3363_v54 = vpop.f32.mrb[31].mxu0  ;;  %v3406_v9 = vpop.f32.mrb[31].mxu1  ;;  %v7560_v16 = vadd.f32 %v3404_v43, %v9099_v52 }
 0x8c5   :  { %v7158_v18 = vmul.f32 -1.442695, %v7527_v34  ;;  %v7529_v24 = vadd.f32 %v3363_v54, %v9085_v17  ;;  %v7160_v58 = vmul.f32 -1.442695, %v7559_v55  ;;  %v7561_v28 = vadd.f32 %v3406_v9, %v9094_v33 }
 0x8c6   :  { %8308 = vpow2.f32 %v7156_v7  ;;  %v7157_v31 = vmul.f32 -1.442695, %v7528_v40 }
 0x8c7   :  { %8310 = vpow2.f32 %v7158_v18  ;;  %v7159_v6 = vmul.f32 -1.442695, %v7529_v24  ;;  %v7161_v17 = vmul.f32 -1.442695, %v7561_v28 }
 0x8c8   :  { %8312 = vpow2.f32 %v7157_v31 }
 0x8c9   :  { %8314 = vpow2.f32 %v7159_v6 }
 0x8ca   :  { %8316 = vtanh.f32 %v7558_v56 }
 0x8cb   :  { %8318 = vpow2.f32 %v7160_v58 }
 0x8cc   :  { %8320 = vtanh.f32 %v7560_v16 }
 0x8d0   :  { %v8309_v11 = vpop.eup %8308 }
 0x8d1   :  { %v8311_v53 = vpop.eup %8310  ;;  %v3423_v27 = vadd.f32 1.0, %v8309_v11 }
 0x8d2   :  { %v3435_v26 = vadd.f32 1.0, %v8311_v53  ;;  %v8313_v30 = vpop.eup %8312 }
 0x8d3   :  { %8322 = vrcp.f32 %v3423_v27  ;;  %v3424_v32 = vadd.f32 1.0, %v8313_v30  ;;  %v8315_v34 = vpop.eup %8314  ;;  %v10142_v30 = vsub.s32 1, %v9072_v12 }
 0x8d4   :  { %8324 = vrcp.f32 %v3435_v26  ;;  %v3436_v29 = vadd.f32 1.0, %v8315_v34  ;;  %v8317_v33 = vpop.eup %8316 }
 0x8d5   :  { %8326 = vpow2.f32 %v7161_v17  ;;  %v8319_v35 = vpop.eup %8318 }
 0x8d6   :  { %8328 = vrcp.f32 %v3424_v32  ;;  %v8321_v52 = vpop.eup %8320  ;;  %v3449_v54 = vadd.f32 1.0, %v8319_v35 }
 0x8d7   :  { %8330 = vrcp.f32 %v3436_v29 }
 0x8d8   :  { %8332 = vrcp.f32 %v3449_v54 }
 0x8dd   :  { %v8323_v43 = vpop.eup %8322 }
 0x8de   :  { %v8325_v7 = vpop.eup %8324  ;;  %v3457_v40 = vmul.f32 %v8323_v43, %v8317_v33 }
 0x8df   :  { %v8327_v9 = vpop.eup %8326  ;;  %v3455_v18 = vmul.f32 %v8325_v7, %v9480_v25 }
 0x8e0   :  { %v8329_v24 = vpop.eup %8328  ;;  %v3450_v56 = vadd.f32 1.0, %v8327_v9 }
 0x8e1   :  { %v3459_v31 = vadd.f32 %v3457_v40, %v3455_v18  ;;  %v3458_v6 = vmul.f32 %v8329_v24, %v8321_v52  ;;  %v8331_v55 = vpop.eup %8330  ;;  %v10143_v24 = vsub.s32 3, %v9072_v12 }
 0x8e2   :  { %v3456_v58 = vmul.f32 %v8331_v55, %v9484_v39  ;;  %v8333_v16 = vpop.eup %8332 }
 0x8e3   :  { %3470 = vst [vmem:[#allocation16] sm:$0xff] %v3459_v31  ;;  %8334 = vtanh.f32 %v3459_v31 }
 0x8e4   :  { %v3460_v28 = vadd.f32 %v3458_v6, %v3456_v58  ;;  %8336 = vrcp.f32 %v3450_v56  ;;  %v10144_v58 = vsub.s32 2, %v9072_v12 }
 0x8e6   :  { %3471 = vst [vmem:[#allocation16 + $0x8] sm:$0xff] %v3460_v28  ;;  %8338 = vtanh.f32 %v3460_v28 }
 0x8ed   :  { %v8335_v11 = vpop.eup %8334 }
 0x8ee   :  { %v3463_v53 = vmul.f32 %v8335_v11, %v8333_v16  ;;  %v8337_v27 = vpop.eup %8336 }
 0x8f0   :  { %3468 = vst [vmem:[#allocation14] sm:$0xff] %v3463_v53  ;;  %v8339_v25 = vpop.eup %8338 }
 0x8f1   :  { %v3464_v17 = vmul.f32 %v8339_v25, %v8337_v27 }
 0x8f3   :  { %v3465_v26 = vpack.c.bf16 %v3464_v17, %v3463_v53  ;;  %3469 = vst [vmem:[#allocation14 + $0x8] sm:$0xff] %v3464_v17 }
 0x8f5   :  { %3797 = vmatmul.mubr.bf16.gmra.mrb[60].mxu0 %v3465_v26  ;;  %3910 = vmatmul.mubr.bf16.gmra.mrb[60].mxu1 %v3465_v26 }
 0x8f6   :  { %4223 = vmatprep.mubr.bf16.mxu0 %v8791_v0  ;;  %4266 = vmatprep.mubr.bf16.mxu1 %v8791_v0 }
 0x8fd   :  { %4224 = vmatmul.mubr.bf16.vlgmr.msra.gmra.mrb[32].mxu0 %v8792_v10  ;;  %4267 = vmatmul.mubr.bf16.vlgmr.msra.gmra.mrb[32].mxu1 %v8792_v10  ;;  %v3512_v10 = vld [vmem:[%s10135_s6] sm:$0xf]  ;;  %s8793_s6 = smov [#allocation14]  }
 0x8fe   :  { %4537 = vmatpush1.bf16.msra.mxu0 %v9495_v20  ;;  %4580 = vmatpush1.bf16.msra.mxu1 %v9529_v22  ;;  %v9672_v39 = vrot.slane %v3512_v10, %v164_v13  ;;  %v9676_v32 = vrot.slane %v3512_v10, %v10142_v30  ;;  %v9683_v31 = vrot.slane %v3512_v10, %v10143_v24  ;;  %s6778_s30 = sshll.u32 %s8793_s6, 4  ;;  %s6779_s30 = int_to_ptr.vmem [resolvable:$true] %s6778_s30 }
 0x8ff   :  { %4538 = vmatprep.subr.bf16.mxu0 %v9533_v59  ;;  %4581 = vmatprep.subr.bf16.mxu1 %v9535_v57  ;;  %v9688_v28 = vrot.slane %v3512_v10, %v10144_v58  ;;  %s8706_s10 = scalar_lea.vmem %s6779_s30, 512  ;;  %p8711_p13 = scmp.lt.s32.totalorder %s6779_s30, %s6779_s30 }
 0x900   :  { %4568 = vmatprep.mubr.bf16.mxu0 %v8791_v0  ;;  %4611 = vmatprep.mubr.bf16.mxu1 %v8791_v0  ;;  %p8707_p12 = scmp.ne.s32.totalorder %s6779_s30, %s8706_s10  ;;  %p8712_p0 = scmp.lt.s32.totalorder %s8706_s10, %s8706_s10 }
 0x902   :  { %4539 = vmatpush1.bf16.msra.mxu0 %v9537_v21  ;;  %4582 = vmatpush1.bf16.msra.mxu1 %v9539_v51  ;;  %p8713_p1 = por %p8712_p0, %p8711_p13 }
 0x903   :  { %4540 = vmatprep.subr.bf16.mxu0 %v9545_v47  ;;  %4583 = vmatprep.subr.bf16.mxu1 %v9547_v15 }
 0x904   :  { %p8714_p2 = pnand %p8713_p1, %p8707_p12 }
 0x906   :  { %4541 = vmatpush1.bf16.msra.mxu0 %v9549_v48  ;;  %4584 = vmatpush1.bf16.msra.mxu1 %v9554_v14 }
 0x907   :  { %4542 = vmatprep.subr.bf16.mxu0 %v9551_v50  ;;  %4585 = vmatprep.subr.bf16.mxu1 %v9560_v36 }
 0x90a   :  { %4543 = vmatpush1.bf16.msra.mxu0 %v9558_v23  ;;  %4586 = vmatpush1.bf16.msra.mxu1 %v9566_v38 }
 0x90b   :  { %4544 = vmatprep.subr.bf16.mxu0 %v9563_v37  ;;  %4587 = vmatprep.subr.bf16.mxu1 %v9569_v61 }
 0x90e   :  { %4545 = vmatpush1.bf16.msra.mxu0 %v9572_v60  ;;  %4588 = vmatpush1.bf16.msra.mxu1 %v9578_v62 }
 0x90f   :  { %4546 = vmatprep.subr.bf16.mxu0 %v9575_v46  ;;  %4589 = vmatprep.subr.bf16.mxu1 %v9581_v63 }
 0x912   :  { %4547 = vmatpush1.bf16.msra.mxu0 %v9584_v1  ;;  %4590 = vmatpush1.bf16.msra.mxu1 %v9590_v3 }
 0x913   :  { %4548 = vmatprep.subr.bf16.mxu0 %v9587_v2  ;;  %4591 = vmatprep.subr.bf16.mxu1 %v9602_v41 }
 0x916   :  { %4549 = vmatpush1.bf16.msra.mxu0 %v9594_v4  ;;  %4592 = vmatpush1.bf16.msra.mxu1 %v9600_v8 }
 0x917   :  { %4550 = vmatprep.subr.bf16.mxu0 %v9598_v5  ;;  %4593 = vmatprep.subr.bf16.mxu1 %v9604_v44 }
 0x91a   :  { %4551 = vmatpush1.bf16.msra.mxu0 %v9607_v45  ;;  %4594 = vmatpush1.bf16.msra.mxu1 %v9612_v49 }
 0x91b   :  { %4882 = vmatprep.subr.bf16.mxu0 %v9493_v42  ;;  %4925 = vmatprep.subr.bf16.mxu1 %v9527_v19 }
 0x9d0   :  { %v4225_v34 = vpop.f32.mrb[32].mxu0  ;;  %v4268_v29 = vpop.f32.mrb[32].mxu1 }
 0x9d1   :  { %v7562_v33 = vadd.f32 %v4225_v34, %v9672_v39  ;;  %v4227_v35 = vpop.f32.mrb[33].mxu0  ;;  %v4270_v42 = vpop.f32.mrb[33].mxu1  ;;  %v7594_v11 = vadd.f32 %v4268_v29, %v9688_v28 }
 0x9d2   :  { %v7563_v52 = vadd.f32 %v4227_v35, %v9676_v32  ;;  %v4229_v43 = vpop.f32.mrb[34].mxu0  ;;  %v4272_v7 = vpop.f32.mrb[34].mxu1  ;;  %v7595_v16 = vadd.f32 %v4270_v42, %v9683_v31 }
 0x9d3   :  { %v7226_v40 = vmul.f32 -1.442695, %v7562_v33  ;;  %v7564_v54 = vadd.f32 %v4229_v43, %v9672_v39  ;;  %v4231_v9 = vpop.f32.mrb[35].mxu0  ;;  %v4274_v13 = vpop.f32.mrb[35].mxu1  ;;  %v7596_v25 = vadd.f32 %v4272_v7, %v9688_v28 }
 0x9d4   :  { %v7228_v18 = vmul.f32 -1.442695, %v7563_v52  ;;  %v7565_v6 = vadd.f32 %v4231_v9, %v9676_v32  ;;  %v7230_v53 = vmul.f32 -1.442695, %v7595_v16  ;;  %v7597_v27 = vadd.f32 %v4274_v13, %v9683_v31 }
 0x9d5   :  { %8340 = vpow2.f32 %v7226_v40  ;;  %v7227_v55 = vmul.f32 -1.442695, %v7564_v54 }
 0x9d6   :  { %8342 = vpow2.f32 %v7228_v18  ;;  %v7229_v56 = vmul.f32 -1.442695, %v7565_v6  ;;  %v7231_v34 = vmul.f32 -1.442695, %v7597_v27 }
 0x9d7   :  { %8344 = vpow2.f32 %v7227_v55 }
 0x9d8   :  { %8346 = vpow2.f32 %v7229_v56 }
 0x9d9   :  { %8348 = vtanh.f32 %v7594_v11 }
 0x9da   :  { %8350 = vpow2.f32 %v7230_v53 }
 0x9db   :  { %8352 = vtanh.f32 %v7596_v25 }
 0x9df   :  { %v8341_v17 = vpop.eup %8340 }
 0x9e0   :  { %v8343_v26 = vpop.eup %8342  ;;  %v4291_v30 = vadd.f32 1.0, %v8341_v17 }
 0x9e1   :  { %v4303_v12 = vadd.f32 1.0, %v8343_v26  ;;  %v8345_v10 = vpop.eup %8344 }
 0x9e2   :  { %8354 = vrcp.f32 %v4291_v30  ;;  %v4292_v33 = vadd.f32 1.0, %v8345_v10  ;;  %v8347_v35 = vpop.eup %8346 }
 0x9e3   :  { %8356 = vrcp.f32 %v4303_v12  ;;  %v4304_v29 = vadd.f32 1.0, %v8347_v35  ;;  %v8349_v42 = vpop.eup %8348 }
 0x9e4   :  { %8358 = vpow2.f32 %v7231_v34  ;;  %v8351_v52 = vpop.eup %8350 }
 0x9e5   :  { %8360 = vrcp.f32 %v4292_v33  ;;  %v8353_v43 = vpop.eup %8352  ;;  %v4317_v9 = vadd.f32 1.0, %v8351_v52 }
 0x9e6   :  { %8362 = vrcp.f32 %v4304_v29 }
 0x9e7   :  { %8364 = vrcp.f32 %v4317_v9 }
 0x9ec   :  { %v8355_v7 = vpop.eup %8354 }
 0x9ed   :  { %v8357_v40 = vpop.eup %8356  ;;  %v4325_v54 = vmul.f32 %v8355_v7, %v8349_v42 }
 0x9ee   :  { %v8359_v13 = vpop.eup %8358  ;;  %v4323_v18 = vmul.f32 0.0, %v8357_v40 }
 0x9ef   :  { %v8361_v24 = vpop.eup %8360  ;;  %v4318_v58 = vadd.f32 1.0, %v8359_v13 }
 0x9f0   :  { %v9694_v6 = vadd.f32 %v4325_v54, %v4323_v18  ;;  %v4326_v55 = vmul.f32 %v8361_v24, %v8353_v43  ;;  %v8363_v56 = vpop.eup %8362 }
 0x9f1   :  { %v4324_v16 = vmul.f32 0.0, %v8363_v56  ;;  %v8365_v53 = vpop.eup %8364 }
 0x9f2   :  { %8366 = vtanh.f32 %v9694_v6 }
 0x9f3   :  { %v9697_v11 = vadd.f32 %v4326_v55, %v4324_v16  ;;  %8368 = vrcp.f32 %v4318_v58 }
 0x9f5   :  { %8370 = vtanh.f32 %v9697_v11 }
 0x9fc   :  { %v8367_v27 = vpop.eup %8366 }
 0x9fd   :  { %v4331_v25 = vmul.f32 %v8367_v27, %v8365_v53  ;;  %v8369_v17 = vpop.eup %8368 }
 0x9ff   :  { %4333 = vst [vmem:[#allocation13] sm:$0xff] %v4331_v25  ;;  %v8371_v26 = vpop.eup %8370 }
 0xa00   :  { %v4332_v30 = vmul.f32 %v8371_v26, %v8369_v17 }
 0xa02   :  { %4334 = vst [vmem:[#allocation13 + $0x8] sm:$0xff] %v4332_v30  ;;  %v4343_v34 = vpack.c.bf16 %v4332_v30, %v4331_v25 }
 0xa04   :  { %4569 = vmatmul.mubr.bf16.vlgmr.msra.gmra.mrb[36].mxu0 %v4343_v34  ;;  %4612 = vmatmul.mubr.bf16.vlgmr.msra.gmra.mrb[36].mxu1 %v4343_v34 }
 0xa05   :  { %4883 = vmatpush1.bf16.msra.mxu0 %v9495_v20  ;;  %4926 = vmatpush1.bf16.msra.mxu1 %v9529_v22 }
 0xa06   :  { %4884 = vmatprep.subr.bf16.mxu0 %v9533_v59  ;;  %4927 = vmatprep.subr.bf16.mxu1 %v9535_v57 }
 0xa07   :  { %4914 = vmatprep.mubr.bf16.mxu0 %v8791_v0  ;;  %4957 = vmatprep.mubr.bf16.mxu1 %v8791_v0 }
 0xa09   :  { %4885 = vmatpush1.bf16.msra.mxu0 %v9537_v21  ;;  %4928 = vmatpush1.bf16.msra.mxu1 %v9539_v51 }
 0xa0a   :  { %4886 = vmatprep.subr.bf16.mxu0 %v9545_v47  ;;  %4929 = vmatprep.subr.bf16.mxu1 %v9547_v15 }
 0xa0d   :  { %4887 = vmatpush1.bf16.msra.mxu0 %v9549_v48  ;;  %4930 = vmatpush1.bf16.msra.mxu1 %v9554_v14 }
 0xa0e   :  { %4888 = vmatprep.subr.bf16.mxu0 %v9551_v50  ;;  %4931 = vmatprep.subr.bf16.mxu1 %v9560_v36 }
 0xa11   :  { %4889 = vmatpush1.bf16.msra.mxu0 %v9558_v23  ;;  %4932 = vmatpush1.bf16.msra.mxu1 %v9566_v38 }
 0xa12   :  { %4890 = vmatprep.subr.bf16.mxu0 %v9563_v37  ;;  %4933 = vmatprep.subr.bf16.mxu1 %v9569_v61 }
 0xa15   :  { %4891 = vmatpush1.bf16.msra.mxu0 %v9572_v60  ;;  %4934 = vmatpush1.bf16.msra.mxu1 %v9578_v62 }
 0xa16   :  { %4892 = vmatprep.subr.bf16.mxu0 %v9575_v46  ;;  %4935 = vmatprep.subr.bf16.mxu1 %v9581_v63 }
 0xa19   :  { %4893 = vmatpush1.bf16.msra.mxu0 %v9584_v1  ;;  %4936 = vmatpush1.bf16.msra.mxu1 %v9590_v3 }
 0xa1a   :  { %4894 = vmatprep.subr.bf16.mxu0 %v9587_v2  ;;  %4937 = vmatprep.subr.bf16.mxu1 %v9602_v41 }
 0xa1d   :  { %4895 = vmatpush1.bf16.msra.mxu0 %v9594_v4  ;;  %4938 = vmatpush1.bf16.msra.mxu1 %v9600_v8 }
 0xa1e   :  { %4896 = vmatprep.subr.bf16.mxu0 %v9598_v5  ;;  %4939 = vmatprep.subr.bf16.mxu1 %v9604_v44 }
 0xa21   :  { %4897 = vmatpush1.bf16.msra.mxu0 %v9607_v45  ;;  %4940 = vmatpush1.bf16.msra.mxu1 %v9612_v49 }
 0xa22   :  { %5271 = vmatprep.subr.bf16.mxu1 %v9527_v19 }
 0xad7   :  { %v4570_v20 = vpop.f32.mrb[36].mxu0  ;;  %v4613_v12 = vpop.f32.mrb[36].mxu1 }
 0xad8   :  { %v7566_v10 = vadd.f32 %v4570_v20, %v9672_v39  ;;  %v4572_v33 = vpop.f32.mrb[37].mxu0  ;;  %v4615_v35 = vpop.f32.mrb[37].mxu1  ;;  %v7598_v55 = vadd.f32 %v4613_v12, %v9688_v28 }
 0xad9   :  { %v7567_v29 = vadd.f32 %v4572_v33, %v9676_v32  ;;  %v4574_v42 = vpop.f32.mrb[38].mxu0  ;;  %v4617_v52 = vpop.f32.mrb[38].mxu1  ;;  %v7599_v24 = vadd.f32 %v4615_v35, %v9683_v31 }
 0xada   :  { %v7264_v43 = vmul.f32 -1.442695, %v7566_v10  ;;  %v7568_v7 = vadd.f32 %v4574_v42, %v9672_v39  ;;  %v4576_v40 = vpop.f32.mrb[39].mxu0  ;;  %v4619_v54 = vpop.f32.mrb[39].mxu1  ;;  %v7600_v16 = vadd.f32 %v4617_v52, %v9688_v28 }
 0xadb   :  { %v7266_v9 = vmul.f32 -1.442695, %v7567_v29  ;;  %v7569_v13 = vadd.f32 %v4576_v40, %v9676_v32  ;;  %v7268_v56 = vmul.f32 -1.442695, %v7599_v24  ;;  %v7601_v58 = vadd.f32 %v4619_v54, %v9683_v31 }
 0xadc   :  { %8372 = vpow2.f32 %v7264_v43  ;;  %v7265_v19 = vmul.f32 -1.442695, %v7568_v7 }
 0xadd   :  { %8374 = vpow2.f32 %v7266_v9  ;;  %v7267_v18 = vmul.f32 -1.442695, %v7569_v13  ;;  %v7269_v17 = vmul.f32 -1.442695, %v7601_v58 }
 0xade   :  { %8376 = vpow2.f32 %v7265_v19 }
 0xadf   :  { %8378 = vpow2.f32 %v7267_v18 }
 0xae0   :  { %8380 = vtanh.f32 %v7598_v55 }
 0xae1   :  { %8382 = vpow2.f32 %v7268_v56 }
 0xae2   :  { %8384 = vtanh.f32 %v7600_v16 }
 0xae6   :  { %v8373_v53 = vpop.eup %8372 }
 0xae7   :  { %v8375_v27 = vpop.eup %8374  ;;  %v4636_v25 = vadd.f32 1.0, %v8373_v53 }
 0xae8   :  { %v4648_v26 = vadd.f32 1.0, %v8375_v27  ;;  %v8377_v30 = vpop.eup %8376 }
 0xae9   :  { %8386 = vrcp.f32 %v4636_v25  ;;  %v4637_v34 = vadd.f32 1.0, %v8377_v30  ;;  %v8379_v20 = vpop.eup %8378 }
 0xaea   :  { %8388 = vrcp.f32 %v4648_v26  ;;  %v4649_v12 = vadd.f32 1.0, %v8379_v20  ;;  %v8381_v10 = vpop.eup %8380 }
 0xaeb   :  { %8390 = vpow2.f32 %v7269_v17  ;;  %v8383_v33 = vpop.eup %8382 }
 0xaec   :  { %8392 = vrcp.f32 %v4637_v34  ;;  %v8385_v35 = vpop.eup %8384  ;;  %v4662_v43 = vadd.f32 1.0, %v8383_v33 }
 0xaed   :  { %8394 = vrcp.f32 %v4649_v12 }
 0xaee   :  { %8396 = vrcp.f32 %v4662_v43 }
 0xaf3   :  { %v8387_v29 = vpop.eup %8386 }
 0xaf4   :  { %v8389_v42 = vpop.eup %8388  ;;  %v4670_v52 = vmul.f32 %v8387_v29, %v8381_v10 }
 0xaf5   :  { %v8391_v7 = vpop.eup %8390  ;;  %v4668_v40 = vmul.f32 %v8389_v42, %v9694_v6 }
 0xaf6   :  { %v8393_v54 = vpop.eup %8392  ;;  %v4663_v18 = vadd.f32 1.0, %v8391_v7 }
 0xaf7   :  { %v9742_v9 = vadd.f32 %v4670_v52, %v4668_v40  ;;  %v4671_v13 = vmul.f32 %v8393_v54, %v8385_v35  ;;  %v8395_v19 = vpop.eup %8394 }
 0xaf8   :  { %v4669_v24 = vmul.f32 %v8395_v19, %v9697_v11  ;;  %v8397_v56 = vpop.eup %8396 }
 0xaf9   :  { %8398 = vtanh.f32 %v9742_v9 }
 0xafa   :  { %v9746_v55 = vadd.f32 %v4671_v13, %v4669_v24  ;;  %8400 = vrcp.f32 %v4663_v18 }
 0xafc   :  { %8402 = vtanh.f32 %v9746_v55 }
 0xb03   :  { %v8399_v58 = vpop.eup %8398 }
 0xb04   :  { %v4676_v16 = vmul.f32 %v8399_v58, %v8397_v56  ;;  %v8401_v6 = vpop.eup %8400 }
 0xb06   :  { %4679 = vst [vmem:[#allocation13 + $0x10] sm:$0xff] %v4676_v16  ;;  %v8403_v53 = vpop.eup %8402 }
 0xb07   :  { %v4677_v27 = vmul.f32 %v8403_v53, %v8401_v6  ;;  %v9808_v53 = vld [vmem:[#allocation12 + $0x8] ss:$16 sps:$4 sm:$0xff]  }
 0xb09   :  { %4680 = vst [vmem:[#allocation13 + $0x18] sm:$0xff] %v4677_v27  ;;  %v4689_v25 = vpack.c.bf16 %v4677_v27, %v4676_v16  ;;  %v9812_v27 = vld [vmem:[#allocation12 + $0x24] ss:$16 sps:$4 sm:$0xff]  }
 0xb0b   :  { %4915 = vmatmul.mubr.bf16.vlgmr.msra.gmra.mrb[40].mxu0 %v4689_v25  ;;  %4958 = vmatmul.mubr.bf16.vlgmr.msra.gmra.mrb[40].mxu1 %v4689_v25  ;;  %v9814_v25 = vld [vmem:[#allocation12 + $0x2c] ss:$16 sps:$4 sm:$0xff]  }
 0xb0c   :  { %5272 = vmatpush1.bf16.msra.mxu1 %v9529_v22  ;;  %5260 = vmatprep.mubr.bf16.mxu0 %v8791_v0  ;;  %v9766_v22 = vld [vmem:[#allocation12 + $0x4] ss:$16 sps:$4 sm:$0xff]  }
 0xb0d   :  { %5273 = vmatprep.subr.bf16.mxu1 %v9535_v57  ;;  %5303 = vmatprep.mubr.bf16.mxu1 %v8791_v0  ;;  %v9768_v57 = vld [vmem:[#allocation12] ss:$16 sps:$4 sm:$0xff]  }
 0xb0e   :  { %5228 = vmatprep.subr.bf16.mxu0 %v9766_v22 }
 0xb0f   :  { %5229 = vmatpush1.bf16.msra.mxu0 %v9768_v57 }
 0xb10   :  { %5274 = vmatpush1.bf16.msra.mxu1 %v9539_v51  ;;  %5230 = vmatprep.subr.bf16.mxu0 %v9533_v59 }
 0xb11   :  { %5275 = vmatprep.subr.bf16.mxu1 %v9547_v15 }
 0xb13   :  { %5231 = vmatpush1.bf16.msra.mxu0 %v9537_v21 }
 0xb14   :  { %5276 = vmatpush1.bf16.msra.mxu1 %v9554_v14  ;;  %5232 = vmatprep.subr.bf16.mxu0 %v9545_v47 }
 0xb15   :  { %5277 = vmatprep.subr.bf16.mxu1 %v9560_v36 }
 0xb17   :  { %5233 = vmatpush1.bf16.msra.mxu0 %v9549_v48 }
 0xb18   :  { %5278 = vmatpush1.bf16.msra.mxu1 %v9566_v38  ;;  %5234 = vmatprep.subr.bf16.mxu0 %v9551_v50 }
 0xb19   :  { %5279 = vmatprep.subr.bf16.mxu1 %v9569_v61 }
 0xb1b   :  { %5235 = vmatpush1.bf16.msra.mxu0 %v9558_v23 }
 0xb1c   :  { %5280 = vmatpush1.bf16.msra.mxu1 %v9578_v62  ;;  %5236 = vmatprep.subr.bf16.mxu0 %v9563_v37 }
 0xb1d   :  { %5281 = vmatprep.subr.bf16.mxu1 %v9581_v63 }
 0xb1f   :  { %5237 = vmatpush1.bf16.msra.mxu0 %v9572_v60 }
 0xb20   :  { %5282 = vmatpush1.bf16.msra.mxu1 %v9590_v3  ;;  %5238 = vmatprep.subr.bf16.mxu0 %v9575_v46 }
 0xb21   :  { %5283 = vmatprep.subr.bf16.mxu1 %v9602_v41 }
 0xb23   :  { %5239 = vmatpush1.bf16.msra.mxu0 %v9584_v1 }
 0xb24   :  { %5284 = vmatpush1.bf16.msra.mxu1 %v9600_v8  ;;  %5240 = vmatprep.subr.bf16.mxu0 %v9587_v2 }
 0xb25   :  { %5285 = vmatprep.subr.bf16.mxu1 %v9604_v44 }
 0xb27   :  { %5241 = vmatpush1.bf16.msra.mxu0 %v9594_v4 }
 0xb28   :  { %5286 = vmatpush1.bf16.msra.mxu1 %v9612_v49  ;;  %5242 = vmatprep.subr.bf16.mxu0 %v9598_v5 }
 0xb2b   :  { %5243 = vmatpush1.bf16.msra.mxu0 %v9607_v45 }
 0xb2c   :  { %5574 = vmatprep.subr.bf16.mxu0 %v9766_v22 }
 0xbde   :  { %v4916_v59 = vpop.f32.mrb[40].mxu0  ;;  %v4959_v21 = vpop.f32.mrb[40].mxu1 }
 0xbdf   :  { %v7570_v51 = vadd.f32 %v4916_v59, %v9672_v39  ;;  %v4918_v47 = vpop.f32.mrb[41].mxu0  ;;  %v4961_v15 = vpop.f32.mrb[41].mxu1  ;;  %v7602_v1 = vadd.f32 %v4959_v21, %v9688_v28  ;;  %v9816_v59 = vld [vmem:[#allocation12 + $0x20] ss:$16 sps:$4 sm:$0xff]   ;;  %v9818_v21 = vld [vmem:[#allocation12 + $0x28] ss:$16 sps:$4 sm:$0xff]  }
 0xbe0   :  { %v7571_v48 = vadd.f32 %v4918_v47, %v9676_v32  ;;  %v4920_v50 = vpop.f32.mrb[42].mxu0  ;;  %v4963_v14 = vpop.f32.mrb[42].mxu1  ;;  %v7603_v63 = vadd.f32 %v4961_v15, %v9683_v31  ;;  %v9826_v47 = vld [vmem:[#allocation12 + $0x4c] ss:$16 sps:$4 sm:$0xff]   ;;  %v9828_v15 = vld [vmem:[#allocation12 + $0x40] ss:$16 sps:$4 sm:$0xff]  }
 0xbe1   :  { %v7302_v23 = vmul.f32 -1.442695, %v7570_v51  ;;  %v7572_v36 = vadd.f32 %v4920_v50, %v9672_v39  ;;  %v4922_v37 = vpop.f32.mrb[43].mxu0  ;;  %v4965_v38 = vpop.f32.mrb[43].mxu1  ;;  %v7604_v4 = vadd.f32 %v4963_v14, %v9688_v28  ;;  %v9824_v51 = vld [vmem:[#allocation12 + $0x44] ss:$16 sps:$4 sm:$0xff]  }
 0xbe2   :  { %v7304_v61 = vmul.f32 -1.442695, %v7571_v48  ;;  %v7573_v60 = vadd.f32 %v4922_v37, %v9676_v32  ;;  %v7306_v2 = vmul.f32 -1.442695, %v7603_v63  ;;  %v7605_v3 = vadd.f32 %v4965_v38, %v9683_v31  ;;  %v9830_v48 = vld [vmem:[#allocation12 + $0x48] ss:$16 sps:$4 sm:$0xff]  }
 0xbe3   :  { %8404 = vpow2.f32 %v7302_v23  ;;  %v7303_v46 = vmul.f32 -1.442695, %v7572_v36  ;;  %v9836_v50 = vld [vmem:[#allocation12 + $0x64] ss:$16 sps:$4 sm:$0xff]   ;;  %v9838_v14 = vld [vmem:[#allocation12 + $0x6c] ss:$16 sps:$4 sm:$0xff]  }
 0xbe4   :  { %8406 = vpow2.f32 %v7304_v61  ;;  %v7305_v62 = vmul.f32 -1.442695, %v7573_v60  ;;  %v7307_v44 = vmul.f32 -1.442695, %v7605_v3  ;;  %v9840_v23 = vld [vmem:[#allocation12 + $0x60] ss:$16 sps:$4 sm:$0xff]  }
 0xbe5   :  { %8408 = vpow2.f32 %v7303_v46  ;;  %v9842_v36 = vld [vmem:[#allocation12 + $0x68] ss:$16 sps:$4 sm:$0xff]   ;;  %v9848_v37 = vld [vmem:[#allocation12 + $0x84] ss:$16 sps:$4 sm:$0xff]   ;;  %v9850_v38 = vld [vmem:[#allocation12 + $0x8c] ss:$16 sps:$4 sm:$0xff]  }
 0xbe6   :  { %8410 = vpow2.f32 %v7305_v62  ;;  %v9852_v61 = vld [vmem:[#allocation12 + $0x80] ss:$16 sps:$4 sm:$0xff]   ;;  %v9854_v60 = vld [vmem:[#allocation12 + $0x88] ss:$16 sps:$4 sm:$0xff]   ;;  %v9858_v46 = vld [vmem:[#allocation12 + $0xa4] ss:$16 sps:$4 sm:$0xff]  }
 0xbe7   :  { %8412 = vtanh.f32 %v7602_v1  ;;  %v9860_v62 = vld [vmem:[#allocation12 + $0xac] ss:$16 sps:$4 sm:$0xff]   ;;  %v9864_v63 = vld [vmem:[#allocation12 + $0xa0] ss:$16 sps:$4 sm:$0xff]   ;;  %v9866_v1 = vld [vmem:[#allocation12 + $0xa8] ss:$16 sps:$4 sm:$0xff]  }
 0xbe8   :  { %8414 = vpow2.f32 %v7306_v2  ;;  %v9870_v2 = vld [vmem:[#allocation12 + $0xc4] ss:$16 sps:$4 sm:$0xff]   ;;  %v9872_v3 = vld [vmem:[#allocation12 + $0xcc] ss:$16 sps:$4 sm:$0xff]  }
 0xbe9   :  { %8416 = vtanh.f32 %v7604_v4  ;;  %v9876_v4 = vld [vmem:[#allocation12 + $0xc0] ss:$16 sps:$4 sm:$0xff]  }
 0xbed   :  { %v8405_v5 = vpop.eup %8404 }
 0xbee   :  { %v8407_v8 = vpop.eup %8406  ;;  %v4982_v41 = vadd.f32 1.0, %v8405_v5  ;;  %v9878_v5 = vld [vmem:[#allocation12 + $0xc8] ss:$16 sps:$4 sm:$0xff]  }
 0xbef   :  { %v4994_v45 = vadd.f32 1.0, %v8407_v8  ;;  %v8409_v49 = vpop.eup %8408  ;;  %v9882_v8 = vld [vmem:[#allocation12 + $0xe4] ss:$16 sps:$4 sm:$0xff]  }
 0xbf0   :  { %8418 = vrcp.f32 %v4982_v41  ;;  %v4983_v11 = vadd.f32 1.0, %v8409_v49  ;;  %v8411_v17 = vpop.eup %8410  ;;  %v9884_v41 = vld [vmem:[#allocation12 + $0xec] ss:$16 sps:$4 sm:$0xff]  }
 0xbf1   :  { %8420 = vrcp.f32 %v4994_v45  ;;  %v4995_v26 = vadd.f32 1.0, %v8411_v17  ;;  %v8413_v30 = vpop.eup %8412  ;;  %v9890_v45 = vld [vmem:[#allocation12 + $0xe8] ss:$16 sps:$4 sm:$0xff]  }
 0xbf2   :  { %8422 = vpow2.f32 %v7307_v44  ;;  %v8415_v34 = vpop.eup %8414  ;;  %v9888_v44 = vld [vmem:[#allocation12 + $0xe0] ss:$16 sps:$4 sm:$0xff]  }
 0xbf3   :  { %8424 = vrcp.f32 %v4983_v11  ;;  %v8417_v20 = vpop.eup %8416  ;;  %v5008_v35 = vadd.f32 1.0, %v8415_v34 }
 0xbf4   :  { %8426 = vrcp.f32 %v4995_v26 }
 0xbf5   :  { %8428 = vrcp.f32 %v5008_v35 }
 0xbfa   :  { %v8419_v12 = vpop.eup %8418 }
 0xbfb   :  { %v8421_v10 = vpop.eup %8420  ;;  %v5016_v33 = vmul.f32 %v8419_v12, %v8413_v30 }
 0xbfc   :  { %v8423_v29 = vpop.eup %8422  ;;  %v5014_v42 = vmul.f32 %v8421_v10, %v9742_v9 }
 0xbfd   :  { %v8425_v52 = vpop.eup %8424  ;;  %v5009_v54 = vadd.f32 1.0, %v8423_v29 }
 0xbfe   :  { %v9796_v43 = vadd.f32 %v5016_v33, %v5014_v42  ;;  %v5017_v7 = vmul.f32 %v8425_v52, %v8417_v20  ;;  %v8427_v40 = vpop.eup %8426 }
 0xbff   :  { %v5015_v13 = vmul.f32 %v8427_v40, %v9746_v55  ;;  %v8429_v18 = vpop.eup %8428  ;;  %v9806_v55 = vld [vmem:[#allocation12 + $0xc] ss:$16 sps:$4 sm:$0xff]  }
 0xc00   :  { %8430 = vtanh.f32 %v9796_v43  ;;  %5617 = vmatprep.subr.bf16.mxu1 %v9806_v55 }
 0xc01   :  { %v9800_v19 = vadd.f32 %v5017_v7, %v5015_v13  ;;  %8432 = vrcp.f32 %v5009_v54 }
 0xc03   :  { %8434 = vtanh.f32 %v9800_v19 }
 0xc0a   :  { %v8431_v24 = vpop.eup %8430 }
 0xc0b   :  { %v5022_v56 = vmul.f32 %v8431_v24, %v8429_v18  ;;  %v8433_v9 = vpop.eup %8432 }
 0xc0d   :  { %5025 = vst [vmem:[#allocation13 + $0x20] sm:$0xff] %v5022_v56  ;;  %v8435_v58 = vpop.eup %8434 }
 0xc0e   :  { %v5023_v16 = vmul.f32 %v8435_v58, %v8433_v9 }
 0xc10   :  { %5026 = vst [vmem:[#allocation13 + $0x28] sm:$0xff] %v5023_v16  ;;  %v5035_v6 = vpack.c.bf16 %v5023_v16, %v5022_v56 }
 0xc12   :  { %5261 = vmatmul.mubr.bf16.vlgmr.msra.gmra.mrb[44].mxu0 %v5035_v6  ;;  %5304 = vmatmul.mubr.bf16.vlgmr.msra.gmra.mrb[44].mxu1 %v5035_v6 }
 0xc13   :  { %5575 = vmatpush1.bf16.msra.mxu0 %v9768_v57  ;;  %5606 = vmatprep.mubr.bf16.mxu0 %v8791_v0 }
 0xc14   :  { %5649 = vmatprep.mubr.bf16.mxu1 %v8791_v0  ;;  %5618 = vmatpush1.bf16.msra.mxu1 %v9808_v53 }
 0xc15   :  { %5576 = vmatprep.subr.bf16.mxu0 %v9812_v27  ;;  %5619 = vmatprep.subr.bf16.mxu1 %v9814_v25 }
 0xc17   :  { %5577 = vmatpush1.bf16.msra.mxu0 %v9816_v59 }
 0xc18   :  { %5620 = vmatpush1.bf16.msra.mxu1 %v9818_v21  ;;  %5578 = vmatprep.subr.bf16.mxu0 %v9824_v51 }
 0xc19   :  { %5621 = vmatprep.subr.bf16.mxu1 %v9826_v47 }
 0xc1b   :  { %5579 = vmatpush1.bf16.msra.mxu0 %v9828_v15 }
 0xc1c   :  { %5622 = vmatpush1.bf16.msra.mxu1 %v9830_v48  ;;  %5580 = vmatprep.subr.bf16.mxu0 %v9836_v50 }
 0xc1d   :  { %5623 = vmatprep.subr.bf16.mxu1 %v9838_v14 }
 0xc1f   :  { %5581 = vmatpush1.bf16.msra.mxu0 %v9840_v23 }
 0xc20   :  { %5624 = vmatpush1.bf16.msra.mxu1 %v9842_v36  ;;  %5582 = vmatprep.subr.bf16.mxu0 %v9848_v37 }
 0xc21   :  { %5625 = vmatprep.subr.bf16.mxu1 %v9850_v38 }
 0xc23   :  { %5583 = vmatpush1.bf16.msra.mxu0 %v9852_v61 }
 0xc24   :  { %5626 = vmatpush1.bf16.msra.mxu1 %v9854_v60  ;;  %5584 = vmatprep.subr.bf16.mxu0 %v9858_v46 }
 0xc25   :  { %5627 = vmatprep.subr.bf16.mxu1 %v9860_v62 }
 0xc27   :  { %5585 = vmatpush1.bf16.msra.mxu0 %v9864_v63 }
 0xc28   :  { %5628 = vmatpush1.bf16.msra.mxu1 %v9866_v1  ;;  %5586 = vmatprep.subr.bf16.mxu0 %v9870_v2 }
 0xc29   :  { %5629 = vmatprep.subr.bf16.mxu1 %v9872_v3 }
 0xc2b   :  { %5587 = vmatpush1.bf16.msra.mxu0 %v9876_v4 }
 0xc2c   :  { %5630 = vmatpush1.bf16.msra.mxu1 %v9878_v5  ;;  %5588 = vmatprep.subr.bf16.mxu0 %v9882_v8 }
 0xc2d   :  { %5631 = vmatprep.subr.bf16.mxu1 %v9884_v41 }
 0xc2f   :  { %5589 = vmatpush1.bf16.msra.mxu0 %v9888_v44 }
 0xc30   :  { %5632 = vmatpush1.bf16.msra.mxu1 %v9890_v45  ;;  %5920 = vmatprep.subr.bf16.mxu0 %v9766_v22 }
 0xc31   :  { %5963 = vmatprep.subr.bf16.mxu1 %v9806_v55 }
 0xce5   :  { %v5262_v49 = vpop.f32.mrb[44].mxu0  ;;  %v5305_v11 = vpop.f32.mrb[44].mxu1 }
 0xce6   :  { %v7574_v17 = vadd.f32 %v5262_v49, %v9672_v39  ;;  %v5264_v26 = vpop.f32.mrb[45].mxu0  ;;  %v5307_v30 = vpop.f32.mrb[45].mxu1  ;;  %v7606_v13 = vadd.f32 %v5305_v11, %v9688_v28 }
 0xce7   :  { %v7575_v34 = vadd.f32 %v5264_v26, %v9676_v32  ;;  %v5266_v20 = vpop.f32.mrb[46].mxu0  ;;  %v5309_v12 = vpop.f32.mrb[46].mxu1  ;;  %v7607_v54 = vadd.f32 %v5307_v30, %v9683_v31 }
 0xce8   :  { %v7340_v10 = vmul.f32 -1.442695, %v7574_v17  ;;  %v7576_v33 = vadd.f32 %v5266_v20, %v9672_v39  ;;  %v5268_v35 = vpop.f32.mrb[47].mxu0  ;;  %v5311_v29 = vpop.f32.mrb[47].mxu1  ;;  %v7608_v56 = vadd.f32 %v5309_v12, %v9688_v28 }
 0xce9   :  { %v7342_v42 = vmul.f32 -1.442695, %v7575_v34  ;;  %v7577_v52 = vadd.f32 %v5268_v35, %v9676_v32  ;;  %v7344_v18 = vmul.f32 -1.442695, %v7607_v54  ;;  %v7609_v24 = vadd.f32 %v5311_v29, %v9683_v31 }
 0xcea   :  { %8436 = vpow2.f32 %v7340_v10  ;;  %v7341_v7 = vmul.f32 -1.442695, %v7576_v33 }
 0xceb   :  { %8438 = vpow2.f32 %v7342_v42  ;;  %v7343_v40 = vmul.f32 -1.442695, %v7577_v52  ;;  %v7345_v6 = vmul.f32 -1.442695, %v7609_v24 }
 0xcec   :  { %8440 = vpow2.f32 %v7341_v7 }
 0xced   :  { %8442 = vpow2.f32 %v7343_v40 }
 0xcee   :  { %8444 = vtanh.f32 %v7606_v13 }
 0xcef   :  { %8446 = vpow2.f32 %v7344_v18 }
 0xcf0   :  { %8448 = vtanh.f32 %v7608_v56 }
 0xcf4   :  { %v8437_v9 = vpop.eup %8436 }
 0xcf5   :  { %v8439_v58 = vpop.eup %8438  ;;  %v5328_v16 = vadd.f32 1.0, %v8437_v9 }
 0xcf6   :  { %v5340_v49 = vadd.f32 1.0, %v8439_v58  ;;  %v8441_v17 = vpop.eup %8440 }
 0xcf7   :  { %8450 = vrcp.f32 %v5328_v16  ;;  %v5329_v26 = vadd.f32 1.0, %v8441_v17  ;;  %v8443_v30 = vpop.eup %8442 }
 0xcf8   :  { %8452 = vrcp.f32 %v5340_v49  ;;  %v5341_v11 = vadd.f32 1.0, %v8443_v30  ;;  %v8445_v34 = vpop.eup %8444 }
 0xcf9   :  { %8454 = vpow2.f32 %v7345_v6  ;;  %v8447_v20 = vpop.eup %8446 }
 0xcfa   :  { %8456 = vrcp.f32 %v5329_v26  ;;  %v8449_v12 = vpop.eup %8448  ;;  %v5354_v29 = vadd.f32 1.0, %v8447_v20 }
 0xcfb   :  { %8458 = vrcp.f32 %v5341_v11 }
 0xcfc   :  { %8460 = vrcp.f32 %v5354_v29 }
 0xd01   :  { %v8451_v10 = vpop.eup %8450 }
 0xd02   :  { %v8453_v33 = vpop.eup %8452  ;;  %v5362_v35 = vmul.f32 %v8451_v10, %v8445_v34 }
 0xd03   :  { %v8455_v42 = vpop.eup %8454  ;;  %v5360_v52 = vmul.f32 %v8453_v33, %v9796_v43 }
 0xd04   :  { %v8457_v7 = vpop.eup %8456  ;;  %v5355_v18 = vadd.f32 1.0, %v8455_v42 }
 0xd05   :  { %v9907_v40 = vadd.f32 %v5362_v35, %v5360_v52  ;;  %v5363_v54 = vmul.f32 %v8457_v7, %v8449_v12  ;;  %v8459_v13 = vpop.eup %8458 }
 0xd06   :  { %v5361_v24 = vmul.f32 %v8459_v13, %v9800_v19  ;;  %v8461_v9 = vpop.eup %8460 }
 0xd07   :  { %8462 = vtanh.f32 %v9907_v40 }
 0xd08   :  { %v9911_v56 = vadd.f32 %v5363_v54, %v5361_v24  ;;  %8464 = vrcp.f32 %v5355_v18 }
 0xd0a   :  { %8466 = vtanh.f32 %v9911_v56 }
 0xd11   :  { %v8463_v58 = vpop.eup %8462 }
 0xd12   :  { %v5368_v16 = vmul.f32 %v8463_v58, %v8461_v9  ;;  %v8465_v43 = vpop.eup %8464 }
 0xd14   :  { %5371 = vst [vmem:[#allocation13 + $0x30] sm:$0xff] %v5368_v16  ;;  %v8467_v6 = vpop.eup %8466 }
 0xd15   :  { %v5369_v49 = vmul.f32 %v8467_v6, %v8465_v43 }
 0xd17   :  { %5372 = vst [vmem:[#allocation13 + $0x38] sm:$0xff] %v5369_v49  ;;  %v5381_v17 = vpack.c.bf16 %v5369_v49, %v5368_v16 }
 0xd19   :  { %5607 = vmatmul.mubr.bf16.vlgmr.msra.gmra.mrb[48].mxu0 %v5381_v17  ;;  %5650 = vmatmul.mubr.bf16.vlgmr.msra.gmra.mrb[48].mxu1 %v5381_v17 }
 0xd1a   :  { %5921 = vmatpush1.bf16.msra.mxu0 %v9768_v57  ;;  %5964 = vmatpush1.bf16.msra.mxu1 %v9808_v53 }
 0xd1b   :  { %5922 = vmatprep.subr.bf16.mxu0 %v9812_v27  ;;  %5965 = vmatprep.subr.bf16.mxu1 %v9814_v25 }
 0xd1c   :  { %5952 = vmatprep.mubr.bf16.mxu0 %v8791_v0  ;;  %5995 = vmatprep.mubr.bf16.mxu1 %v8791_v0 }
 0xd1e   :  { %5923 = vmatpush1.bf16.msra.mxu0 %v9816_v59  ;;  %5966 = vmatpush1.bf16.msra.mxu1 %v9818_v21 }
 0xd1f   :  { %5924 = vmatprep.subr.bf16.mxu0 %v9824_v51  ;;  %5967 = vmatprep.subr.bf16.mxu1 %v9826_v47 }
 0xd22   :  { %5925 = vmatpush1.bf16.msra.mxu0 %v9828_v15  ;;  %5968 = vmatpush1.bf16.msra.mxu1 %v9830_v48 }
 0xd23   :  { %5926 = vmatprep.subr.bf16.mxu0 %v9836_v50  ;;  %5969 = vmatprep.subr.bf16.mxu1 %v9838_v14 }
 0xd26   :  { %5927 = vmatpush1.bf16.msra.mxu0 %v9840_v23  ;;  %5970 = vmatpush1.bf16.msra.mxu1 %v9842_v36 }
 0xd27   :  { %5928 = vmatprep.subr.bf16.mxu0 %v9848_v37  ;;  %5971 = vmatprep.subr.bf16.mxu1 %v9850_v38 }
 0xd2a   :  { %5929 = vmatpush1.bf16.msra.mxu0 %v9852_v61  ;;  %5972 = vmatpush1.bf16.msra.mxu1 %v9854_v60 }
 0xd2b   :  { %5930 = vmatprep.subr.bf16.mxu0 %v9858_v46  ;;  %5973 = vmatprep.subr.bf16.mxu1 %v9860_v62 }
 0xd2e   :  { %5931 = vmatpush1.bf16.msra.mxu0 %v9864_v63  ;;  %5974 = vmatpush1.bf16.msra.mxu1 %v9866_v1 }
 0xd2f   :  { %5932 = vmatprep.subr.bf16.mxu0 %v9870_v2  ;;  %5975 = vmatprep.subr.bf16.mxu1 %v9872_v3 }
 0xd32   :  { %5933 = vmatpush1.bf16.msra.mxu0 %v9876_v4  ;;  %5976 = vmatpush1.bf16.msra.mxu1 %v9878_v5 }
 0xd33   :  { %5934 = vmatprep.subr.bf16.mxu0 %v9882_v8  ;;  %5977 = vmatprep.subr.bf16.mxu1 %v9884_v41 }
 0xd36   :  { %5935 = vmatpush1.bf16.msra.mxu0 %v9888_v44  ;;  %5978 = vmatpush1.bf16.msra.mxu1 %v9890_v45 }
 0xd37   :  { %6266 = vmatprep.subr.bf16.mxu0 %v9766_v22  ;;  %6309 = vmatprep.subr.bf16.mxu1 %v9806_v55 }
 0xdec   :  { %v5608_v19 = vpop.f32.mrb[48].mxu0  ;;  %v5651_v26 = vpop.f32.mrb[48].mxu1 }
 0xded   :  { %v7578_v30 = vadd.f32 %v5608_v19, %v9672_v39  ;;  %v5610_v11 = vpop.f32.mrb[49].mxu0  ;;  %v5653_v34 = vpop.f32.mrb[49].mxu1  ;;  %v7610_v18 = vadd.f32 %v5651_v26, %v9688_v28 }
 0xdee   :  { %v7579_v20 = vadd.f32 %v5610_v11, %v9676_v32  ;;  %v5612_v12 = vpop.f32.mrb[50].mxu0  ;;  %v5655_v10 = vpop.f32.mrb[50].mxu1  ;;  %v7611_v13 = vadd.f32 %v5653_v34, %v9683_v31 }
 0xdef   :  { %v7378_v33 = vmul.f32 -1.442695, %v7578_v30  ;;  %v7580_v35 = vadd.f32 %v5612_v12, %v9672_v39  ;;  %v5614_v29 = vpop.f32.mrb[51].mxu0  ;;  %v5657_v42 = vpop.f32.mrb[51].mxu1  ;;  %v7612_v58 = vadd.f32 %v5655_v10, %v9688_v28 }
 0xdf0   :  { %v7380_v52 = vmul.f32 -1.442695, %v7579_v20  ;;  %v7581_v22 = vadd.f32 %v5614_v29, %v9676_v32  ;;  %v7382_v24 = vmul.f32 -1.442695, %v7611_v13  ;;  %v7613_v9 = vadd.f32 %v5657_v42, %v9683_v31 }
 0xdf1   :  { %8468 = vpow2.f32 %v7378_v33  ;;  %v7379_v7 = vmul.f32 -1.442695, %v7580_v35 }
 0xdf2   :  { %8470 = vpow2.f32 %v7380_v52  ;;  %v7381_v54 = vmul.f32 -1.442695, %v7581_v22  ;;  %v7383_v49 = vmul.f32 -1.442695, %v7613_v9 }
 0xdf3   :  { %8472 = vpow2.f32 %v7379_v7 }
 0xdf4   :  { %8474 = vpow2.f32 %v7381_v54 }
 0xdf5   :  { %8476 = vtanh.f32 %v7610_v18 }
 0xdf6   :  { %8478 = vpow2.f32 %v7382_v24 }
 0xdf7   :  { %8480 = vtanh.f32 %v7612_v58 }
 0xdfb   :  { %v8469_v16 = vpop.eup %8468 }
 0xdfc   :  { %v8471_v43 = vpop.eup %8470  ;;  %v5674_v6 = vadd.f32 1.0, %v8469_v16 }
 0xdfd   :  { %v5686_v17 = vadd.f32 1.0, %v8471_v43  ;;  %v8473_v19 = vpop.eup %8472 }
 0xdfe   :  { %8482 = vrcp.f32 %v5674_v6  ;;  %v5675_v30 = vadd.f32 1.0, %v8473_v19  ;;  %v8475_v11 = vpop.eup %8474 }
 0xdff   :  { %8484 = vrcp.f32 %v5686_v17  ;;  %v5687_v26 = vadd.f32 1.0, %v8475_v11  ;;  %v8477_v34 = vpop.eup %8476 }
 0xe00   :  { %8486 = vpow2.f32 %v7383_v49  ;;  %v8479_v20 = vpop.eup %8478 }
 0xe01   :  { %8488 = vrcp.f32 %v5675_v30  ;;  %v8481_v12 = vpop.eup %8480  ;;  %v5700_v29 = vadd.f32 1.0, %v8479_v20 }
 0xe02   :  { %8490 = vrcp.f32 %v5687_v26 }
 0xe03   :  { %8492 = vrcp.f32 %v5700_v29 }
 0xe08   :  { %v8483_v10 = vpop.eup %8482 }
 0xe09   :  { %v8485_v33 = vpop.eup %8484  ;;  %v5708_v35 = vmul.f32 %v8483_v10, %v8477_v34 }
 0xe0a   :  { %v8487_v42 = vpop.eup %8486  ;;  %v5706_v52 = vmul.f32 %v8485_v33, %v9907_v40 }
 0xe0b   :  { %v8489_v22 = vpop.eup %8488  ;;  %v5701_v18 = vadd.f32 1.0, %v8487_v42 }
 0xe0c   :  { %v9957_v7 = vadd.f32 %v5708_v35, %v5706_v52  ;;  %v5709_v54 = vmul.f32 %v8489_v22, %v8481_v12  ;;  %v8491_v13 = vpop.eup %8490 }
 0xe0d   :  { %v5707_v24 = vmul.f32 %v8491_v13, %v9911_v56  ;;  %v8493_v58 = vpop.eup %8492 }
 0xe0e   :  { %8494 = vtanh.f32 %v9957_v7 }
 0xe0f   :  { %v9961_v9 = vadd.f32 %v5709_v54, %v5707_v24  ;;  %8496 = vrcp.f32 %v5701_v18 }
 0xe11   :  { %8498 = vtanh.f32 %v9961_v9 }
 0xe18   :  { %v8495_v16 = vpop.eup %8494 }
 0xe19   :  { %v5714_v43 = vmul.f32 %v8495_v16, %v8493_v58  ;;  %v8497_v40 = vpop.eup %8496 }
 0xe1b   :  { %5717 = vst [vmem:[#allocation13 + $0x40] sm:$0xff] %v5714_v43  ;;  %v8499_v6 = vpop.eup %8498 }
 0xe1c   :  { %v5715_v49 = vmul.f32 %v8499_v6, %v8497_v40 }
 0xe1e   :  { %5718 = vst [vmem:[#allocation13 + $0x48] sm:$0xff] %v5715_v49  ;;  %v5727_v17 = vpack.c.bf16 %v5715_v49, %v5714_v43 }
 0xe20   :  { %5953 = vmatmul.mubr.bf16.vlgmr.msra.gmra.mrb[52].mxu0 %v5727_v17  ;;  %5996 = vmatmul.mubr.bf16.vlgmr.msra.gmra.mrb[52].mxu1 %v5727_v17 }
 0xe21   :  { %6267 = vmatpush1.bf16.msra.mxu0 %v9768_v57  ;;  %6310 = vmatpush1.bf16.msra.mxu1 %v9808_v53 }
 0xe22   :  { %6268 = vmatprep.subr.bf16.mxu0 %v9812_v27  ;;  %6311 = vmatprep.subr.bf16.mxu1 %v9814_v25 }
 0xe23   :  { %6298 = vmatprep.mubr.bf16.mxu0 %v8791_v0  ;;  %6341 = vmatprep.mubr.bf16.mxu1 %v8791_v0 }
 0xe25   :  { %6269 = vmatpush1.bf16.msra.mxu0 %v9816_v59  ;;  %6312 = vmatpush1.bf16.msra.mxu1 %v9818_v21 }
 0xe26   :  { %6270 = vmatprep.subr.bf16.mxu0 %v9824_v51  ;;  %6313 = vmatprep.subr.bf16.mxu1 %v9826_v47 }
 0xe29   :  { %6271 = vmatpush1.bf16.msra.mxu0 %v9828_v15  ;;  %6314 = vmatpush1.bf16.msra.mxu1 %v9830_v48 }
 0xe2a   :  { %6272 = vmatprep.subr.bf16.mxu0 %v9836_v50  ;;  %6315 = vmatprep.subr.bf16.mxu1 %v9838_v14 }
 0xe2d   :  { %6273 = vmatpush1.bf16.msra.mxu0 %v9840_v23  ;;  %6316 = vmatpush1.bf16.msra.mxu1 %v9842_v36 }
 0xe2e   :  { %6274 = vmatprep.subr.bf16.mxu0 %v9848_v37  ;;  %6317 = vmatprep.subr.bf16.mxu1 %v9850_v38 }
 0xe31   :  { %6275 = vmatpush1.bf16.msra.mxu0 %v9852_v61  ;;  %6318 = vmatpush1.bf16.msra.mxu1 %v9854_v60 }
 0xe32   :  { %6276 = vmatprep.subr.bf16.mxu0 %v9858_v46  ;;  %6319 = vmatprep.subr.bf16.mxu1 %v9860_v62 }
 0xe35   :  { %6277 = vmatpush1.bf16.msra.mxu0 %v9864_v63  ;;  %6320 = vmatpush1.bf16.msra.mxu1 %v9866_v1 }
 0xe36   :  { %6278 = vmatprep.subr.bf16.mxu0 %v9870_v2  ;;  %6321 = vmatprep.subr.bf16.mxu1 %v9872_v3 }
 0xe39   :  { %6279 = vmatpush1.bf16.msra.mxu0 %v9876_v4  ;;  %6322 = vmatpush1.bf16.msra.mxu1 %v9878_v5 }
 0xe3a   :  { %6280 = vmatprep.subr.bf16.mxu0 %v9882_v8  ;;  %6323 = vmatprep.subr.bf16.mxu1 %v9884_v41 }
 0xe3d   :  { %6281 = vmatpush1.bf16.msra.mxu0 %v9888_v44  ;;  %6324 = vmatpush1.bf16.msra.mxu1 %v9890_v45 }
 0xe3e   :  { %6655 = vmatprep.subr.bf16.mxu1 %v9806_v55 }
 0xef3   :  { %v5954_v57 = vpop.f32.mrb[52].mxu0  ;;  %v5997_v56 = vpop.f32.mrb[52].mxu1 }
 0xef4   :  { %v7582_v19 = vadd.f32 %v5954_v57, %v9672_v39  ;;  %v5956_v30 = vpop.f32.mrb[53].mxu0  ;;  %v5999_v11 = vpop.f32.mrb[53].mxu1  ;;  %v7614_v54 = vadd.f32 %v5997_v56, %v9688_v28 }
 0xef5   :  { %v7583_v26 = vadd.f32 %v5956_v30, %v9676_v32  ;;  %v5958_v34 = vpop.f32.mrb[54].mxu0  ;;  %v6001_v20 = vpop.f32.mrb[54].mxu1  ;;  %v7615_v22 = vadd.f32 %v5999_v11, %v9683_v31 }
 0xef6   :  { %v7416_v12 = vmul.f32 -1.442695, %v7582_v19  ;;  %v7584_v10 = vadd.f32 %v5958_v34, %v9672_v39  ;;  %v5960_v33 = vpop.f32.mrb[55].mxu0  ;;  %v6003_v35 = vpop.f32.mrb[55].mxu1  ;;  %v7616_v24 = vadd.f32 %v6001_v20, %v9688_v28 }
 0xef7   :  { %v7418_v29 = vmul.f32 -1.442695, %v7583_v26  ;;  %v7585_v42 = vadd.f32 %v5960_v33, %v9676_v32  ;;  %v7420_v13 = vmul.f32 -1.442695, %v7615_v22  ;;  %v7617_v18 = vadd.f32 %v6003_v35, %v9683_v31 }
 0xef8   :  { %8500 = vpow2.f32 %v7416_v12  ;;  %v7417_v55 = vmul.f32 -1.442695, %v7584_v10 }
 0xef9   :  { %8502 = vpow2.f32 %v7418_v29  ;;  %v7419_v52 = vmul.f32 -1.442695, %v7585_v42  ;;  %v7421_v40 = vmul.f32 -1.442695, %v7617_v18 }
 0xefa   :  { %8504 = vpow2.f32 %v7417_v55 }
 0xefb   :  { %8506 = vpow2.f32 %v7419_v52 }
 0xefc   :  { %8508 = vtanh.f32 %v7614_v54 }
 0xefd   :  { %8510 = vpow2.f32 %v7420_v13 }
 0xefe   :  { %8512 = vtanh.f32 %v7616_v24 }
 0xf02   :  { %v8501_v58 = vpop.eup %8500 }
 0xf03   :  { %v8503_v16 = vpop.eup %8502  ;;  %v6020_v43 = vadd.f32 1.0, %v8501_v58 }
 0xf04   :  { %v6032_v6 = vadd.f32 1.0, %v8503_v16  ;;  %v8505_v49 = vpop.eup %8504 }
 0xf05   :  { %8514 = vrcp.f32 %v6020_v43  ;;  %v6021_v17 = vadd.f32 1.0, %v8505_v49  ;;  %v8507_v57 = vpop.eup %8506 }
 0xf06   :  { %8516 = vrcp.f32 %v6032_v6  ;;  %v6033_v56 = vadd.f32 1.0, %v8507_v57  ;;  %v8509_v19 = vpop.eup %8508 }
 0xf07   :  { %8518 = vpow2.f32 %v7421_v40  ;;  %v8511_v30 = vpop.eup %8510 }
 0xf08   :  { %8520 = vrcp.f32 %v6021_v17  ;;  %v8513_v11 = vpop.eup %8512  ;;  %v6046_v12 = vadd.f32 1.0, %v8511_v30 }
 0xf09   :  { %8522 = vrcp.f32 %v6033_v56 }
 0xf0a   :  { %8524 = vrcp.f32 %v6046_v12 }
 0xf0f   :  { %v8515_v26 = vpop.eup %8514 }
 0xf10   :  { %v8517_v34 = vpop.eup %8516  ;;  %v6054_v20 = vmul.f32 %v8515_v26, %v8509_v19 }
 0xf11   :  { %v8519_v10 = vpop.eup %8518  ;;  %v6052_v33 = vmul.f32 %v8517_v34, %v9957_v7 }
 0xf12   :  { %v8521_v35 = vpop.eup %8520  ;;  %v6047_v52 = vadd.f32 1.0, %v8519_v10 }
 0xf13   :  { %v10006_v29 = vadd.f32 %v6054_v20, %v6052_v33  ;;  %v6055_v42 = vmul.f32 %v8521_v35, %v8513_v11  ;;  %v8523_v55 = vpop.eup %8522 }
 0xf14   :  { %v6053_v22 = vmul.f32 %v8523_v55, %v9961_v9  ;;  %v8525_v13 = vpop.eup %8524 }
 0xf15   :  { %8526 = vtanh.f32 %v10006_v29 }
 0xf16   :  { %v10010_v54 = vadd.f32 %v6055_v42, %v6053_v22  ;;  %8528 = vrcp.f32 %v6047_v52 }
 0xf18   :  { %8530 = vtanh.f32 %v10010_v54 }
 0xf1f   :  { %v8527_v18 = vpop.eup %8526 }
 0xf20   :  { %v6060_v24 = vmul.f32 %v8527_v18, %v8525_v13  ;;  %v8529_v7 = vpop.eup %8528 }
 0xf22   :  { %6063 = vst [vmem:[#allocation13 + $0x50] sm:$0xff] %v6060_v24  ;;  %v8531_v58 = vpop.eup %8530 }
 0xf23   :  { %v6061_v16 = vmul.f32 %v8531_v58, %v8529_v7 }
 0xf25   :  { %6064 = vst [vmem:[#allocation13 + $0x58] sm:$0xff] %v6061_v16  ;;  %v6073_v43 = vpack.c.bf16 %v6061_v16, %v6060_v24 }
 0xf27   :  { %6299 = vmatmul.mubr.bf16.vlgmr.msra.gmra.mrb[56].mxu0 %v6073_v43  ;;  %6342 = vmatmul.mubr.bf16.vlgmr.msra.gmra.mrb[56].mxu1 %v6073_v43 }
 0xf28   :  { %6656 = vmatpush1.bf16.msra.mxu1 %v9808_v53  ;;  %6644 = vmatprep.mubr.bf16.mxu0 %v8791_v0  ;;  %v8081_v53 = vld [vmem:[#allocation12] ss:$16 sps:$4 sm:$0xff]  }
 0xf29   :  { %6657 = vmatprep.subr.bf16.mxu1 %v9814_v25  ;;  %6687 = vmatprep.mubr.bf16.mxu1 %v8791_v0  ;;  %v8083_v0 = vld [vmem:[#allocation12 + $0x4] ss:$16 sps:$4 sm:$0xff]  }
 0xf2a   :  { %6612 = vmatprep.subr.bf16.mxu0 %v8083_v0 }
 0xf2b   :  { %6613 = vmatpush1.bf16.msra.mxu0 %v8081_v53 }
 0xf2c   :  { %6658 = vmatpush1.bf16.msra.mxu1 %v9818_v21  ;;  %6614 = vmatprep.subr.bf16.mxu0 %v9812_v27 }
 0xf2d   :  { %6659 = vmatprep.subr.bf16.mxu1 %v9826_v47 }
 0xf2f   :  { %6615 = vmatpush1.bf16.msra.mxu0 %v9816_v59 }
 0xf30   :  { %6660 = vmatpush1.bf16.msra.mxu1 %v9830_v48  ;;  %6616 = vmatprep.subr.bf16.mxu0 %v9824_v51 }
 0xf31   :  { %6661 = vmatprep.subr.bf16.mxu1 %v9838_v14 }
 0xf33   :  { %6617 = vmatpush1.bf16.msra.mxu0 %v9828_v15 }
 0xf34   :  { %6662 = vmatpush1.bf16.msra.mxu1 %v9842_v36  ;;  %6618 = vmatprep.subr.bf16.mxu0 %v9836_v50 }
 0xf35   :  { %6663 = vmatprep.subr.bf16.mxu1 %v9850_v38 }
 0xf37   :  { %6619 = vmatpush1.bf16.msra.mxu0 %v9840_v23 }
 0xf38   :  { %6664 = vmatpush1.bf16.msra.mxu1 %v9854_v60  ;;  %6620 = vmatprep.subr.bf16.mxu0 %v9848_v37 }
 0xf39   :  { %6665 = vmatprep.subr.bf16.mxu1 %v9860_v62 }
 0xf3b   :  { %6621 = vmatpush1.bf16.msra.mxu0 %v9852_v61 }
 0xf3c   :  { %6666 = vmatpush1.bf16.msra.mxu1 %v9866_v1  ;;  %6622 = vmatprep.subr.bf16.mxu0 %v9858_v46 }
 0xf3d   :  { %6667 = vmatprep.subr.bf16.mxu1 %v9872_v3 }
 0xf3f   :  { %6623 = vmatpush1.bf16.msra.mxu0 %v9864_v63 }
 0xf40   :  { %6668 = vmatpush1.bf16.msra.mxu1 %v9878_v5  ;;  %6624 = vmatprep.subr.bf16.mxu0 %v9870_v2 }
 0xf41   :  { %6669 = vmatprep.subr.bf16.mxu1 %v9884_v41 }
 0xf43   :  { %6625 = vmatpush1.bf16.msra.mxu0 %v9876_v4 }
 0xf44   :  { %6670 = vmatpush1.bf16.msra.mxu1 %v9890_v45  ;;  %6626 = vmatprep.subr.bf16.mxu0 %v9882_v8 }
 0xf47   :  { %6627 = vmatpush1.bf16.msra.mxu0 %v9888_v44 }
 0xffa   :  { %v6300_v27 = vpop.f32.mrb[56].mxu0  ;;  %v6343_v25 = vpop.f32.mrb[56].mxu1 }
 0xffb   :  { %v7586_v59 = vadd.f32 %v6300_v27, %v9672_v39  ;;  %v6302_v21 = vpop.f32.mrb[57].mxu0  ;;  %v6345_v51 = vpop.f32.mrb[57].mxu1  ;;  %v7618_v62 = vadd.f32 %v6343_v25, %v9688_v28 }
 0xffc   :  { %v7587_v47 = vadd.f32 %v6302_v21, %v9676_v32  ;;  %v6304_v15 = vpop.f32.mrb[58].mxu0  ;;  %v6347_v48 = vpop.f32.mrb[58].mxu1  ;;  %v7619_v46 = vadd.f32 %v6345_v51, %v9683_v31 }
 0xffd   :  { %v7454_v50 = vmul.f32 -1.442695, %v7586_v59  ;;  %v7588_v14 = vadd.f32 %v6304_v15, %v9672_v39  ;;  %v6306_v23 = vpop.f32.mrb[59].mxu0  ;;  %v6349_v36 = vpop.f32.mrb[59].mxu1  ;;  %v7620_v2 = vadd.f32 %v6347_v48, %v9688_v28 }
 0xffe   :  { %v7456_v37 = vmul.f32 -1.442695, %v7587_v47  ;;  %v7589_v38 = vadd.f32 %v6306_v23, %v9676_v32  ;;  %v7458_v63 = vmul.f32 -1.442695, %v7619_v46  ;;  %v7621_v1 = vadd.f32 %v6349_v36, %v9683_v31 }
 0xfff   :  { %8532 = vpow2.f32 %v7454_v50  ;;  %v7455_v61 = vmul.f32 -1.442695, %v7588_v14 }
0x1000   :  { %8534 = vpow2.f32 %v7456_v37  ;;  %v7457_v60 = vmul.f32 -1.442695, %v7589_v38  ;;  %v7459_v8 = vmul.f32 -1.442695, %v7621_v1 }
0x1001   :  { %8536 = vpow2.f32 %v7455_v61 }
0x1002   :  { %8538 = vpow2.f32 %v7457_v60 }
0x1003   :  { %8540 = vtanh.f32 %v7618_v62 }
0x1004   :  { %8542 = vpow2.f32 %v7458_v63 }
0x1005   :  { %8544 = vtanh.f32 %v7620_v2 }
0x1009   :  { %v8533_v3 = vpop.eup %8532 }
0x100a   :  { %v8535_v4 = vpop.eup %8534  ;;  %v6366_v5 = vadd.f32 1.0, %v8533_v3 }
0x100b   :  { %v6378_v41 = vadd.f32 1.0, %v8535_v4  ;;  %v8537_v44 = vpop.eup %8536 }
0x100c   :  { %8546 = vrcp.f32 %v6366_v5  ;;  %v6367_v45 = vadd.f32 1.0, %v8537_v44  ;;  %v8539_v9 = vpop.eup %8538 }
0x100d   :  { %8548 = vrcp.f32 %v6378_v41  ;;  %v6379_v40 = vadd.f32 1.0, %v8539_v9  ;;  %v8541_v6 = vpop.eup %8540 }
0x100e   :  { %8550 = vpow2.f32 %v7459_v8  ;;  %v8543_v49 = vpop.eup %8542 }
0x100f   :  { %8552 = vrcp.f32 %v6367_v45  ;;  %v8545_v17 = vpop.eup %8544  ;;  %v6392_v30 = vadd.f32 1.0, %v8543_v49 }
0x1010   :  { %8554 = vrcp.f32 %v6379_v40 }
0x1011   :  { %8556 = vrcp.f32 %v6392_v30 }
0x1016   :  { %v8547_v57 = vpop.eup %8546 }
0x1017   :  { %v8549_v56 = vpop.eup %8548  ;;  %v6400_v19 = vmul.f32 %v8547_v57, %v8541_v6 }
0x1018   :  { %v8551_v11 = vpop.eup %8550  ;;  %v6398_v26 = vmul.f32 %v8549_v56, %v10006_v29 }
0x1019   :  { %v8553_v34 = vpop.eup %8552  ;;  %v6393_v33 = vadd.f32 1.0, %v8551_v11 }
0x101a   :  { %v10053_v20 = vadd.f32 %v6400_v19, %v6398_v26  ;;  %v6401_v12 = vmul.f32 %v8553_v34, %v8545_v17  ;;  %v8555_v10 = vpop.eup %8554 }
0x101b   :  { %v6399_v35 = vmul.f32 %v8555_v10, %v10010_v54  ;;  %v8557_v55 = vpop.eup %8556 }
0x101c   :  { %8558 = vtanh.f32 %v10053_v20 }
0x101d   :  { %v10057_v42 = vadd.f32 %v6401_v12, %v6399_v35  ;;  %8560 = vrcp.f32 %v6393_v33 }
0x101f   :  { %8562 = vtanh.f32 %v10057_v42 }
0x1026   :  { %v8559_v52 = vpop.eup %8558 }
0x1027   :  { %v6406_v22 = vmul.f32 %v8559_v52, %v8557_v55  ;;  %v8561_v29 = vpop.eup %8560 }
0x1029   :  { %6409 = vst [vmem:[#allocation13 + $0x60] sm:$0xff] %v6406_v22  ;;  %v8563_v13 = vpop.eup %8562 }
0x102a   :  { %v6407_v18 = vmul.f32 %v8563_v13, %v8561_v29 }
0x102c   :  { %6410 = vst [vmem:[#allocation13 + $0x68] sm:$0xff] %v6407_v18  ;;  %v6419_v24 = vpack.c.bf16 %v6407_v18, %v6406_v22 }
0x102e   :  { %6645 = vmatmul.mubr.bf16.vlgmr.msra.gmra.mrb[60].mxu0 %v6419_v24  ;;  %6688 = vmatmul.mubr.bf16.vlgmr.msra.gmra.mrb[60].mxu1 %v6419_v24 }
0x1101   :  { %v6646_v7 = vpop.f32.mrb[60].mxu0  ;;  %v6689_v58 = vpop.f32.mrb[60].mxu1 }
0x1102   :  { %v7590_v54 = vadd.f32 %v6646_v7, %v9672_v39  ;;  %v6648_v16 = vpop.f32.mrb[61].mxu0  ;;  %v6691_v43 = vpop.f32.mrb[61].mxu1  ;;  %v7622_v23 = vadd.f32 %v6689_v58, %v9688_v28 }
0x1103   :  { %v7591_v0 = vadd.f32 %v6648_v16, %v9676_v32  ;;  %v6650_v53 = vpop.f32.mrb[62].mxu0  ;;  %v6693_v27 = vpop.f32.mrb[62].mxu1  ;;  %v7623_v14 = vadd.f32 %v6691_v43, %v9683_v31 }
0x1104   :  { %v7492_v25 = vmul.f32 -1.442695, %v7590_v54  ;;  %v7592_v59 = vadd.f32 %v6650_v53, %v9672_v39  ;;  %v6652_v21 = vpop.f32.mrb[63].mxu0  ;;  %v6695_v51 = vpop.f32.mrb[63].mxu1  ;;  %v7624_v39 = vadd.f32 %v6693_v27, %v9688_v28 }
0x1105   :  { %v7494_v47 = vmul.f32 -1.442695, %v7591_v0  ;;  %v7593_v15 = vadd.f32 %v6652_v21, %v9676_v32  ;;  %v7496_v36 = vmul.f32 -1.442695, %v7623_v14  ;;  %v7625_v37 = vadd.f32 %v6695_v51, %v9683_v31 }
0x1106   :  { %8564 = vpow2.f32 %v7492_v25  ;;  %v7493_v48 = vmul.f32 -1.442695, %v7592_v59 }
0x1107   :  { %8566 = vpow2.f32 %v7494_v47  ;;  %v7495_v50 = vmul.f32 -1.442695, %v7593_v15  ;;  %v7497_v32 = vmul.f32 -1.442695, %v7625_v37 }
0x1108   :  { %8568 = vpow2.f32 %v7493_v48 }
0x1109   :  { %8570 = vpow2.f32 %v7495_v50 }
0x110a   :  { %8572 = vtanh.f32 %v7622_v23 }
0x110b   :  { %8574 = vpow2.f32 %v7496_v36 }
0x110c   :  { %8576 = vtanh.f32 %v7624_v39 }
0x1110   :  { %v8565_v38 = vpop.eup %8564 }
0x1111   :  { %v8567_v61 = vpop.eup %8566  ;;  %v6712_v60 = vadd.f32 1.0, %v8565_v38 }
0x1112   :  { %v6724_v46 = vadd.f32 1.0, %v8567_v61  ;;  %v8569_v62 = vpop.eup %8568 }
0x1113   :  { %8578 = vrcp.f32 %v6712_v60  ;;  %v6713_v63 = vadd.f32 1.0, %v8569_v62  ;;  %v8571_v1 = vpop.eup %8570 }
0x1114   :  { %8580 = vrcp.f32 %v6724_v46  ;;  %v6725_v2 = vadd.f32 1.0, %v8571_v1  ;;  %v8573_v31 = vpop.eup %8572 }
0x1115   :  { %8582 = vpow2.f32 %v7497_v32  ;;  %v8575_v3 = vpop.eup %8574 }
0x1116   :  { %8584 = vrcp.f32 %v6713_v63  ;;  %v8577_v28 = vpop.eup %8576  ;;  %v6738_v41 = vadd.f32 1.0, %v8575_v3 }
0x1117   :  { %8586 = vrcp.f32 %v6725_v2 }
0x1118   :  { %8588 = vrcp.f32 %v6738_v41 }
0x111d   :  { %v8579_v4 = vpop.eup %8578 }
0x111e   :  { %v8581_v5 = vpop.eup %8580  ;;  %v6746_v8 = vmul.f32 %v8579_v4, %v8573_v31 }
0x111f   :  { %v8583_v44 = vpop.eup %8582  ;;  %v6744_v45 = vmul.f32 %v8581_v5, %v10053_v20 }
0x1120   :  { %v8585_v9 = vpop.eup %8584  ;;  %v6739_v17 = vadd.f32 1.0, %v8583_v44 }
0x1121   :  { %v6748_v40 = vadd.f32 %v6746_v8, %v6744_v45  ;;  %v6747_v6 = vmul.f32 %v8585_v9, %v8577_v28  ;;  %v8587_v49 = vpop.eup %8586 }
0x1122   :  { %v6745_v57 = vmul.f32 %v8587_v49, %v10057_v42  ;;  %v8589_v19 = vpop.eup %8588 }
0x1123   :  { %8590 = vtanh.f32 %v6748_v40  ;;  %6759 = vst [vmem:[#allocation16 + $0x10] sm:$0xff] %v6748_v40 }
0x1124   :  { %v6749_v56 = vadd.f32 %v6747_v6, %v6745_v57  ;;  %8592 = vrcp.f32 %v6739_v17 }
0x1126   :  { %8594 = vtanh.f32 %v6749_v56  ;;  %6760 = vst [vmem:[#allocation16 + $0x18] sm:$0xff] %v6749_v56 }
0x112d   :  { %v8591_v30 = vpop.eup %8590 }
0x112e   :  { %v6752_v11 = vmul.f32 %v8591_v30, %v8589_v19  ;;  %v8593_v26 = vpop.eup %8592 }
0x1130   :  { %6755 = vst [vmem:[#allocation13 + $0x70] sm:$0xff] %v6752_v11  ;;  %6757 = vst [vmem:[#allocation14 + $0x10] sm:$0xff] %v6752_v11  ;;  %v8595_v34 = vpop.eup %8594 }
0x1131   :  { %v6753_v20 = vmul.f32 %v8595_v34, %v8593_v26 }
0x1133   :  { %6756 = vst [vmem:[#allocation13 + $0x78] sm:$0xff] %v6753_v20  ;;  %6758 = vst [vmem:[#allocation14 + $0x18] sm:$0xff] %v6753_v20 }
0x1134   :  { %8717 = shalt.err (!%p8714_p2)
}
0x1135   :  { %s8718_s16 = scalar_lea.hbm %s10137_s8, 512 }
0x1136   :  { %p8719_p3 = scmp.ne.s32.totalorder %s10137_s8, %s8718_s16  ;;  %p8722_p4 = scmp.lt.u32.totalorder %s8718_s16, %s10137_s8 }
0x1138   :  { %p8724_p5 = pnand %p8722_p4, %p8719_p3 }
0x113a   :  { %8727 = shalt.err (!%p8724_p5)
}
0x113b   :  { %s8796_s21 = smov 128   ;;  %s8797_s22 = smov 8  }
0x113c   :  { %6784 = dma.vmem_to_hbm [thread:$0]  %s6779_s30, 512, %s10137_s8, [#allocation15], %s8796_s21, %s8796_s21, %s8797_s22  }
0x113d   :  { %s8728_s4 = scalar_lea.vmem %s10070_s12, 2048  ;;  %p8733_p7 = scmp.lt.s32.totalorder %s10070_s12, %s10070_s12 }
0x113e   :  { %p8729_p6 = scmp.ne.s32.totalorder %s10070_s12, %s8728_s4  ;;  %p8734_p8 = scmp.lt.s32.totalorder %s8728_s4, %s8728_s4 }
0x1140   :  { %p8735_p9 = por %p8734_p8, %p8733_p7 }
0x1142   :  { %p8736_p10 = pnand %p8735_p9, %p8729_p6 }
0x1144   :  { %8739 = shalt.err (!%p8736_p10)
}
0x1145   :  { %s8740_s28 = scalar_lea.hbm %s10136_s7, 2048 }
0x1146   :  { %p8741_p11 = scmp.ne.s32.totalorder %s10136_s7, %s8740_s28  ;;  %p8744_p12 = scmp.lt.u32.totalorder %s8740_s28, %s10136_s7 }
0x1148   :  { %p8746_p13 = pnand %p8744_p12, %p8741_p11 }
0x114a   :  { %8749 = shalt.err (!%p8746_p13)
}
0x114b   :  { %6772 = dma.vmem_to_hbm [thread:$0]  %s10070_s12, 2048, %s10136_s7, [#allocation6], %s8796_s21, %s8796_s21, %s8797_s22  }
0x114c   :  { %s8750_s20 = scalar_lea.vmem %s10072_s1, 512  ;;  %p8755_p1 = scmp.lt.s32.totalorder %s10072_s1, %s10072_s1 }
0x114d   :  { %p8751_p0 = scmp.ne.s32.totalorder %s10072_s1, %s8750_s20  ;;  %p8756_p2 = scmp.lt.s32.totalorder %s8750_s20, %s8750_s20 }
0x114f   :  { %p8757_p3 = por %p8756_p2, %p8755_p1 }
0x1151   :  { %p8758_p4 = pnand %p8757_p3, %p8751_p0 }
0x1153   :  { %8761 = shalt.err (!%p8758_p4)
}
0x1154   :  { %s8762_s11 = scalar_lea.hbm %s10138_s9, 512 }
0x1155   :  { %p8763_p5 = scmp.ne.s32.totalorder %s10138_s9, %s8762_s11  ;;  %p8766_p6 = scmp.lt.u32.totalorder %s8762_s11, %s10138_s9 }
0x1157   :  { %p8768_p7 = pnand %p8766_p6, %p8763_p5 }
0x1159   :  { %8771 = shalt.err (!%p8768_p7)
}
0x115a   :  { %6796 = dma.vmem_to_hbm [thread:$0]  %s10072_s1, 512, %s10138_s9, [#allocation15], %s8796_s21, %s8796_s21, %s8797_s22  }
0x115b   :  { %8778 = dma.done.wait [#allocation6], 2048  }
0x115c   :  { %8779 = vsyncadd [#allocation6], 4294965248 }
0x115d   :  { %8780 = dma.done.wait [#allocation15], 1024  }
0x115e   :  { %8781 = vsyncadd [#allocation15], 4294966272 }
0x115f   :  { %6806 = vsyncpa [#allocation5], 1 }
0x1160   :  { %6807 = vsyncpa [#allocation8], 1 }
0x1161   :  { %6808 = vsyncpa [#allocation11], 1 }
0x1162   :  { %6809 = vsyncpa [#allocation6], 1 }
0x1163   :  { %6810 = vsyncpa [#allocation15], 1 }

</bundles_post_ra>
